<compile_context>
chip_gen: v7x
topology: tpu7x:2x2x1
jax: 0.10.0
libtpu: 0.0.40
codegen_flags: <defaults>
</compile_context>

<pallas_src>
import numpy as np

import jax
import jax.numpy as jnp
from jax.experimental import pallas as pl
from jax.experimental.pallas import tpu as pltpu

# ---- model hyperparameters ----
D_IN = 8
D = 32
D_HIDDEN_FACTOR = 2.0
D_HIDDEN = int(D * D_HIDDEN_FACTOR)          # 64
N_LAYERS = 2
D_OUT = 1
LN_EPS = 1e-5

BATCH = 1000                                 # deliberately not a tile multiple


# ---- packed bias / LayerNorm slab layout (rows of a [ROWS, 1] f32 array) ----
def _build_slab_offsets():
    off = {}
    r = 0

    def alloc(name, n):
        nonlocal r
        off[name] = r
        r += n

    alloc("bf", D)
    for l in range(N_LAYERS):
        alloc(f"ln_g{l}", D)
        alloc(f"ln_b{l}", D)
        alloc(f"b0{l}", 2 * D_HIDDEN)
        alloc(f"b1{l}", D)
    alloc("lg", D)
    alloc("lb", D)
    alloc("wh", D)
    alloc("bh", 1)
    return off, r


SLAB_OFF, SLAB_ROWS = _build_slab_offsets()           # 577 rows
SLAB_ROWS_PAD = ((SLAB_ROWS + 7) // 8) * 8            # 584 (sublane aligned)


def _layernorm_cols(x, gamma, beta):
    """One-pass LayerNorm over the feature (sublane) axis of a [F, TILE_B] tile."""
    mu = jnp.mean(x, axis=0, keepdims=True)
    ex2 = jnp.mean(x * x, axis=0, keepdims=True)
    var = jnp.maximum(ex2 - mu * mu, 0.0)             # clamp: cancellation-safe
    return (x - mu) * jax.lax.rsqrt(var + LN_EPS) * gamma + beta


def resnet_kernel(x_ref, wf_ref, w0_ref, w1_ref, vec_ref, out_ref):
    def vec(name, n):
        off = SLAB_OFF[name]                           # static python int
        return vec_ref[off:off + n, :]                 # [n, 1] sublane slice

    # first_layer: [d, d_in] @ [d_in, TILE_B] + [d, 1] -> [d, TILE_B]
    h = jnp.dot(wf_ref[...], x_ref[...],
                preferred_element_type=jnp.float32) + vec("bf", D)

    # residual blocks (statically unrolled — n_layers is small and fixed)
    for l in range(N_LAYERS):
        z = _layernorm_cols(h, vec(f"ln_g{l}", D), vec(f"ln_b{l}", D))
        # fused linear0: one [2*dh, d] @ [d, TILE_B] dot, then reglu via a
        # free 8-aligned sublane split of the result.
        y = jnp.dot(w0_ref[l], z,
                    preferred_element_type=jnp.float32) + vec(f"b0{l}", 2 * D_HIDDEN)
        a = y[:D_HIDDEN]
        b = y[D_HIDDEN:]
        z = a * jnp.maximum(b, 0.0)                    # reglu
        # hidden_dropout = 0.0 -> no-op (eval mode)
        z = jnp.dot(w1_ref[l], z,
                    preferred_element_type=jnp.float32) + vec(f"b1{l}", D)
        # residual_dropout = 0.0 -> no-op (eval mode)
        h = h + z

    # last normalization + last activation (relu for 'reglu')
    h = _layernorm_cols(h, vec("lg", D), vec("lb", D))
    h = jnp.maximum(h, 0.0)

    # head (d_out=1): per-feature scale + sublane reduction -> lane-dense [1, TILE_B]
    out_ref[...] = jnp.sum(h * vec("wh", D), axis=0, keepdims=True) + vec("bh", 1)


def _full_spec(shape):
    nd = len(shape)
    return pl.BlockSpec(shape, lambda i, _nd=nd: (0,) * _nd)


def _num_tensorcores():
    """v7x has 2 TensorCores per chip; v5e/v6e have 1."""
    try:
        kind = jax.devices()[0].device_kind.lower()
        if "v7" in kind or "7x" in kind:
            return 2
    except Exception:
        pass
    return 1


@jax.jit
def resnet_forward(x, x_cat, packed):
    del x_cat  # unused in the reference forward as well
    n = x.shape[0]

    # One tile per TensorCore: grid=(1,) on v5e/v6e, grid=(2,) on v7x.
    n_cores = _num_tensorcores()
    tile_b = max(128, pl.cdiv(pl.cdiv(n, n_cores), 128) * 128)
    n_tiles = pl.cdiv(n, tile_b)
    n_pad = n_tiles * tile_b

    # [n, d_in] -> [d_in, n_pad] (batch on the lane axis, padded to the tile)
    xt = jnp.pad(x.astype(jnp.float32).T, ((0, 0), (0, n_pad - n)))

    in_specs = [
        pl.BlockSpec((D_IN, tile_b), lambda i: (0, i)),   # x, tiled over batch
        _full_spec(packed["wf"].shape),
        _full_spec(packed["w0"].shape),
        _full_spec(packed["w1"].shape),
        _full_spec(packed["vec"].shape),
    ]
    out_specs = pl.BlockSpec((1, tile_b), lambda i: (0, i))

    out = pl.pallas_call(
        resnet_kernel,
        out_shape=jax.ShapeDtypeStruct((1, n_pad), jnp.float32),
        grid_spec=pltpu.PrefetchScalarGridSpec(
            num_scalar_prefetch=0,
            grid=(n_tiles,),
            in_specs=in_specs,
            out_specs=out_specs,
        ),
        compiler_params=pltpu.CompilerParams(
            dimension_semantics=("parallel",)),
    )(xt, packed["wf"], packed["w0"], packed["w1"], packed["vec"])

    # drop padding and squeeze(-1)
    return out[0, :n]


def init_params(key):
    """Deterministic synthetic init, PyTorch nn.Linear-style uniform bounds.

    Weights are stored [out, in] (kernel computes W @ X).  linear0 of each
    block keeps its full [2*d_hidden, d] shape (matches nn.Linear followed by
    chunk(2, dim=-1) in the reference).
    """
    def linear(k, fan_in, fan_out):
        kw, kb = jax.random.split(k)
        bound = 1.0 / np.sqrt(fan_in)
        w = jax.random.uniform(kw, (fan_out, fan_in), jnp.float32, -bound, bound)
        b = jax.random.uniform(kb, (fan_out,), jnp.float32, -bound, bound)
        return w, b

    keys = jax.random.split(key, 2 + N_LAYERS)
    wf, bf = linear(keys[0], D_IN, D)

    w0s, b0s, w1s, b1s, gs, bs = [], [], [], [], [], []
    for l in range(N_LAYERS):
        k0, k1 = jax.random.split(keys[1 + l])
        w0, b0 = linear(k0, D, 2 * D_HIDDEN)
        w1, b1 = linear(k1, D_HIDDEN, D)
        w0s.append(w0); b0s.append(b0)
        w1s.append(w1); b1s.append(b1)
        gs.append(jnp.ones((D,), jnp.float32))
        bs.append(jnp.zeros((D,), jnp.float32))

    wh, bh = linear(keys[1 + N_LAYERS], D, D_OUT)      # [1, d], [1]

    return {
        "wf": wf, "bf": bf,                            # [d, d_in], [d]
        "w0": jnp.stack(w0s, 0), "b0": jnp.stack(b0s, 0),   # [L, 2dh, d], [L, 2dh]
        "w1": jnp.stack(w1s, 0), "b1": jnp.stack(b1s, 0),   # [L, d, dh],  [L, d]
        "ln_g": jnp.stack(gs, 0), "ln_b": jnp.stack(bs, 0), # [L, d]
        "lg": jnp.ones((D,), jnp.float32),
        "lb": jnp.zeros((D,), jnp.float32),
        "wh": wh,                                      # [1, d]
        "bh": bh,                                      # [1]
    }


def pack_params(p):
    """Pack all tiny bias / LN vectors into one [SLAB_ROWS_PAD, 1] slab."""
    pieces = [p["bf"]]
    for l in range(N_LAYERS):
        pieces += [p["ln_g"][l], p["ln_b"][l], p["b0"][l], p["b1"][l]]
    pieces += [p["lg"], p["lb"], p["wh"][0], p["bh"]]
    slab = jnp.concatenate(pieces, axis=0)
    assert slab.shape[0] == SLAB_ROWS
    slab = jnp.pad(slab, (0, SLAB_ROWS_PAD - SLAB_ROWS)).reshape(SLAB_ROWS_PAD, 1)
    return {"wf": p["wf"], "w0": p["w0"], "w1": p["w1"], "vec": slab}


def resnet_reference(x, p):
    """Pure-JAX reference in the standard [N, D] layout (matches PyTorch eval)."""
    def ln(h, g, b):
        mu = jnp.mean(h, axis=-1, keepdims=True)
        var = jnp.mean((h - mu) ** 2, axis=-1, keepdims=True)
        return (h - mu) * jax.lax.rsqrt(var + LN_EPS) * g + b

    h = x @ p["wf"].T + p["bf"]
    for l in range(N_LAYERS):
        z = ln(h, p["ln_g"][l], p["ln_b"][l])
        y = z @ p["w0"][l].T + p["b0"][l]
        a, b = y[:, :D_HIDDEN], y[:, D_HIDDEN:]
        z = a * jnp.maximum(b, 0.0)
        z = z @ p["w1"][l].T + p["b1"][l]
        h = h + z
    h = ln(h, p["lg"], p["lb"])
    h = jnp.maximum(h, 0.0)
    h = h @ p["wh"].T + p["bh"]
    return h[:, 0]


if __name__ == "__main__":
    key = jax.random.PRNGKey(0)
    kx, kc, kp = jax.random.split(key, 3)

    x = jax.random.normal(kx, (BATCH, D_IN), jnp.float32)
    x_cat = jax.random.randint(kc, (BATCH, 3), 0, 5)   # unused by forward
    params = init_params(kp)
    packed = pack_params(params)

    out = resnet_forward(x, x_cat, packed)
    out = jax.block_until_ready(out)

    ref = resnet_reference(x, params)
    np.testing.assert_allclose(np.asarray(out), np.asarray(ref),
                               rtol=1e-4, atol=1e-4)
    assert out.shape == (BATCH,)
    print("KERNEL_OK")
</pallas_src>

<mosaic_0001>
module attributes {stable_mosaic.version = 11 : i64} {
  func.func @resnet_kernel(%arg0: i32, %arg1: memref<8x1024xf32, #tpu.memory_space<vmem>>, %arg2: memref<32x8xf32, #tpu.memory_space<vmem>>, %arg3: memref<2x128x32xf32, #tpu.memory_space<vmem>>, %arg4: memref<2x32x64xf32, #tpu.memory_space<vmem>>, %arg5: memref<584x1xf32, #tpu.memory_space<vmem>>, %arg6: memref<1x1024xf32, #tpu.memory_space<vmem>>) attributes {dimension_semantics = [#tpu.dimension_semantics<parallel>], iteration_bounds = array<i64: 1>, scalar_prefetch = 0 : i64, scratch_operands = 0 : i64, tpu.core_type = #tpu.core_type<tc>, window_params = [{transform_indices = @transform_0, window_bounds = array<i64: 8, 1024>}, {pipeline_mode = #tpu.pipeline_mode<synchronous>, transform_indices = @transform_1, window_bounds = array<i64: 32, 8>}, {pipeline_mode = #tpu.pipeline_mode<synchronous>, transform_indices = @transform_2, window_bounds = array<i64: 2, 128, 32>}, {pipeline_mode = #tpu.pipeline_mode<synchronous>, transform_indices = @transform_3, window_bounds = array<i64: 2, 32, 64>}, {pipeline_mode = #tpu.pipeline_mode<synchronous>, transform_indices = @transform_4, window_bounds = array<i64: 584, 1>}, {transform_indices = @transform_5, window_bounds = array<i64: 1, 1024>}]} {
    %c0 = arith.constant 0 : index
    %c0_0 = arith.constant 0 : index
    %0 = vector.load %arg2[%c0, %c0_0] : memref<32x8xf32, #tpu.memory_space<vmem>>, vector<32x8xf32>
    %c0_1 = arith.constant 0 : index
    %c0_2 = arith.constant 0 : index
    %1 = vector.load %arg1[%c0_1, %c0_2] : memref<8x1024xf32, #tpu.memory_space<vmem>>, vector<8x1024xf32>
    %cst = arith.constant dense<0.000000e+00> : vector<32x1024xf32>
    %2 = tpu.matmul %0, %1, %cst {dimension_numbers = #tpu.dot_dimension_numbers<[1], [0], [0], [1], [0, 0, 1, 1], [], []>} : vector<32x8xf32>, vector<8x1024xf32>, vector<32x1024xf32> -> vector<32x1024xf32>
    %c0_3 = arith.constant 0 : index
    %c0_4 = arith.constant 0 : index
    %3 = vector.load %arg5[%c0_3, %c0_4] : memref<584x1xf32, #tpu.memory_space<vmem>>, vector<32x1xf32>
    %4 = vector.broadcast %3 : vector<32x1xf32> to vector<32x1024xf32>
    %5 = arith.addf %2, %4 : vector<32x1024xf32>
    %c32 = arith.constant 32 : index
    %c0_5 = arith.constant 0 : index
    %6 = vector.load %arg5[%c32, %c0_5] : memref<584x1xf32, #tpu.memory_space<vmem>>, vector<32x1xf32>
    %c64 = arith.constant 64 : index
    %c0_6 = arith.constant 0 : index
    %7 = vector.load %arg5[%c64, %c0_6] : memref<584x1xf32, #tpu.memory_space<vmem>>, vector<32x1xf32>
    %cst_7 = arith.constant dense<0.000000e+00> : vector<1024xf32>
    %8 = vector.multi_reduction <add>, %5, %cst_7 [0] : vector<32x1024xf32> to vector<1024xf32>
    %9 = vector.shape_cast %8 : vector<1024xf32> to vector<1x1024xf32>
    %cst_8 = arith.constant 3.200000e+01 : f32
    %10 = vector.broadcast %cst_8 : f32 to vector<1x1024xf32>
    %11 = arith.divf %9, %10 : vector<1x1024xf32>
    %12 = arith.mulf %5, %5 : vector<32x1024xf32>
    %cst_9 = arith.constant dense<0.000000e+00> : vector<1024xf32>
    %13 = vector.multi_reduction <add>, %12, %cst_9 [0] : vector<32x1024xf32> to vector<1024xf32>
    %14 = vector.shape_cast %13 : vector<1024xf32> to vector<1x1024xf32>
    %cst_10 = arith.constant 3.200000e+01 : f32
    %15 = vector.broadcast %cst_10 : f32 to vector<1x1024xf32>
    %16 = arith.divf %14, %15 : vector<1x1024xf32>
    %17 = arith.mulf %11, %11 : vector<1x1024xf32>
    %18 = arith.subf %16, %17 : vector<1x1024xf32>
    %cst_11 = arith.constant 0.000000e+00 : f32
    %19 = vector.broadcast %cst_11 : f32 to vector<1x1024xf32>
    %20 = arith.maximumf %18, %19 : vector<1x1024xf32>
    %21 = vector.broadcast %11 : vector<1x1024xf32> to vector<32x1024xf32>
    %22 = arith.subf %5, %21 : vector<32x1024xf32>
    %cst_12 = arith.constant 9.99999974E-6 : f32
    %23 = vector.broadcast %cst_12 : f32 to vector<1x1024xf32>
    %24 = arith.addf %20, %23 : vector<1x1024xf32>
    %25 = math.rsqrt %24 : vector<1x1024xf32>
    %26 = vector.broadcast %25 : vector<1x1024xf32> to vector<32x1024xf32>
    %27 = arith.mulf %22, %26 : vector<32x1024xf32>
    %28 = vector.broadcast %6 : vector<32x1xf32> to vector<32x1024xf32>
    %29 = arith.mulf %27, %28 : vector<32x1024xf32>
    %30 = vector.broadcast %7 : vector<32x1xf32> to vector<32x1024xf32>
    %31 = arith.addf %29, %30 : vector<32x1024xf32>
    %c0_13 = arith.constant 0 : index
    %c0_14 = arith.constant 0 : index
    %c0_15 = arith.constant 0 : index
    %32 = vector.load %arg3[%c0_13, %c0_14, %c0_15] : memref<2x128x32xf32, #tpu.memory_space<vmem>>, vector<1x128x32xf32>
    %33 = vector.shape_cast %32 : vector<1x128x32xf32> to vector<128x32xf32>
    %cst_16 = arith.constant dense<0.000000e+00> : vector<128x1024xf32>
    %34 = tpu.matmul %33, %31, %cst_16 {dimension_numbers = #tpu.dot_dimension_numbers<[1], [0], [0], [1], [0, 0, 1, 1], [], []>} : vector<128x32xf32>, vector<32x1024xf32>, vector<128x1024xf32> -> vector<128x1024xf32>
    %c96 = arith.constant 96 : index
    %c0_17 = arith.constant 0 : index
    %35 = vector.load %arg5[%c96, %c0_17] : memref<584x1xf32, #tpu.memory_space<vmem>>, vector<128x1xf32>
    %36 = vector.broadcast %35 : vector<128x1xf32> to vector<128x1024xf32>
    %37 = arith.addf %34, %36 : vector<128x1024xf32>
    %38 = vector.extract_strided_slice %37 {offsets = [0, 0], sizes = [64, 1024], strides = [1, 1]} : vector<128x1024xf32> to vector<64x1024xf32>
    %39 = vector.extract_strided_slice %37 {offsets = [64, 0], sizes = [64, 1024], strides = [1, 1]} : vector<128x1024xf32> to vector<64x1024xf32>
    %cst_18 = arith.constant 0.000000e+00 : f32
    %40 = vector.broadcast %cst_18 : f32 to vector<64x1024xf32>
    %41 = arith.maximumf %39, %40 : vector<64x1024xf32>
    %42 = arith.mulf %38, %41 : vector<64x1024xf32>
    %c0_19 = arith.constant 0 : index
    %c0_20 = arith.constant 0 : index
    %c0_21 = arith.constant 0 : index
    %43 = vector.load %arg4[%c0_19, %c0_20, %c0_21] : memref<2x32x64xf32, #tpu.memory_space<vmem>>, vector<1x32x64xf32>
    %44 = vector.shape_cast %43 : vector<1x32x64xf32> to vector<32x64xf32>
    %cst_22 = arith.constant dense<0.000000e+00> : vector<32x1024xf32>
    %45 = tpu.matmul %44, %42, %cst_22 {dimension_numbers = #tpu.dot_dimension_numbers<[1], [0], [0], [1], [0, 0, 1, 1], [], []>} : vector<32x64xf32>, vector<64x1024xf32>, vector<32x1024xf32> -> vector<32x1024xf32>
    %c224 = arith.constant 224 : index
    %c0_23 = arith.constant 0 : index
    %46 = vector.load %arg5[%c224, %c0_23] : memref<584x1xf32, #tpu.memory_space<vmem>>, vector<32x1xf32>
    %47 = vector.broadcast %46 : vector<32x1xf32> to vector<32x1024xf32>
    %48 = arith.addf %45, %47 : vector<32x1024xf32>
    %49 = arith.addf %5, %48 : vector<32x1024xf32>
    %c256 = arith.constant 256 : index
    %c0_24 = arith.constant 0 : index
    %50 = vector.load %arg5[%c256, %c0_24] : memref<584x1xf32, #tpu.memory_space<vmem>>, vector<32x1xf32>
    %c288 = arith.constant 288 : index
    %c0_25 = arith.constant 0 : index
    %51 = vector.load %arg5[%c288, %c0_25] : memref<584x1xf32, #tpu.memory_space<vmem>>, vector<32x1xf32>
    %cst_26 = arith.constant dense<0.000000e+00> : vector<1024xf32>
    %52 = vector.multi_reduction <add>, %49, %cst_26 [0] : vector<32x1024xf32> to vector<1024xf32>
    %53 = vector.shape_cast %52 : vector<1024xf32> to vector<1x1024xf32>
    %cst_27 = arith.constant 3.200000e+01 : f32
    %54 = vector.broadcast %cst_27 : f32 to vector<1x1024xf32>
    %55 = arith.divf %53, %54 : vector<1x1024xf32>
    %56 = arith.mulf %49, %49 : vector<32x1024xf32>
    %cst_28 = arith.constant dense<0.000000e+00> : vector<1024xf32>
    %57 = vector.multi_reduction <add>, %56, %cst_28 [0] : vector<32x1024xf32> to vector<1024xf32>
    %58 = vector.shape_cast %57 : vector<1024xf32> to vector<1x1024xf32>
    %cst_29 = arith.constant 3.200000e+01 : f32
    %59 = vector.broadcast %cst_29 : f32 to vector<1x1024xf32>
    %60 = arith.divf %58, %59 : vector<1x1024xf32>
    %61 = arith.mulf %55, %55 : vector<1x1024xf32>
    %62 = arith.subf %60, %61 : vector<1x1024xf32>
    %cst_30 = arith.constant 0.000000e+00 : f32
    %63 = vector.broadcast %cst_30 : f32 to vector<1x1024xf32>
    %64 = arith.maximumf %62, %63 : vector<1x1024xf32>
    %65 = vector.broadcast %55 : vector<1x1024xf32> to vector<32x1024xf32>
    %66 = arith.subf %49, %65 : vector<32x1024xf32>
    %cst_31 = arith.constant 9.99999974E-6 : f32
    %67 = vector.broadcast %cst_31 : f32 to vector<1x1024xf32>
    %68 = arith.addf %64, %67 : vector<1x1024xf32>
    %69 = math.rsqrt %68 : vector<1x1024xf32>
    %70 = vector.broadcast %69 : vector<1x1024xf32> to vector<32x1024xf32>
    %71 = arith.mulf %66, %70 : vector<32x1024xf32>
    %72 = vector.broadcast %50 : vector<32x1xf32> to vector<32x1024xf32>
    %73 = arith.mulf %71, %72 : vector<32x1024xf32>
    %74 = vector.broadcast %51 : vector<32x1xf32> to vector<32x1024xf32>
    %75 = arith.addf %73, %74 : vector<32x1024xf32>
    %c1 = arith.constant 1 : index
    %c0_32 = arith.constant 0 : index
    %c0_33 = arith.constant 0 : index
    %76 = vector.load %arg3[%c1, %c0_32, %c0_33] : memref<2x128x32xf32, #tpu.memory_space<vmem>>, vector<1x128x32xf32>
    %77 = vector.shape_cast %76 : vector<1x128x32xf32> to vector<128x32xf32>
    %cst_34 = arith.constant dense<0.000000e+00> : vector<128x1024xf32>
    %78 = tpu.matmul %77, %75, %cst_34 {dimension_numbers = #tpu.dot_dimension_numbers<[1], [0], [0], [1], [0, 0, 1, 1], [], []>} : vector<128x32xf32>, vector<32x1024xf32>, vector<128x1024xf32> -> vector<128x1024xf32>
    %c320 = arith.constant 320 : index
    %c0_35 = arith.constant 0 : index
    %79 = vector.load %arg5[%c320, %c0_35] : memref<584x1xf32, #tpu.memory_space<vmem>>, vector<128x1xf32>
    %80 = vector.broadcast %79 : vector<128x1xf32> to vector<128x1024xf32>
    %81 = arith.addf %78, %80 : vector<128x1024xf32>
    %82 = vector.extract_strided_slice %81 {offsets = [0, 0], sizes = [64, 1024], strides = [1, 1]} : vector<128x1024xf32> to vector<64x1024xf32>
    %83 = vector.extract_strided_slice %81 {offsets = [64, 0], sizes = [64, 1024], strides = [1, 1]} : vector<128x1024xf32> to vector<64x1024xf32>
    %cst_36 = arith.constant 0.000000e+00 : f32
    %84 = vector.broadcast %cst_36 : f32 to vector<64x1024xf32>
    %85 = arith.maximumf %83, %84 : vector<64x1024xf32>
    %86 = arith.mulf %82, %85 : vector<64x1024xf32>
    %c1_37 = arith.constant 1 : index
    %c0_38 = arith.constant 0 : index
    %c0_39 = arith.constant 0 : index
    %87 = vector.load %arg4[%c1_37, %c0_38, %c0_39] : memref<2x32x64xf32, #tpu.memory_space<vmem>>, vector<1x32x64xf32>
    %88 = vector.shape_cast %87 : vector<1x32x64xf32> to vector<32x64xf32>
    %cst_40 = arith.constant dense<0.000000e+00> : vector<32x1024xf32>
    %89 = tpu.matmul %88, %86, %cst_40 {dimension_numbers = #tpu.dot_dimension_numbers<[1], [0], [0], [1], [0, 0, 1, 1], [], []>} : vector<32x64xf32>, vector<64x1024xf32>, vector<32x1024xf32> -> vector<32x1024xf32>
    %c448 = arith.constant 448 : index
    %c0_41 = arith.constant 0 : index
    %90 = vector.load %arg5[%c448, %c0_41] : memref<584x1xf32, #tpu.memory_space<vmem>>, vector<32x1xf32>
    %91 = vector.broadcast %90 : vector<32x1xf32> to vector<32x1024xf32>
    %92 = arith.addf %89, %91 : vector<32x1024xf32>
    %93 = arith.addf %49, %92 : vector<32x1024xf32>
    %c480 = arith.constant 480 : index
    %c0_42 = arith.constant 0 : index
    %94 = vector.load %arg5[%c480, %c0_42] : memref<584x1xf32, #tpu.memory_space<vmem>>, vector<32x1xf32>
    %c512 = arith.constant 512 : index
    %c0_43 = arith.constant 0 : index
    %95 = vector.load %arg5[%c512, %c0_43] : memref<584x1xf32, #tpu.memory_space<vmem>>, vector<32x1xf32>
    %cst_44 = arith.constant dense<0.000000e+00> : vector<1024xf32>
    %96 = vector.multi_reduction <add>, %93, %cst_44 [0] : vector<32x1024xf32> to vector<1024xf32>
    %97 = vector.shape_cast %96 : vector<1024xf32> to vector<1x1024xf32>
    %cst_45 = arith.constant 3.200000e+01 : f32
    %98 = vector.broadcast %cst_45 : f32 to vector<1x1024xf32>
    %99 = arith.divf %97, %98 : vector<1x1024xf32>
    %100 = arith.mulf %93, %93 : vector<32x1024xf32>
    %cst_46 = arith.constant dense<0.000000e+00> : vector<1024xf32>
    %101 = vector.multi_reduction <add>, %100, %cst_46 [0] : vector<32x1024xf32> to vector<1024xf32>
    %102 = vector.shape_cast %101 : vector<1024xf32> to vector<1x1024xf32>
    %cst_47 = arith.constant 3.200000e+01 : f32
    %103 = vector.broadcast %cst_47 : f32 to vector<1x1024xf32>
    %104 = arith.divf %102, %103 : vector<1x1024xf32>
    %105 = arith.mulf %99, %99 : vector<1x1024xf32>
    %106 = arith.subf %104, %105 : vector<1x1024xf32>
    %cst_48 = arith.constant 0.000000e+00 : f32
    %107 = vector.broadcast %cst_48 : f32 to vector<1x1024xf32>
    %108 = arith.maximumf %106, %107 : vector<1x1024xf32>
    %109 = vector.broadcast %99 : vector<1x1024xf32> to vector<32x1024xf32>
    %110 = arith.subf %93, %109 : vector<32x1024xf32>
    %cst_49 = arith.constant 9.99999974E-6 : f32
    %111 = vector.broadcast %cst_49 : f32 to vector<1x1024xf32>
    %112 = arith.addf %108, %111 : vector<1x1024xf32>
    %113 = math.rsqrt %112 : vector<1x1024xf32>
    %114 = vector.broadcast %113 : vector<1x1024xf32> to vector<32x1024xf32>
    %115 = arith.mulf %110, %114 : vector<32x1024xf32>
    %116 = vector.broadcast %94 : vector<32x1xf32> to vector<32x1024xf32>
    %117 = arith.mulf %115, %116 : vector<32x1024xf32>
    %118 = vector.broadcast %95 : vector<32x1xf32> to vector<32x1024xf32>
    %119 = arith.addf %117, %118 : vector<32x1024xf32>
    %cst_50 = arith.constant 0.000000e+00 : f32
    %120 = vector.broadcast %cst_50 : f32 to vector<32x1024xf32>
    %121 = arith.maximumf %119, %120 : vector<32x1024xf32>
    %c544 = arith.constant 544 : index
    %c0_51 = arith.constant 0 : index
    %122 = vector.load %arg5[%c544, %c0_51] : memref<584x1xf32, #tpu.memory_space<vmem>>, vector<32x1xf32>
    %123 = vector.broadcast %122 : vector<32x1xf32> to vector<32x1024xf32>
    %124 = arith.mulf %121, %123 : vector<32x1024xf32>
    %cst_52 = arith.constant dense<0.000000e+00> : vector<1024xf32>
    %125 = vector.multi_reduction <add>, %124, %cst_52 [0] : vector<32x1024xf32> to vector<1024xf32>
    %126 = vector.shape_cast %125 : vector<1024xf32> to vector<1x1024xf32>
    %c576 = arith.constant 576 : index
    %c0_53 = arith.constant 0 : index
    %127 = vector.load %arg5[%c576, %c0_53] : memref<584x1xf32, #tpu.memory_space<vmem>>, vector<1x1xf32>
    %128 = vector.broadcast %127 : vector<1x1xf32> to vector<1x1024xf32>
    %129 = arith.addf %126, %128 : vector<1x1024xf32>
    %c0_54 = arith.constant 0 : index
    %c0_55 = arith.constant 0 : index
    %130 = vector.load %arg6[%c0_54, %c0_55] : memref<1x1024xf32, #tpu.memory_space<vmem>>, vector<1x1024xf32>
    tpu.vector_store %arg6[%c0_54, %c0_55], %129 {strides = array<i32>} : memref<1x1024xf32, #tpu.memory_space<vmem>>, vector<1x1024xf32>,
    return
  }
  func.func @transform_0(%arg0: i32) -> (i32, i32) {
    %c0_i32 = arith.constant 0 : i32
    %c0_i32_0 = arith.constant 0 : i32
    return %c0_i32, %arg0 : i32, i32
  }
  func.func @transform_1(%arg0: i32) -> (i32, i32) {
    %c0_i32 = arith.constant 0 : i32
    %c0_i32_0 = arith.constant 0 : i32
    %c0_i32_1 = arith.constant 0 : i32
    return %c0_i32, %c0_i32_0 : i32, i32
  }
  func.func @transform_2(%arg0: i32) -> (i32, i32, i32) {
    %c0_i32 = arith.constant 0 : i32
    %c0_i32_0 = arith.constant 0 : i32
    %c0_i32_1 = arith.constant 0 : i32
    %c0_i32_2 = arith.constant 0 : i32
    return %c0_i32, %c0_i32_0, %c0_i32_1 : i32, i32, i32
  }
  func.func @transform_3(%arg0: i32) -> (i32, i32, i32) {
    %c0_i32 = arith.constant 0 : i32
    %c0_i32_0 = arith.constant 0 : i32
    %c0_i32_1 = arith.constant 0 : i32
    %c0_i32_2 = arith.constant 0 : i32
    return %c0_i32, %c0_i32_0, %c0_i32_1 : i32, i32, i32
  }
  func.func @transform_4(%arg0: i32) -> (i32, i32) {
    %c0_i32 = arith.constant 0 : i32
    %c0_i32_0 = arith.constant 0 : i32
    %c0_i32_1 = arith.constant 0 : i32
    return %c0_i32, %c0_i32_0 : i32, i32
  }
  func.func @transform_5(%arg0: i32) -> (i32, i32) {
    %c0_i32 = arith.constant 0 : i32
    %c0_i32_0 = arith.constant 0 : i32
    return %c0_i32, %arg0 : i32, i32
  }
}

</mosaic_0001>

<bundles_post_ra>
// kernel: resnet_forward.1
= control target key start
LH: loop header
LB: loop body
LE: loop exit
PB: predicated region body
PF: predicated region fallthrough
CT: control target
= control target key end

     0   :  { %v5088_v2 = vmov 0   ;;  %v8233_v7 = vmov 0.0   ;;  %vm57_vm0 = vcmask 64512   ;;  %s8227_s0 = inlined_call_operand.vmem [shape: f32[8,1024], index: 0, kind: input, shape index: {}]   ;;  %s8228_s1 = inlined_call_operand.vmem [shape: f32[32,8], index: 1, kind: input, shape index: {}]   ;;  %s8229_s2 = inlined_call_operand.vmem [shape: f32[2,128,32], index: 2, kind: input, shape index: {}]   ;;  %s8230_s3 = inlined_call_operand.vmem [shape: f32[2,32,64], index: 3, kind: input, shape index: {}]   ;;  %s8231_s4 = inlined_call_operand.vmem [shape: f32[584,1], index: 4, kind: input, shape index: {}]   ;;  %s8232_s5 = inlined_call_operand.hbm [shape: f32[1,1024], index: 5, kind: output, shape index: {}]  }
   0x1   :  { %v26_v0 = vld [vmem:[%s8227_s0 + $0x8] sm:$0xff]  ;;  %v28_v1 = vld [vmem:[%s8227_s0 + $0x18] sm:$0xff]  ;;  %5015 = vset.pattern.permute.xlu1 %v5088_v2  ;;  %5014 = vset.pattern.permute.xlu0 %v5088_v2  ;;  %v35_v3 = vld [vmem:[%s8231_s4 + $0x10] sm:$0xff] }
   0x2   :  { %v33_v4 = vld [vmem:[%s8231_s4] sm:$0xff]  ;;  %70 = vmatprep.subr.mxu0 %v26_v0  ;;  %159 = vmatprep.subr.mxu1 %v28_v1  ;;  %v27_v6 = vld [vmem:[%s8227_s0 + $0x10] sm:$0xff]  ;;  %v36_v9 = vld [vmem:[%s8231_s4 + $0x18] sm:$0xff] }
   0x3   :  { %v25_v5 = vld [vmem:[%s8227_s0] sm:$0xff]  ;;  %134 = vmatprep.mubr.f32.mxu0 %v8233_v7  ;;  %223 = vmatprep.mubr.f32.mxu1 %v8233_v7  ;;  %v34_v10 = vld [vmem:[%s8231_s4 + $0x8] sm:$0xff]  ;;  %v32_v12 = vld [vmem:[%s8227_s0 + $0x38] sm:$0xff] }
   0x4   :  { %v21_v8 = vld [vmem:[%s8228_s1] sm:$0xff]  ;;  %49 = vperm.xlu1 %5015, %v35_v3   ;;  %39 = vperm.xlu0 %5014, %v33_v4   ;;  %v30_v11 = vld [vmem:[%s8227_s0 + $0x28] sm:$0xff]  ;;  %v31_v17 = vld [vmem:[%s8227_s0 + $0x30] sm:$0xff] }
   0x5   :  { %71 = vmatpush1.msra.mxu0 %v25_v5  ;;  %160 = vmatpush1.msra.mxu1 %v27_v6  ;;  %v22_v13 = vld [vmem:[%s8228_s1 + $0x8] sm:$0xff]  ;;  %v426_v15 = vld [vmem:[%s8231_s4 + $0x20] sm:$0xff]  ;;  %v23_v18 = vld [vmem:[%s8228_s1 + $0x10] sm:$0xff] }
   0x6   :  { %4622 = vmatmul.mubr.msk.f32.vlgmr.msra.gmra.mrb[0].mxu0 %vm57_vm0, %v21_v8  ;;  %4626 = vmatmul.mubr.msk.f32.vlgmr.msra.gmra.mrb[0].mxu1 %vm57_vm0, %v21_v8  ;;  %v427_v14 = vld [vmem:[%s8231_s4 + $0x28] sm:$0xff]  ;;  %v29_v16 = vld [vmem:[%s8227_s0 + $0x20] sm:$0xff]  ;;  %v24_v21 = vld [vmem:[%s8228_s1 + $0x18] sm:$0xff] }
   0x7   :  { %140 = vmatprep.mubr.f32.mxu0 %v8233_v7  ;;  %229 = vmatprep.mubr.f32.mxu1 %v8233_v7  ;;  %v431_v19 = vld [vmem:[%s8231_s4 + $0x48] sm:$0xff]  ;;  %v430_v20 = vld [vmem:[%s8231_s4 + $0x40] sm:$0xff]  ;;  %v429_v22 = vld [vmem:[%s8231_s4 + $0x38] sm:$0xff] }
   0x8   :  { %54 = vperm.xlu1 %5015, %v36_v9   ;;  %44 = vperm.xlu0 %5014, %v34_v10   ;;  %v428_v23 = vld [vmem:[%s8231_s4 + $0x30] sm:$0xff]  ;;  %v433_v24 = vld [vmem:[%s8231_s4 + $0x58] sm:$0xff]  ;;  %v860_v26 = vld [vmem:[%s8231_s4 + $0xa8] sm:$0xff] }
   0x9   :  { %248 = vmatprep.subr.mxu0 %v30_v11  ;;  %337 = vmatprep.subr.mxu1 %v32_v12  ;;  %v432_v25 = vld [vmem:[%s8231_s4 + $0x50] sm:$0xff]  ;;  %v859_v27 = vld [vmem:[%s8231_s4 + $0xa0] sm:$0xff] }
   0xa   :  { %4623 = vmatmul.mubr.msk.f32.gmra.mrb[2].mxu0 %vm57_vm0, %v22_v13  ;;  %4627 = vmatmul.mubr.msk.f32.gmra.mrb[2].mxu1 %vm57_vm0, %v22_v13 }
   0xb   :  { %146 = vmatprep.mubr.f32.mxu0 %v8233_v7  ;;  %235 = vmatprep.mubr.f32.mxu1 %v8233_v7 }
   0xc   :  { %738 = vperm.xlu1 %5015, %v427_v14   ;;  %733 = vperm.xlu0 %5014, %v426_v15  }
   0xd   :  { %249 = vmatpush1.msra.mxu0 %v29_v16  ;;  %338 = vmatpush1.msra.mxu1 %v31_v17 }
   0xe   :  { %4624 = vmatmul.mubr.msk.f32.gmra.mrb[4].mxu0 %vm57_vm0, %v23_v18  ;;  %4628 = vmatmul.mubr.msk.f32.gmra.mrb[4].mxu1 %vm57_vm0, %v23_v18 }
   0xf   :  { %152 = vmatprep.mubr.f32.mxu0 %v8233_v7  ;;  %241 = vmatprep.mubr.f32.mxu1 %v8233_v7 }
  0x10   :  { %790 = vperm.xlu1 %5015, %v431_v19   ;;  %785 = vperm.xlu0 %5014, %v430_v20  }
  0x12   :  { %4625 = vmatmul.mubr.msk.f32.gmra.mrb[6].mxu0 %vm57_vm0, %v24_v21  ;;  %4629 = vmatmul.mubr.msk.f32.gmra.mrb[6].mxu1 %vm57_vm0, %v24_v21 }
  0x13   :  { %312 = vmatprep.mubr.f32.mxu0 %v8233_v7  ;;  %401 = vmatprep.mubr.f32.mxu1 %v8233_v7 }
  0x14   :  { %748 = vperm.xlu1 %5015, %v429_v22   ;;  %743 = vperm.xlu0 %5014, %v428_v23  }
  0x16   :  { %4630 = vmatmul.mubr.msk.f32.vlgmr.msra.gmra.mrb[8].mxu0 %vm57_vm0, %v21_v8  ;;  %4634 = vmatmul.mubr.msk.f32.vlgmr.msra.gmra.mrb[8].mxu1 %vm57_vm0, %v21_v8 }
  0x17   :  { %318 = vmatprep.mubr.f32.mxu0 %v8233_v7  ;;  %407 = vmatprep.mubr.f32.mxu1 %v8233_v7 }
  0x18   :  { %800 = vperm.xlu1 %5015, %v433_v24   ;;  %795 = vperm.xlu0 %5014, %v432_v25  }
  0x1a   :  { %4631 = vmatmul.mubr.msk.f32.gmra.mrb[10].mxu0 %vm57_vm0, %v22_v13  ;;  %4635 = vmatmul.mubr.msk.f32.gmra.mrb[10].mxu1 %vm57_vm0, %v22_v13 }
  0x1b   :  { %324 = vmatprep.mubr.f32.mxu0 %v8233_v7  ;;  %413 = vmatprep.mubr.f32.mxu1 %v8233_v7 }
  0x1c   :  { %914 = vperm.xlu1 %5015, %v860_v26   ;;  %909 = vperm.xlu0 %5014, %v859_v27  }
  0x1d   :  { %10 = vsyncpa [#allocation3], 0  ;;  %v852_v28 = vld [vmem:[%s8231_s4 + $0x68] sm:$0xff]  ;;  %v851_v29 = vld [vmem:[%s8231_s4 + $0x60] sm:$0xff]  ;;  %vm947_vm1 = vcmask 261120   ;;  %vm1796_vm2 = vcmask 523264  }
  0x1e   :  { %4632 = vmatmul.mubr.msk.f32.gmra.mrb[12].mxu0 %vm57_vm0, %v23_v18  ;;  %4636 = vmatmul.mubr.msk.f32.gmra.mrb[12].mxu1 %vm57_vm0, %v23_v18  ;;  %v862_v30 = vld [vmem:[%s8231_s4 + $0xb8] sm:$0xff]  ;;  %v861_v31 = vld [vmem:[%s8231_s4 + $0xb0] sm:$0xff]  ;;  %v864_v34 = vld [vmem:[%s8231_s4 + $0xc8] sm:$0xff] }
  0x1f   :  { %330 = vmatprep.mubr.f32.mxu0 %v8233_v7  ;;  %419 = vmatprep.mubr.f32.mxu1 %v8233_v7  ;;  %v854_v32 = vld [vmem:[%s8231_s4 + $0x78] sm:$0xff]  ;;  %v853_v33 = vld [vmem:[%s8231_s4 + $0x70] sm:$0xff]  ;;  %v863_v35 = vld [vmem:[%s8231_s4 + $0xc0] sm:$0xff] }
  0x20   :  { %874 = vperm.xlu1 %5015, %v852_v28   ;;  %869 = vperm.xlu0 %5014, %v851_v29   ;;  %v856_v36 = vld [vmem:[%s8231_s4 + $0x88] sm:$0xff]  ;;  %v855_v37 = vld [vmem:[%s8231_s4 + $0x80] sm:$0xff]  ;;  %v866_v38 = vld [vmem:[%s8231_s4 + $0xd8] sm:$0xff] }
  0x21   :  { %v865_v39 = vld [vmem:[%s8231_s4 + $0xd0] sm:$0xff]  ;;  %v858_v40 = vld [vmem:[%s8231_s4 + $0x98] sm:$0xff]  ;;  %v1773_v42 = vld [vmem:[%s8231_s4 + $0xe8] sm:$0xff] }
  0x22   :  { %4633 = vmatmul.mubr.msk.f32.gmra.mrb[14].mxu0 %vm57_vm0, %v24_v21  ;;  %4637 = vmatmul.mubr.msk.f32.gmra.mrb[14].mxu1 %vm57_vm0, %v24_v21  ;;  %v857_v41 = vld [vmem:[%s8231_s4 + $0x90] sm:$0xff]  ;;  %v1772_v43 = vld [vmem:[%s8231_s4 + $0xe0] sm:$0xff]  ;;  %v1775_v44 = vld [vmem:[%s8231_s4 + $0xf8] sm:$0xff] }
  0x23   :  { %1060 = vmatprep.mubr.f32.mxu0 %v8233_v7  ;;  %1221 = vmatprep.mubr.f32.mxu1 %v8233_v7  ;;  %v1774_v45 = vld [vmem:[%s8231_s4 + $0xf0] sm:$0xff]  ;;  %v2198_v46 = vld [vmem:[%s8231_s4 + $0x108] sm:$0xff]  ;;  %v2197_v47 = vld [vmem:[%s8231_s4 + $0x100] sm:$0xff] }
  0x24   :  { %924 = vperm.xlu1 %5015, %v862_v30   ;;  %919 = vperm.xlu0 %5014, %v861_v31   ;;  %v2202_v48 = vld [vmem:[%s8231_s4 + $0x128] sm:$0xff]  ;;  %v2201_v49 = vld [vmem:[%s8231_s4 + $0x120] sm:$0xff]  ;;  %v2200_v50 = vld [vmem:[%s8231_s4 + $0x118] sm:$0xff] }
  0x25   :  { %v2199_v51 = vld [vmem:[%s8231_s4 + $0x110] sm:$0xff]  ;;  %v2204_v52 = vld [vmem:[%s8231_s4 + $0x138] sm:$0xff]  ;;  %v2631_v54 = vld [vmem:[%s8231_s4 + $0x188] sm:$0xff] }
  0x26   :  { %v2203_v53 = vld [vmem:[%s8231_s4 + $0x130] sm:$0xff]  ;;  %v2630_v55 = vld [vmem:[%s8231_s4 + $0x180] sm:$0xff]  ;;  %v2623_v56 = vld [vmem:[%s8231_s4 + $0x148] sm:$0xff] }
  0x27   :  { %v2622_v57 = vld [vmem:[%s8231_s4 + $0x140] sm:$0xff]  ;;  %v2633_v58 = vld [vmem:[%s8231_s4 + $0x198] sm:$0xff]  ;;  %v2632_v59 = vld [vmem:[%s8231_s4 + $0x190] sm:$0xff] }
  0x28   :  { %884 = vperm.xlu1 %5015, %v854_v32   ;;  %879 = vperm.xlu0 %5014, %v853_v33   ;;  %v2625_v60 = vld [vmem:[%s8231_s4 + $0x158] sm:$0xff]  ;;  %v2624_v61 = vld [vmem:[%s8231_s4 + $0x150] sm:$0xff]  ;;  %v2635_v62 = vld [vmem:[%s8231_s4 + $0x1a8] sm:$0xff] }
  0x29   :  { %v2634_v63 = vld [vmem:[%s8231_s4 + $0x1a0] sm:$0xff]  ;;  %v2627_v0 = vld [vmem:[%s8231_s4 + $0x168] sm:$0xff]  ;;  %v2637_v2 = vld [vmem:[%s8231_s4 + $0x1b8] sm:$0xff] }
  0x2a   :  { %v2626_v1 = vld [vmem:[%s8231_s4 + $0x160] sm:$0xff]  ;;  %v2636_v3 = vld [vmem:[%s8231_s4 + $0x1b0] sm:$0xff]  ;;  %v2629_v4 = vld [vmem:[%s8231_s4 + $0x178] sm:$0xff] }
  0x2b   :  { %v2628_v5 = vld [vmem:[%s8231_s4 + $0x170] sm:$0xff]  ;;  %v3544_v6 = vld [vmem:[%s8231_s4 + $0x1c8] sm:$0xff]  ;;  %v3543_v8 = vld [vmem:[%s8231_s4 + $0x1c0] sm:$0xff] }
  0x2c   :  { %934 = vperm.xlu1 %5015, %v864_v34   ;;  %929 = vperm.xlu0 %5014, %v863_v35   ;;  %v3546_v9 = vld [vmem:[%s8231_s4 + $0x1d8] sm:$0xff]  ;;  %v3545_v10 = vld [vmem:[%s8231_s4 + $0x1d0] sm:$0xff]  ;;  %v3968_v11 = vld [vmem:[%s8231_s4 + $0x1e8] sm:$0xff] }
  0x2d   :  { %v3967_v12 = vld [vmem:[%s8231_s4 + $0x1e0] sm:$0xff]  ;;  %v3969_v14 = vld [vmem:[%s8231_s4 + $0x1f0] sm:$0xff]  ;;  %v3970_v15 = vld [vmem:[%s8231_s4 + $0x1f8] sm:$0xff] }
  0x2e   :  { %v3971_v13 = vld [vmem:[%s8231_s4 + $0x200] sm:$0xff]  ;;  %v3972_v16 = vld [vmem:[%s8231_s4 + $0x208] sm:$0xff]  ;;  %v3974_v17 = vld [vmem:[%s8231_s4 + $0x218] sm:$0xff] }
  0x2f   :  { %v3973_v18 = vld [vmem:[%s8231_s4 + $0x210] sm:$0xff]  ;;  %v4408_v19 = vld [vmem:[%s8231_s4 + $0x228] sm:$0xff]  ;;  %v4407_v20 = vld [vmem:[%s8231_s4 + $0x220] sm:$0xff] }
  0x30   :  { %894 = vperm.xlu1 %5015, %v856_v36   ;;  %889 = vperm.xlu0 %5014, %v855_v37   ;;  %v4410_v21 = vld [vmem:[%s8231_s4 + $0x238] sm:$0xff]  ;;  %v4409_v22 = vld [vmem:[%s8231_s4 + $0x230] sm:$0xff]  ;;  %v4535_v23 = vld [vmem:[%s8231_s4 + $0x240] sm:$0x1] }
  0x34   :  { %944 = vperm.xlu1 %5015, %v866_v38   ;;  %939 = vperm.xlu0 %5014, %v865_v39  }
  0x38   :  { %904 = vperm.xlu1 %5015, %v858_v40   ;;  %899 = vperm.xlu0 %5014, %v857_v41  }
  0x3c   :  { %1783 = vperm.xlu1 %5015, %v1773_v42   ;;  %1778 = vperm.xlu0 %5014, %v1772_v43  }
  0x40   :  { %1793 = vperm.xlu1 %5015, %v1775_v44   ;;  %1788 = vperm.xlu0 %5014, %v1774_v45  }
  0x44   :  { %2508 = vperm.xlu1 %5015, %v2198_v46   ;;  %2503 = vperm.xlu0 %5014, %v2197_v47  }
  0x48   :  { %2560 = vperm.xlu1 %5015, %v2202_v48   ;;  %2555 = vperm.xlu0 %5014, %v2201_v49  }
  0x4c   :  { %2518 = vperm.xlu1 %5015, %v2200_v50   ;;  %2513 = vperm.xlu0 %5014, %v2199_v51  }
  0x50   :  { %2570 = vperm.xlu1 %5015, %v2204_v52   ;;  %2565 = vperm.xlu0 %5014, %v2203_v53  }
  0x54   :  { %2685 = vperm.xlu1 %5015, %v2631_v54   ;;  %2680 = vperm.xlu0 %5014, %v2630_v55  }
  0x58   :  { %2645 = vperm.xlu1 %5015, %v2623_v56   ;;  %2640 = vperm.xlu0 %5014, %v2622_v57  }
  0x5c   :  { %2695 = vperm.xlu1 %5015, %v2633_v58   ;;  %2690 = vperm.xlu0 %5014, %v2632_v59  }
  0x60   :  { %2655 = vperm.xlu1 %5015, %v2625_v60   ;;  %2650 = vperm.xlu0 %5014, %v2624_v61  }
  0x64   :  { %2705 = vperm.xlu1 %5015, %v2635_v62   ;;  %2700 = vperm.xlu0 %5014, %v2634_v63  }
  0x68   :  { %2665 = vperm.xlu1 %5015, %v2627_v0   ;;  %2660 = vperm.xlu0 %5014, %v2626_v1  }
  0x6c   :  { %2715 = vperm.xlu1 %5015, %v2637_v2   ;;  %2710 = vperm.xlu0 %5014, %v2636_v3  }
  0x70   :  { %2675 = vperm.xlu1 %5015, %v2629_v4   ;;  %2670 = vperm.xlu0 %5014, %v2628_v5  }
  0x74   :  { %3554 = vperm.xlu1 %5015, %v3544_v6   ;;  %3549 = vperm.xlu0 %5014, %v3543_v8  }
  0x78   :  { %3564 = vperm.xlu1 %5015, %v3546_v9   ;;  %3559 = vperm.xlu0 %5014, %v3545_v10  }
  0x7c   :  { %4278 = vperm.xlu1 %5015, %v3968_v11   ;;  %4273 = vperm.xlu0 %5014, %v3967_v12  }
  0x80   :  { %4325 = vperm.xlu1 %5015, %v3971_v13   ;;  %4283 = vperm.xlu0 %5014, %v3969_v14  }
  0x83   :  { %v5411_v24 = vpop.permute.xlu0 %39  ;;  %v5425_v33 = vpop.permute.xlu1 %49 }
  0x84   :  { %4288 = vperm.xlu1 %5015, %v3970_v15   ;;  %4330 = vperm.xlu0 %5014, %v3972_v16  }
  0x87   :  { %v5427_v34 = vpop.permute.xlu0 %44  ;;  %v5477_v3 = vpop.permute.xlu1 %54 }
  0x88   :  { %4340 = vperm.xlu1 %5015, %v3974_v17   ;;  %4335 = vperm.xlu0 %5014, %v3973_v18  }
  0x8c   :  { %4418 = vperm.xlu1 %5015, %v4408_v19   ;;  %4413 = vperm.xlu0 %5014, %v4407_v20  }
  0x90   :  { %4428 = vperm.xlu1 %5015, %v4410_v21   ;;  %4423 = vperm.xlu0 %5014, %v4409_v22  }
  0x94   :  { %4538 = vperm.xlu0 %5014, %v4535_v23  }
  0xd9   :  { %v136_v25 = vpop.f32.mrb[0].mxu0  ;;  %v225_v26 = vpop.f32.mrb[0].mxu1 }
  0xda   :  { %v5414_v27 = vadd.f32 %v136_v25, %v5411_v24  ;;  %v5417_v28 = vadd.f32 %v225_v26, %v5411_v24  ;;  %v138_v29 = vpop.f32.mrb[1].mxu0  ;;  %v227_v30 = vpop.f32.mrb[1].mxu1 }
  0xdb   :  { %v5420_v31 = vadd.f32 %v138_v29, %v5411_v24  ;;  %v5423_v32 = vadd.f32 %v227_v30, %v5411_v24 }
  0xdc   :  { %8336 = vst [vmem:[#allocation5_spill] sm:$0xff] %v5414_v27  ;;  %8337 = vst [vmem:[#allocation6_spill] sm:$0xff] %v5417_v28  ;;  %v515_v37 = vmul.f32 %v5414_v27, %v5414_v27  ;;  %v517_v38 = vmul.f32 %v5417_v28, %v5417_v28 }
  0xdd   :  { %8338 = vst [vmem:[#allocation7_spill] sm:$0xff] %v5420_v31  ;;  %8339 = vst [vmem:[#allocation8_spill] sm:$0xff] %v5423_v32  ;;  %v142_v35 = vpop.f32.mrb[2].mxu0  ;;  %v231_v36 = vpop.f32.mrb[2].mxu1  ;;  %v516_v43 = vmul.f32 %v5420_v31, %v5420_v31  ;;  %v518_v44 = vmul.f32 %v5423_v32, %v5423_v32 }
  0xde   :  { %v5434_v39 = vadd.f32 %v142_v35, %v5427_v34  ;;  %v5437_v40 = vadd.f32 %v231_v36, %v5427_v34  ;;  %v144_v41 = vpop.f32.mrb[3].mxu0  ;;  %v233_v42 = vpop.f32.mrb[3].mxu1 }
  0xdf   :  { %v5444_v45 = vadd.f32 %v144_v41, %v5427_v34  ;;  %v5447_v46 = vadd.f32 %v233_v42, %v5427_v34 }
  0xe0   :  { %8340 = vst [vmem:[#allocation9_spill] sm:$0xff] %v5434_v39  ;;  %8341 = vst [vmem:[#allocation10_spill] sm:$0xff] %v5437_v40  ;;  %v434_v47 = vadd.f32 %v5434_v39, %v5414_v27  ;;  %v523_v48 = vmul.f32 %v5434_v39, %v5434_v39  ;;  %v452_v49 = vadd.f32 %v5437_v40, %v5417_v28 }
  0xe1   :  { %8342 = vst [vmem:[#allocation11_spill] sm:$0xff] %v5444_v45  ;;  %8343 = vst [vmem:[#allocation12_spill] sm:$0xff] %v5447_v46  ;;  %v525_v50 = vmul.f32 %v5437_v40, %v5437_v40  ;;  %v443_v51 = vadd.f32 %v5444_v45, %v5420_v31  ;;  %v524_v52 = vmul.f32 %v5444_v45, %v5444_v45  ;;  %v148_v55 = vpop.f32.mrb[4].mxu0  ;;  %v237_v56 = vpop.f32.mrb[4].mxu1 }
  0xe2   :  { %v461_v53 = vadd.f32 %v5447_v46, %v5423_v32  ;;  %v526_v54 = vmul.f32 %v5447_v46, %v5447_v46  ;;  %v547_v57 = vadd.f32 %v523_v48, %v515_v37  ;;  %v5466_v59 = vadd.f32 %v148_v55, %v5425_v33  ;;  %v150_v61 = vpop.f32.mrb[5].mxu0  ;;  %v239_v62 = vpop.f32.mrb[5].mxu1 }
  0xe3   :  { %v565_v58 = vadd.f32 %v525_v50, %v517_v38  ;;  %v5469_v60 = vadd.f32 %v237_v56, %v5425_v33  ;;  %v556_v63 = vadd.f32 %v524_v52, %v516_v43  ;;  %v5472_v1 = vadd.f32 %v150_v61, %v5425_v33 }
  0xe4   :  { %8344 = vst [vmem:[#allocation13_spill] sm:$0xff] %v5466_v59  ;;  %v574_v0 = vadd.f32 %v526_v54, %v518_v44  ;;  %v5475_v2 = vadd.f32 %v239_v62, %v5425_v33  ;;  %v435_v4 = vadd.f32 %v434_v47, %v5466_v59  ;;  %v531_v5 = vmul.f32 %v5466_v59, %v5466_v59 }
  0xe5   :  { %8345 = vst [vmem:[#allocation14_spill] sm:$0xff] %v5469_v60  ;;  %8346 = vst [vmem:[#allocation15_spill] sm:$0xff] %v5472_v1  ;;  %v453_v6 = vadd.f32 %v452_v49, %v5469_v60  ;;  %v533_v8 = vmul.f32 %v5469_v60, %v5469_v60  ;;  %v444_v9 = vadd.f32 %v443_v51, %v5472_v1  ;;  %v154_v13 = vpop.f32.mrb[6].mxu0  ;;  %v243_v14 = vpop.f32.mrb[6].mxu1 }
  0xe6   :  { %8347 = vst [vmem:[#allocation16_spill] sm:$0xff] %v5475_v2  ;;  %v532_v10 = vmul.f32 %v5472_v1, %v5472_v1  ;;  %v462_v11 = vadd.f32 %v461_v53, %v5475_v2  ;;  %v534_v12 = vmul.f32 %v5475_v2, %v5475_v2  ;;  %v548_v15 = vadd.f32 %v547_v57, %v531_v5  ;;  %v156_v19 = vpop.f32.mrb[7].mxu0  ;;  %v245_v20 = vpop.f32.mrb[7].mxu1 }
  0xe7   :  { %v566_v16 = vadd.f32 %v565_v58, %v533_v8  ;;  %v5492_v17 = vadd.f32 %v154_v13, %v5477_v3  ;;  %v5495_v18 = vadd.f32 %v243_v14, %v5477_v3  ;;  %v5498_v23 = vadd.f32 %v156_v19, %v5477_v3 }
  0xe8   :  { %v557_v21 = vadd.f32 %v556_v63, %v532_v10  ;;  %v575_v22 = vadd.f32 %v574_v0, %v534_v12  ;;  %v5501_v25 = vadd.f32 %v245_v20, %v5477_v3 }
  0xe9   :  { %8348 = vst [vmem:[#allocation17_spill] sm:$0xff] %v5492_v17  ;;  %8349 = vst [vmem:[#allocation18_spill] sm:$0xff] %v5495_v18  ;;  %v436_v26 = vadd.f32 %v435_v4, %v5492_v17  ;;  %v539_v29 = vmul.f32 %v5492_v17, %v5492_v17  ;;  %v454_v30 = vadd.f32 %v453_v6, %v5495_v18  ;;  %v5515_v42 = vpop.f32.mrb[8].mxu0  ;;  %v5517_v43 = vpop.f32.mrb[8].mxu1 }
  0xea   :  { %8350 = vst [vmem:[#allocation19_spill] sm:$0xff] %v5498_v23  ;;  %8351 = vst [vmem:[#allocation20_spill] sm:$0xff] %v5501_v25  ;;  %v541_v35 = vmul.f32 %v5495_v18, %v5495_v18  ;;  %v445_v36 = vadd.f32 %v444_v9, %v5498_v23  ;;  %v540_v37 = vmul.f32 %v5498_v23, %v5498_v23  ;;  %v5519_v50 = vpop.f32.mrb[9].mxu0  ;;  %v5521_v51 = vpop.f32.mrb[9].mxu1 }
  0xeb   :  { %v463_v38 = vadd.f32 %v462_v11, %v5501_v25  ;;  %v542_v41 = vmul.f32 %v5501_v25, %v5501_v25  ;;  %v437_v44 = vrot.slane %v436_v26, 4  ;;  %v549_v47 = vadd.f32 %v548_v15, %v539_v29 }
  0xec   :  { %v455_v48 = vrot.slane %v454_v30, 4  ;;  %v567_v49 = vadd.f32 %v566_v16, %v541_v35  ;;  %v446_v52 = vrot.slane %v445_v36, 4  ;;  %v558_v53 = vadd.f32 %v557_v21, %v540_v37 }
  0xed   :  { %v464_v54 = vrot.slane %v463_v38, 4  ;;  %v576_v55 = vadd.f32 %v575_v22, %v542_v41  ;;  %v438_v56 = vadd.f32 %v437_v44, %v436_v26  ;;  %v550_v57 = vrot.slane %v549_v47, 4  ;;  %v5523_v5 = vpop.f32.mrb[10].mxu0  ;;  %v5525_v6 = vpop.f32.mrb[10].mxu1 }
  0xee   :  { %v456_v58 = vadd.f32 %v455_v48, %v454_v30  ;;  %v568_v61 = vrot.slane %v567_v49, 4  ;;  %v447_v62 = vadd.f32 %v446_v52, %v445_v36  ;;  %v559_v63 = vrot.slane %v558_v53, 4  ;;  %v5527_v12 = vpop.f32.mrb[11].mxu0  ;;  %v5529_v13 = vpop.f32.mrb[11].mxu1 }
  0xef   :  { %v465_v0 = vadd.f32 %v464_v54, %v463_v38  ;;  %v577_v4 = vrot.slane %v576_v55, 4  ;;  %v439_v8 = vrot.slane %v438_v56, 2  ;;  %v551_v9 = vadd.f32 %v550_v57, %v549_v47 }
  0xf0   :  { %v457_v10 = vrot.slane %v456_v58, 2  ;;  %v569_v11 = vadd.f32 %v568_v61, %v567_v49  ;;  %v448_v14 = vrot.slane %v447_v62, 2  ;;  %v560_v15 = vadd.f32 %v559_v63, %v558_v53 }
  0xf1   :  { %v466_v16 = vrot.slane %v465_v0, 2  ;;  %v578_v19 = vadd.f32 %v577_v4, %v576_v55  ;;  %v440_v20 = vadd.f32 %v439_v8, %v438_v56  ;;  %v552_v21 = vrot.slane %v551_v9, 2  ;;  %v5531_v37 = vpop.f32.mrb[12].mxu0  ;;  %v5533_v38 = vpop.f32.mrb[12].mxu1 }
  0xf2   :  { %v458_v22 = vadd.f32 %v457_v10, %v456_v58  ;;  %v570_v26 = vrot.slane %v569_v11, 2  ;;  %v449_v29 = vadd.f32 %v448_v14, %v447_v62  ;;  %v561_v30 = vrot.slane %v560_v15, 2  ;;  %v5535_v49 = vpop.f32.mrb[13].mxu0  ;;  %v5537_v52 = vpop.f32.mrb[13].mxu1 }
  0xf3   :  { %v467_v35 = vadd.f32 %v466_v16, %v465_v0  ;;  %v579_v36 = vrot.slane %v578_v19, 2  ;;  %v441_v41 = vrot.slane %v440_v20, 1  ;;  %v553_v44 = vadd.f32 %v552_v21, %v551_v9 }
  0xf4   :  { %v459_v47 = vrot.slane %v458_v22, 1  ;;  %v571_v48 = vadd.f32 %v570_v26, %v569_v11  ;;  %v450_v53 = vrot.slane %v449_v29, 1  ;;  %v562_v54 = vadd.f32 %v561_v30, %v560_v15 }
  0xf5   :  { %v468_v55 = vrot.slane %v467_v35, 1  ;;  %v580_v56 = vadd.f32 %v579_v36, %v578_v19  ;;  %v442_v57 = vadd.f32 %v441_v41, %v440_v20  ;;  %v554_v58 = vrot.slane %v553_v44, 1  ;;  %v5539_v10 = vpop.f32.mrb[14].mxu0  ;;  %v5541_v9 = vpop.f32.mrb[14].mxu1 }
  0xf6   :  { %v460_v61 = vadd.f32 %v459_v47, %v458_v22  ;;  %v572_v62 = vrot.slane %v571_v48, 1  ;;  %v451_v63 = vadd.f32 %v450_v53, %v449_v29  ;;  %v563_v0 = vrot.slane %v562_v54, 1  ;;  %v5547_v21 = vpop.f32.mrb[15].mxu0  ;;  %v5549_v19 = vpop.f32.mrb[15].mxu1 }
  0xf7   :  { %v469_v4 = vadd.f32 %v468_v55, %v467_v35  ;;  %v581_v8 = vrot.slane %v580_v56, 1  ;;  %v5543_v11 = vmul.f32 0.03125, %v442_v57  ;;  %v555_v14 = vadd.f32 %v554_v58, %v553_v44 }
  0xf8   :  { %v5545_v16 = vmul.f32 0.03125, %v460_v61  ;;  %v573_v15 = vadd.f32 %v572_v62, %v571_v48  ;;  %v5551_v20 = vmul.f32 0.03125, %v451_v63  ;;  %v564_v22 = vadd.f32 %v563_v0, %v562_v54 }
  0xf9   :  { %v5553_v26 = vmul.f32 0.03125, %v469_v4  ;;  %v582_v29 = vadd.f32 %v581_v8, %v580_v56  ;;  %v619_v30 = vmul.f32 0.03125, %v555_v14  ;;  %v627_v35 = vmul.f32 %v5543_v11, %v5543_v11 }
  0xfa   :  { %v675_v36 = vsub.f32 %v5492_v17, %v5543_v11  ;;  %v621_v41 = vmul.f32 0.03125, %v573_v15  ;;  %v629_v44 = vmul.f32 %v5545_v16, %v5545_v16  ;;  %v677_v47 = vsub.f32 %v5495_v18, %v5545_v16 }
  0xfb   :  { %v620_v48 = vmul.f32 0.03125, %v564_v22  ;;  %v628_v53 = vmul.f32 %v5551_v20, %v5551_v20  ;;  %v635_v54 = vsub.f32 %v619_v30, %v627_v35  ;;  %v622_v56 = vmul.f32 0.03125, %v582_v29 }
  0xfc   :  { %v630_v57 = vmul.f32 %v5553_v26, %v5553_v26  ;;  %v637_v58 = vsub.f32 %v621_v41, %v629_v44  ;;  %v5573_v63 = vadd.f32 %v5515_v42, %v5411_v24  ;;  %v5577_v8 = vadd.f32 %v5517_v43, %v5411_v24 }
  0xfd   :  { %v636_v61 = vsub.f32 %v620_v48, %v628_v53  ;;  %v643_v0 = vmax.f32 %v635_v54, 0.0  ;;  %v5581_v14 = vadd.f32 %v5519_v50, %v5411_v24  ;;  %v5587_v30 = vadd.f32 %v5521_v51, %v5411_v24 }
  0xfe   :  { %8352 = vst [vmem:[#allocation21_spill] sm:$0xff] %v5573_v63  ;;  %v638_v4 = vsub.f32 %v622_v56, %v630_v57  ;;  %8353 = vst [vmem:[#allocation22_spill] sm:$0xff] %v5577_v8  ;;  %v645_v15 = vmax.f32 %v637_v58, 0.0  ;;  %v519_v29 = vmul.f32 %v5573_v63, %v5573_v63  ;;  %v521_v41 = vmul.f32 %v5577_v8, %v5577_v8 }
  0xff   :  { %8354 = vst [vmem:[#allocation23_spill] sm:$0xff] %v5581_v14  ;;  %v644_v22 = vmax.f32 %v636_v61, 0.0  ;;  %8355 = vst [vmem:[#allocation24_spill] sm:$0xff] %v5587_v30  ;;  %v683_v42 = vadd.f32 1e-05, %v643_v0  ;;  %v520_v43 = vmul.f32 %v5581_v14, %v5581_v14  ;;  %v522_v48 = vmul.f32 %v5587_v30, %v5587_v30 }
 0x100   :  { %v646_v35 = vmax.f32 %v638_v4, 0.0  ;;  %v685_v44 = vadd.f32 1e-05, %v645_v15  ;;  %v5597_v53 = vadd.f32 %v5523_v5, %v5427_v34  ;;  %v5601_v51 = vadd.f32 %v5525_v6, %v5427_v34 }
 0x101   :  { %v684_v50 = vadd.f32 1e-05, %v644_v22  ;;  %5016 = vrsqrt.f32 %v683_v42  ;;  %v5605_v54 = vadd.f32 %v5527_v12, %v5427_v34  ;;  %v5613_v5 = vadd.f32 %v5529_v13, %v5427_v34 }
 0x102   :  { %8356 = vst [vmem:[#allocation25_spill] sm:$0xff] %v5597_v53  ;;  %v686_v24 = vadd.f32 1e-05, %v646_v35  ;;  %8357 = vst [vmem:[#allocation26_spill] sm:$0xff] %v5601_v51  ;;  %5018 = vrsqrt.f32 %v685_v44  ;;  %v470_v56 = vadd.f32 %v5597_v53, %v5573_v63  ;;  %v527_v57 = vmul.f32 %v5597_v53, %v5597_v53 }
 0x103   :  { %8358 = vst [vmem:[#allocation27_spill] sm:$0xff] %v5605_v54  ;;  %8359 = vst [vmem:[#allocation28_spill] sm:$0xff] %v5613_v5  ;;  %5020 = vrsqrt.f32 %v684_v50  ;;  %v488_v6 = vadd.f32 %v5601_v51, %v5577_v8  ;;  %v529_v58 = vmul.f32 %v5601_v51, %v5601_v51  ;;  %v479_v12 = vadd.f32 %v5605_v54, %v5581_v14 }
 0x104   :  { %5022 = vrsqrt.f32 %v686_v24  ;;  %v583_v61 = vadd.f32 %v527_v57, %v519_v29  ;;  %v528_v0 = vmul.f32 %v5605_v54, %v5605_v54  ;;  %v497_v4 = vadd.f32 %v5613_v5, %v5587_v30 }
 0x105   :  { %v601_v34 = vadd.f32 %v529_v58, %v521_v41  ;;  %v530_v13 = vmul.f32 %v5613_v5, %v5613_v5  ;;  %v5629_v15 = vadd.f32 %v5531_v37, %v5425_v33  ;;  %v5633_v22 = vadd.f32 %v5533_v38, %v5425_v33 }
 0x106   :  { %v592_v42 = vadd.f32 %v528_v0, %v520_v43  ;;  %v5637_v29 = vadd.f32 %v5535_v49, %v5425_v33  ;;  %v5641_v35 = vadd.f32 %v5537_v52, %v5425_v33  ;;  %v5645_v41 = vadd.f32 %v5539_v10, %v5477_v3 }
 0x107   :  { %8360 = vst [vmem:[#allocation29_spill] sm:$0xff] %v5629_v15  ;;  %8361 = vst [vmem:[#allocation30_spill] sm:$0xff] %v5633_v22  ;;  %v610_v44 = vadd.f32 %v530_v13, %v522_v48  ;;  %v471_v37 = vadd.f32 %v470_v56, %v5629_v15  ;;  %v535_v38 = vmul.f32 %v5629_v15, %v5629_v15 }
 0x108   :  { %8362 = vst [vmem:[#allocation31_spill] sm:$0xff] %v5637_v29  ;;  %8363 = vst [vmem:[#allocation32_spill] sm:$0xff] %v5641_v35  ;;  %v489_v43 = vadd.f32 %v488_v6, %v5633_v22  ;;  %v537_v49 = vmul.f32 %v5633_v22, %v5633_v22  ;;  %v480_v50 = vadd.f32 %v479_v12, %v5637_v29 }
 0x109   :  { %8364 = vst [vmem:[#allocation33_spill] sm:$0xff] %v5645_v41  ;;  %v536_v33 = vmul.f32 %v5637_v29, %v5637_v29  ;;  %v498_v52 = vadd.f32 %v497_v4, %v5641_v35  ;;  %v584_v10 = vadd.f32 %v583_v61, %v535_v38  ;;  %v538_v48 = vmul.f32 %v5641_v35, %v5641_v35 }
 0x10a   :  { %v472_v24 = vadd.f32 %v471_v37, %v5645_v41  ;;  %v543_v56 = vmul.f32 %v5645_v41, %v5645_v41  ;;  %v602_v57 = vadd.f32 %v601_v34, %v537_v49  ;;  %v5664_v58 = vadd.f32 %v5541_v9, %v5477_v3 }
 0x10b   :  { %v593_v6 = vadd.f32 %v592_v42, %v536_v33  ;;  %v5668_v12 = vadd.f32 %v5547_v21, %v5477_v3  ;;  %v5670_v0 = vpop.eup %5016  ;;  %v611_v61 = vadd.f32 %v610_v44, %v538_v48  ;;  %v5674_v37 = vadd.f32 %v5549_v19, %v5477_v3 }
 0x10c   :  { %8365 = vst [vmem:[#allocation34_spill] sm:$0xff] %v5664_v58  ;;  %v473_v4 = vrot.slane %v472_v24, 4  ;;  %v585_v13 = vadd.f32 %v584_v10, %v543_v56  ;;  %v5676_v38 = vpop.eup %5018  ;;  %v5682_v9 = vmul.f32 %v5670_v0, %v675_v36  ;;  %v490_v21 = vadd.f32 %v489_v43, %v5664_v58 }
 0x10d   :  { %8366 = vst [vmem:[#allocation35_spill] sm:$0xff] %v5668_v12  ;;  %8367 = vst [vmem:[#allocation36_spill] sm:$0xff] %v5674_v37  ;;  %v545_v34 = vmul.f32 %v5664_v58, %v5664_v58  ;;  %v481_v42 = vadd.f32 %v480_v50, %v5668_v12  ;;  %v5688_v44 = vpop.eup %5020  ;;  %v5694_v3 = vmul.f32 %v5676_v38, %v677_v47 }
 0x10e   :  { %v474_v19 = vadd.f32 %v473_v4, %v472_v24  ;;  %v586_v49 = vrot.slane %v585_v13, 4  ;;  %v544_v36 = vmul.f32 %v5668_v12, %v5668_v12  ;;  %v5698_v33 = vpop.eup %5022  ;;  %v491_v43 = vrot.slane %v490_v21, 4 }
 0x10f   :  { %v603_v10 = vadd.f32 %v602_v57, %v545_v34  ;;  %v482_v48 = vrot.slane %v481_v42, 4  ;;  %v499_v50 = vadd.f32 %v498_v52, %v5674_v37  ;;  %v546_v55 = vmul.f32 %v5674_v37, %v5674_v37 }
 0x110   :  { %v475_v56 = vrot.slane %v474_v19, 2  ;;  %v587_v7 = vadd.f32 %v586_v49, %v585_v13  ;;  %v594_v62 = vadd.f32 %v593_v6, %v544_v36  ;;  %v492_v47 = vadd.f32 %v491_v43, %v490_v21 }
 0x111   :  { %v604_v18 = vrot.slane %v603_v10, 4  ;;  %v483_v24 = vadd.f32 %v482_v48, %v481_v42  ;;  %v500_v4 = vrot.slane %v499_v50, 4  ;;  %v612_v35 = vadd.f32 %v611_v61, %v546_v55 }
 0x112   :  { %v476_v17 = vadd.f32 %v475_v56, %v474_v19  ;;  %v588_v22 = vrot.slane %v587_v7, 2  ;;  %v595_v15 = vrot.slane %v594_v62, 4  ;;  %v493_v29 = vrot.slane %v492_v47, 2 }
 0x113   :  { %v605_v51 = vadd.f32 %v604_v18, %v603_v10  ;;  %v484_v57 = vrot.slane %v483_v24, 2  ;;  %v501_v34 = vadd.f32 %v500_v4, %v499_v50  ;;  %v613_v13 = vrot.slane %v612_v35, 4  ;;  %v5715_v4 = vpop.permute.xlu0 %733 }
 0x114   :  { %v477_v8 = vrot.slane %v476_v17, 1  ;;  %v589_v52 = vadd.f32 %v588_v22, %v587_v7  ;;  %v596_v53 = vadd.f32 %v595_v15, %v594_v62  ;;  %v494_v6 = vadd.f32 %v493_v29, %v492_v47 }
 0x115   :  { %v606_v49 = vrot.slane %v605_v51, 2  ;;  %v485_v36 = vadd.f32 %v484_v57, %v483_v24  ;;  %v502_v63 = vrot.slane %v501_v34, 2  ;;  %v614_v48 = vadd.f32 %v613_v13, %v612_v35 }
 0x116   :  { %v478_v21 = vadd.f32 %v477_v8, %v476_v17  ;;  %v590_v43 = vrot.slane %v589_v52, 1  ;;  %v597_v42 = vrot.slane %v596_v53, 2  ;;  %v495_v19 = vrot.slane %v494_v6, 1 }
 0x117   :  { %v607_v56 = vadd.f32 %v606_v49, %v605_v51  ;;  %v486_v5 = vrot.slane %v485_v36, 1  ;;  %v503_v55 = vadd.f32 %v502_v63, %v501_v34  ;;  %v615_v50 = vrot.slane %v614_v48, 2  ;;  %v5709_v51 = vpop.permute.xlu1 %738 }
 0x118   :  { %v5703_v61 = vmul.f32 0.03125, %v478_v21  ;;  %v591_v18 = vadd.f32 %v590_v43, %v589_v52  ;;  %v598_v10 = vadd.f32 %v597_v42, %v596_v53  ;;  %v496_v7 = vadd.f32 %v495_v19, %v494_v6 }
 0x119   :  { %v608_v62 = vrot.slane %v607_v56, 1  ;;  %v487_v15 = vadd.f32 %v486_v5, %v485_v36  ;;  %v504_v22 = vrot.slane %v503_v55, 1  ;;  %v616_v34 = vadd.f32 %v615_v50, %v614_v48 }
 0x11a   :  { %v623_v29 = vmul.f32 0.03125, %v591_v18  ;;  %v631_v17 = vmul.f32 %v5703_v61, %v5703_v61  ;;  %v679_v8 = vsub.f32 %v5645_v41, %v5703_v61  ;;  %v599_v35 = vrot.slane %v598_v10, 1 }
 0x11b   :  { %v5711_v63 = vmul.f32 0.03125, %v496_v7  ;;  %v609_v47 = vadd.f32 %v608_v62, %v607_v56  ;;  %v5713_v24 = vmul.f32 0.03125, %v487_v15  ;;  %v505_v53 = vadd.f32 %v504_v22, %v503_v55  ;;  %v5736_v15 = vpop.permute.xlu1 %790 }
 0x11c   :  { %v639_v5 = vsub.f32 %v623_v29, %v631_v17  ;;  %v600_v57 = vadd.f32 %v599_v35, %v598_v10  ;;  %v652_v52 = vsub.f32 %v5420_v31, %v5551_v20  ;;  %v617_v56 = vrot.slane %v616_v34, 1 }
 0x11d   :  { %v625_v13 = vmul.f32 0.03125, %v609_v47  ;;  %v633_v6 = vmul.f32 %v5711_v63, %v5711_v63  ;;  %v681_v49 = vsub.f32 %v5664_v58, %v5711_v63  ;;  %v632_v36 = vmul.f32 %v5713_v24, %v5713_v24  ;;  %v5740_v47 = vpop.permute.xlu0 %785 }
 0x11e   :  { %v647_v21 = vmax.f32 %v639_v5, 0.0  ;;  %v624_v43 = vmul.f32 0.03125, %v600_v57  ;;  %v5727_v19 = vmul.f32 0.03125, %v505_v53  ;;  %v660_v55 = vsub.f32 %v5444_v45, %v5551_v20 }
 0x11f   :  { %v641_v48 = vsub.f32 %v625_v13, %v633_v6  ;;  %v700_v18 = vmul.f32 %v5688_v44, %v652_v52  ;;  %v618_v29 = vadd.f32 %v617_v56, %v616_v34  ;;  %v654_v5 = vsub.f32 %v5423_v32, %v5553_v26 }
 0x120   :  { %v687_v10 = vadd.f32 1e-05, %v647_v21  ;;  %v640_v50 = vsub.f32 %v624_v43, %v632_v36  ;;  %v634_v7 = vmul.f32 %v5727_v19, %v5727_v19  ;;  %v708_v17 = vmul.f32 %v5688_v44, %v660_v55 }
 0x121   :  { %v649_v22 = vmax.f32 %v641_v48, 0.0  ;;  %v752_v35 = vmul.f32 %v5715_v4, %v700_v18  ;;  %v662_v57 = vsub.f32 %v5447_v46, %v5553_v26  ;;  %v626_v13 = vmul.f32 0.03125, %v618_v29  ;;  %v5758_v29 = vpop.permute.xlu1 %748 }
 0x122   :  { %5024 = vrsqrt.f32 %v687_v10  ;;  %v648_v53 = vmax.f32 %v640_v50, 0.0  ;;  %v760_v6 = vmul.f32 %v5709_v51, %v708_v17  ;;  %v702_v21 = vmul.f32 %v5698_v33, %v654_v5  ;;  %v5763_v5 = vpop.permute.xlu0 %743 }
 0x123   :  { %v689_v52 = vadd.f32 1e-05, %v649_v22  ;;  %v804_v34 = vadd.f32 %v5740_v47, %v752_v35  ;;  %v710_v43 = vmul.f32 %v5698_v33, %v662_v57  ;;  %v651_v48 = vsub.f32 %v5414_v27, %v5543_v11 }
 0x124   :  { %v688_v36 = vadd.f32 1e-05, %v648_v53  ;;  %v642_v56 = vsub.f32 %v626_v13, %v634_v7  ;;  %v812_v55 = vadd.f32 %v5736_v15, %v760_v6  ;;  %v659_v18 = vsub.f32 %v5434_v39, %v5543_v11 }
 0x125   :  { %5026 = vrsqrt.f32 %v689_v52  ;;  %v754_v10 = vmul.f32 %v5715_v4, %v702_v21  ;;  %v762_v50 = vmul.f32 %v5709_v51, %v710_v43  ;;  %v699_v22 = vmul.f32 %v5670_v0, %v651_v48 }
 0x126   :  { %5028 = vrsqrt.f32 %v688_v36  ;;  %v650_v17 = vmax.f32 %v642_v56, 0.0  ;;  %v4818_v35 = vpack.c.bf16 %v812_v55, %v804_v34  ;;  %v707_v53 = vmul.f32 %v5670_v0, %v659_v18 }
 0x127   :  { %v653_v7 = vsub.f32 %v5417_v28, %v5545_v16  ;;  %v806_v57 = vadd.f32 %v5740_v47, %v754_v10  ;;  %v814_v52 = vadd.f32 %v5736_v15, %v762_v50  ;;  %v751_v13 = vmul.f32 %v5715_v4, %v699_v22 }
 0x128   :  { %v661_v6 = vsub.f32 %v5437_v40, %v5545_v16  ;;  %v690_v36 = vadd.f32 1e-05, %v650_v17  ;;  %4819 = vmatprep.subr.bf16.mxu0 %v4818_v35  ;;  %v759_v34 = vmul.f32 %v5709_v51, %v707_v53  ;;  %v668_v43 = vsub.f32 %v5472_v1, %v5551_v20 }
 0x129   :  { %v701_v21 = vmul.f32 %v5676_v38, %v653_v7  ;;  %v4826_v48 = vpack.c.bf16 %v814_v52, %v806_v57  ;;  %v803_v56 = vadd.f32 %v5740_v47, %v751_v13  ;;  %v8368_v18 = vsub.f32 %v5498_v23, %v5551_v20  ;;  %v5793_v13 = vpop.permute.xlu1 %800 }
 0x12a   :  { %v709_v55 = vmul.f32 %v5676_v38, %v661_v6  ;;  %5030 = vrsqrt.f32 %v690_v36  ;;  %v811_v50 = vadd.f32 %v5736_v15, %v759_v34  ;;  %v716_v17 = vmul.f32 %v5688_v44, %v668_v43 }
 0x12b   :  { %v724_v10 = vmul.f32 %v5688_v44, %v8368_v18  ;;  %v753_v22 = vmul.f32 %v5715_v4, %v701_v21  ;;  %4827 = vmatprep.subr.bf16.mxu1 %v4826_v48  ;;  %v670_v57 = vsub.f32 %v5475_v2, %v5553_v26  ;;  %v8369_v20 = vsub.f32 %v5501_v25, %v5553_v26  ;;  %v5803_v21 = vpop.permute.xlu0 %795 }
 0x12c   :  { %v5783_v35 = vpop.eup %5024  ;;  %v761_v53 = vmul.f32 %v5709_v51, %v709_v55  ;;  %v4820_v6 = vpack.c.bf16 %v811_v50, %v803_v56  ;;  %v768_v34 = vmul.f32 %v5763_v5, %v716_v17  ;;  %v667_v56 = vsub.f32 %v5466_v59, %v5543_v11 }
 0x12d   :  { %v776_v7 = vmul.f32 %v5758_v29, %v724_v10  ;;  %v726_v52 = vmul.f32 %v5698_v33, %v8369_v20  ;;  %v5799_v44 = vmul.f32 %v5783_v35, %v679_v8  ;;  %v805_v36 = vadd.f32 %v5740_v47, %v753_v22 }
 0x12e   :  { %v813_v43 = vadd.f32 %v5736_v15, %v761_v53  ;;  %v718_v48 = vmul.f32 %v5698_v33, %v670_v57  ;;  %4821 = vmatpush1.bf16.msra.mxu0 %v4820_v6  ;;  %v820_v8 = vadd.f32 %v5803_v21, %v768_v34  ;;  %v775_v10 = vmul.f32 %v5758_v29, %v5682_v9  ;;  %v8370_v34 = vld [vmem:[#allocation28_spill] sm:$0xff] }
 0x12f   :  { %v828_v26 = vadd.f32 %v5793_v13, %v776_v7  ;;  %v778_v55 = vmul.f32 %v5758_v29, %v726_v52  ;;  %v5809_v18 = vpop.eup %5026  ;;  %v669_v50 = vsub.f32 %v5469_v60, %v5545_v16  ;;  %v715_v57 = vmul.f32 %v5670_v0, %v667_v56 }
 0x130   :  { %v5818_v22 = vpop.eup %5028  ;;  %v5824_v33 = vmul.f32 %v5809_v18, %v681_v49  ;;  %v4828_v17 = vpack.c.bf16 %v813_v43, %v805_v36  ;;  %v770_v53 = vmul.f32 %v5763_v5, %v718_v48  ;;  %v827_v9 = vadd.f32 %v5793_v13, %v775_v10 }
 0x131   :  { %v830_v7 = vadd.f32 %v5793_v13, %v778_v55  ;;  %v4822_v11 = vpack.c.bf16 %v828_v26, %v820_v8  ;;  %v717_v16 = vmul.f32 %v5676_v38, %v669_v50  ;;  %v777_v52 = vmul.f32 %v5758_v29, %v5694_v3  ;;  %v8371_v50 = vld [vmem:[#allocation21_spill] sm:$0xff] }
 0x132   :  { %4829 = vmatpush1.bf16.msra.mxu1 %v4828_v17  ;;  %v822_v20 = vadd.f32 %v5803_v21, %v770_v53  ;;  %v656_v49 = vsub.f32 %v5581_v14, %v5713_v24  ;;  %v664_v6 = vsub.f32 %v5605_v54, %v5713_v24  ;;  %v767_v36 = vmul.f32 %v5763_v5, %v715_v57  ;;  %v8372_v53 = vld [vmem:[#allocation25_spill] sm:$0xff] }
 0x133   :  { %4823 = vmatprep.subr.bf16.mxu0 %v4822_v11  ;;  %v769_v0 = vmul.f32 %v5763_v5, %v717_v16  ;;  %v658_v38 = vsub.f32 %v5587_v30, %v5727_v19  ;;  %v666_v43 = vsub.f32 %v8370_v34, %v5727_v19  ;;  %v829_v3 = vadd.f32 %v5793_v13, %v777_v52 }
 0x134   :  { %v4830_v26 = vpack.c.bf16 %v830_v7, %v822_v20  ;;  %v704_v48 = vmul.f32 %v5818_v22, %v656_v49  ;;  %v712_v55 = vmul.f32 %v5818_v22, %v664_v6  ;;  %v5031_v8 = vpop.eup %5030  ;;  %v819_v56 = vadd.f32 %v5803_v21, %v767_v36 }
 0x135   :  { %v821_v10 = vadd.f32 %v5803_v21, %v769_v0  ;;  %v655_v17 = vsub.f32 %v8371_v50, %v5703_v61  ;;  %v663_v11 = vsub.f32 %v8372_v53, %v5703_v61  ;;  %v706_v16 = vmul.f32 %v5031_v8, %v658_v38  ;;  %v5864_v38 = vld [vmem:[%s8229_s2] sm:$0xff] }
 0x136   :  { %4831 = vmatprep.subr.bf16.mxu1 %v4830_v26  ;;  %v756_v7 = vmul.f32 %v5715_v4, %v704_v48  ;;  %v764_v57 = vmul.f32 %v5709_v51, %v712_v55  ;;  %v714_v20 = vmul.f32 %v5031_v8, %v666_v43  ;;  %v4824_v52 = vpack.c.bf16 %v827_v9, %v819_v56 }
 0x137   :  { %v4832_v49 = vpack.c.bf16 %v829_v3, %v821_v10  ;;  %v703_v6 = vmul.f32 %v5783_v35, %v655_v17  ;;  %v711_v36 = vmul.f32 %v5783_v35, %v663_v11  ;;  %v758_v42 = vmul.f32 %v5715_v4, %v706_v16  ;;  %v8373_v3 = vld [vmem:[#allocation22_spill] sm:$0xff] }
 0x138   :  { %v808_v0 = vadd.f32 %v5740_v47, %v756_v7  ;;  %v816_v62 = vadd.f32 %v5736_v15, %v764_v57  ;;  %v766_v26 = vmul.f32 %v5709_v51, %v714_v20  ;;  %4825 = vmatpush1.bf16.msra.mxu0 %v4824_v52  ;;  %v657_v48 = vsub.f32 %v8373_v3, %v5711_v63  ;;  %v8374_v17 = vld [vmem:[#allocation26_spill] sm:$0xff]  ;;  %v8375_v20 = vld [vmem:[#allocation31_spill] sm:$0xff] }
 0x139   :  { %4833 = vmatpush1.bf16.msra.mxu1 %v4832_v49  ;;  %v755_v9 = vmul.f32 %v5715_v4, %v703_v6  ;;  %v763_v43 = vmul.f32 %v5709_v51, %v711_v36  ;;  %v810_v56 = vadd.f32 %v5740_v47, %v758_v42  ;;  %v665_v11 = vsub.f32 %v8374_v17, %v5711_v63 }
 0x13a   :  { %v4834_v55 = vpack.c.bf16 %v816_v62, %v808_v0  ;;  %v818_v10 = vadd.f32 %v5736_v15, %v766_v26  ;;  %v705_v16 = vmul.f32 %v5809_v18, %v657_v48  ;;  %v672_v52 = vsub.f32 %v8375_v20, %v5713_v24  ;;  %v5893_v0 = vld [vmem:[%s8229_s2 + $0x8] sm:$0xff] }
 0x13b   :  { %v807_v7 = vadd.f32 %v5740_v47, %v755_v9  ;;  %v815_v57 = vadd.f32 %v5736_v15, %v763_v43  ;;  %4638 = vmatmul.mubr.msk.f32.vlgmr.msra.gmra.mrb[16].mxu0 %vm947_vm1, %v5864_v38  ;;  %v713_v62 = vmul.f32 %v5809_v18, %v665_v11  ;;  %v8376_v49 = vsub.f32 %v5668_v12, %v5713_v24 }
 0x13c   :  { %4654 = vmatmul.mubr.msk.f32.vlgmr.msra.gmra.mrb[16].mxu1 %vm947_vm1, %v5864_v38  ;;  %v4842_v42 = vpack.c.bf16 %v818_v10, %v810_v56  ;;  %v8377_v36 = vmov 0.0   ;;  %v757_v9 = vmul.f32 %v5715_v4, %v705_v16  ;;  %v720_v43 = vmul.f32 %v5818_v22, %v672_v52  ;;  %4835 = vmatprep.subr.bf16.mxu0 %v4834_v55  ;;  %v8378_v56 = vld [vmem:[#allocation32_spill] sm:$0xff] }
 0x13d   :  { %v728_v6 = vmul.f32 %v5818_v22, %v8376_v49  ;;  %1066 = vmatprep.mubr.f32.mxu0 %v8377_v36  ;;  %1227 = vmatprep.mubr.f32.mxu1 %v8377_v36  ;;  %v4836_v26 = vpack.c.bf16 %v815_v57, %v807_v7  ;;  %v765_v24 = vmul.f32 %v5709_v51, %v713_v62  ;;  %v8380_v22 = vld [vmem:[#allocation29_spill] sm:$0xff]  ;;  %v8381_v62 = vld [vmem:[#allocation30_spill] sm:$0xff] }
 0x13e   :  { %4843 = vmatprep.subr.bf16.mxu1 %v4842_v42  ;;  %v674_v10 = vsub.f32 %v8378_v56, %v5727_v19  ;;  %v809_v11 = vadd.f32 %v5740_v47, %v757_v9  ;;  %v772_v49 = vmul.f32 %v5763_v5, %v720_v43  ;;  %v8379_v7 = vsub.f32 %v5674_v37, %v5727_v19  ;;  %v5919_v19 = vld [vmem:[%s8229_s2 + $0x10] sm:$0xff] }
 0x13f   :  { %v780_v48 = vmul.f32 %v5758_v29, %v728_v6  ;;  %4837 = vmatpush1.bf16.msra.mxu0 %v4836_v26  ;;  %v671_v55 = vsub.f32 %v8380_v22, %v5703_v61  ;;  %v817_v51 = vadd.f32 %v5736_v15, %v765_v24  ;;  %v673_v6 = vsub.f32 %v8381_v62, %v5711_v63 }
 0x140   :  { %v730_v4 = vmul.f32 %v5031_v8, %v8379_v7  ;;  %4639 = vmatmul.mubr.msk.f32.gmra.mrb[18].mxu0 %vm947_vm1, %v5893_v0  ;;  %4655 = vmatmul.mubr.msk.f32.gmra.mrb[18].mxu1 %vm947_vm1, %v5893_v0  ;;  %v722_v47 = vmul.f32 %v5031_v8, %v674_v10  ;;  %v824_v61 = vadd.f32 %v5803_v21, %v772_v49  ;;  %v5958_v7 = vld [vmem:[%s8229_s2 + $0x20] sm:$0xff] }
 0x141   :  { %v832_v57 = vadd.f32 %v5793_v13, %v780_v48  ;;  %1072 = vmatprep.mubr.f32.mxu0 %v8377_v36  ;;  %1233 = vmatprep.mubr.f32.mxu1 %v8377_v36  ;;  %v719_v52 = vmul.f32 %v5783_v35, %v671_v55  ;;  %v4844_v42 = vpack.c.bf16 %v817_v51, %v809_v11  ;;  %v5943_v48 = vld [vmem:[%s8229_s2 + $0x18] sm:$0xff]  ;;  %v6003_v55 = vld [vmem:[%s8229_s2 + $0x40] sm:$0xff]  ;;  %v6014_v51 = vld [vmem:[%s8229_s2 + $0x48] sm:$0xff] }
 0x142   :  { %v782_v16 = vmul.f32 %v5758_v29, %v730_v4  ;;  %v774_v15 = vmul.f32 %v5763_v5, %v722_v47  ;;  %v779_v8 = vmul.f32 %v5758_v29, %v5799_v44  ;;  %v781_v24 = vmul.f32 %v5758_v29, %v5824_v33  ;;  %v6036_v47 = vld [vmem:[%s8229_s2 + $0x58] sm:$0xff] }
 0x143   :  { %v4838_v26 = vpack.c.bf16 %v832_v57, %v824_v61  ;;  %v771_v43 = vmul.f32 %v5763_v5, %v719_v52  ;;  %v721_v63 = vmul.f32 %v5809_v18, %v673_v6  ;;  %4845 = vmatpush1.bf16.msra.mxu1 %v4844_v42  ;;  %v6025_v57 = vld [vmem:[%s8229_s2 + $0x50] sm:$0xff]  ;;  %v6047_v61 = vld [vmem:[%s8229_s2 + $0x60] sm:$0xff]  ;;  %v6080_v42 = vld [vmem:[%s8229_s2 + $0x78] sm:$0xff] }
 0x144   :  { %v834_v9 = vadd.f32 %v5793_v13, %v782_v16  ;;  %4640 = vmatmul.mubr.msk.f32.gmra.mrb[20].mxu0 %vm947_vm1, %v5919_v19  ;;  %4656 = vmatmul.mubr.msk.f32.gmra.mrb[20].mxu1 %vm947_vm1, %v5919_v19  ;;  %v826_v35 = vadd.f32 %v5803_v21, %v774_v15  ;;  %v831_v44 = vadd.f32 %v5793_v13, %v779_v8  ;;  %v6058_v16 = vld [vmem:[%s8229_s2 + $0x68] sm:$0xff]  ;;  %v6069_v52 = vld [vmem:[%s8229_s2 + $0x70] sm:$0xff] }
 0x145   :  { %4839 = vmatprep.subr.bf16.mxu0 %v4838_v26  ;;  %v823_v29 = vadd.f32 %v5803_v21, %v771_v43  ;;  %1078 = vmatprep.mubr.f32.mxu0 %v8377_v36  ;;  %v773_v10 = vmul.f32 %v5763_v5, %v721_v63  ;;  %v833_v11 = vadd.f32 %v5793_v13, %v781_v24  ;;  %v5970_v5 = vld [vmem:[%s8229_s2 + $0x28] sm:$0xff]  ;;  %v5981_v13 = vld [vmem:[%s8229_s2 + $0x30] sm:$0xff]  ;;  %v6185_v43 = vpop.permute.xlu0 %909 }
 0x146   :  { %v4846_v33 = vpack.c.bf16 %v834_v9, %v826_v35  ;;  %1239 = vmatprep.mubr.f32.mxu1 %v8377_v36 }
 0x147   :  { %v4840_v49 = vpack.c.bf16 %v831_v44, %v823_v29  ;;  %v825_v18 = vadd.f32 %v5803_v21, %v773_v10  ;;  %v5992_v21 = vld [vmem:[%s8229_s2 + $0x38] sm:$0xff] }
 0x148   :  { %4847 = vmatprep.subr.bf16.mxu1 %v4846_v33  ;;  %4641 = vmatmul.mubr.msk.f32.gmra.mrb[22].mxu0 %vm947_vm1, %v5943_v48 }
 0x149   :  { %4657 = vmatmul.mubr.msk.f32.gmra.mrb[22].mxu1 %vm947_vm1, %v5943_v48  ;;  %4841 = vmatpush1.bf16.msra.mxu0 %v4840_v49  ;;  %v4848_v4 = vpack.c.bf16 %v833_v11, %v825_v18  ;;  %v6187_v10 = vpop.permute.xlu0 %869  ;;  %v6189_v49 = vpop.permute.xlu1 %914 }
 0x14a   :  { %1084 = vmatprep.mubr.f32.mxu0 %v8377_v36  ;;  %1245 = vmatprep.mubr.f32.mxu1 %v8377_v36  ;;  %8382 = vst [vmem:[#allocation37_spill] sm:$0xff] %v6189_v49 }
 0x14b   :  { %4849 = vmatpush1.bf16.msra.mxu1 %v4848_v4 }
 0x14c   :  { %4642 = vmatmul.mubr.msk.f32.gmra.mrb[24].mxu0 %vm947_vm1, %v5958_v7 }
 0x14d   :  { %4658 = vmatmul.mubr.msk.f32.gmra.mrb[24].mxu1 %vm947_vm1, %v5958_v7  ;;  %1090 = vmatprep.mubr.f32.mxu0 %v8377_v36 }
 0x14e   :  { %1251 = vmatprep.mubr.f32.mxu1 %v8377_v36 }
 0x150   :  { %4643 = vmatmul.mubr.msk.f32.gmra.mrb[26].mxu0 %vm947_vm1, %v5970_v5 }
 0x151   :  { %4659 = vmatmul.mubr.msk.f32.gmra.mrb[26].mxu1 %vm947_vm1, %v5970_v5  ;;  %1096 = vmatprep.mubr.f32.mxu0 %v8377_v36 }
 0x152   :  { %1257 = vmatprep.mubr.f32.mxu1 %v8377_v36 }
 0x154   :  { %4644 = vmatmul.mubr.msk.f32.gmra.mrb[28].mxu0 %vm947_vm1, %v5981_v13 }
 0x155   :  { %4660 = vmatmul.mubr.msk.f32.gmra.mrb[28].mxu1 %vm947_vm1, %v5981_v13  ;;  %1102 = vmatprep.mubr.f32.mxu0 %v8377_v36 }
 0x156   :  { %1263 = vmatprep.mubr.f32.mxu1 %v8377_v36 }
 0x158   :  { %4645 = vmatmul.mubr.msk.f32.gmra.mrb[30].mxu0 %vm947_vm1, %v5992_v21 }
 0x159   :  { %4661 = vmatmul.mubr.msk.f32.gmra.mrb[30].mxu1 %vm947_vm1, %v5992_v21  ;;  %1108 = vmatprep.mubr.f32.mxu0 %v8377_v36 }
 0x15a   :  { %1269 = vmatprep.mubr.f32.mxu1 %v8377_v36 }
 0x15c   :  { %4646 = vmatmul.mubr.msk.f32.gmra.mrb[32].mxu0 %vm947_vm1, %v6003_v55 }
 0x15d   :  { %4662 = vmatmul.mubr.msk.f32.gmra.mrb[32].mxu1 %vm947_vm1, %v6003_v55  ;;  %1114 = vmatprep.mubr.f32.mxu0 %v8377_v36 }
 0x15e   :  { %1275 = vmatprep.mubr.f32.mxu1 %v8377_v36 }
 0x160   :  { %4647 = vmatmul.mubr.msk.f32.gmra.mrb[34].mxu0 %vm947_vm1, %v6014_v51 }
 0x161   :  { %4663 = vmatmul.mubr.msk.f32.gmra.mrb[34].mxu1 %vm947_vm1, %v6014_v51  ;;  %1120 = vmatprep.mubr.f32.mxu0 %v8377_v36 }
 0x162   :  { %1281 = vmatprep.mubr.f32.mxu1 %v8377_v36 }
 0x164   :  { %4648 = vmatmul.mubr.msk.f32.gmra.mrb[36].mxu0 %vm947_vm1, %v6025_v57 }
 0x165   :  { %4664 = vmatmul.mubr.msk.f32.gmra.mrb[36].mxu1 %vm947_vm1, %v6025_v57  ;;  %1126 = vmatprep.mubr.f32.mxu0 %v8377_v36 }
 0x166   :  { %1287 = vmatprep.mubr.f32.mxu1 %v8377_v36 }
 0x168   :  { %4649 = vmatmul.mubr.msk.f32.gmra.mrb[38].mxu0 %vm947_vm1, %v6036_v47 }
 0x169   :  { %4665 = vmatmul.mubr.msk.f32.gmra.mrb[38].mxu1 %vm947_vm1, %v6036_v47  ;;  %1132 = vmatprep.mubr.f32.mxu0 %v8377_v36 }
 0x16a   :  { %1293 = vmatprep.mubr.f32.mxu1 %v8377_v36 }
 0x16c   :  { %4650 = vmatmul.mubr.msk.f32.gmra.mrb[40].mxu0 %vm947_vm1, %v6047_v61 }
 0x16d   :  { %4666 = vmatmul.mubr.msk.f32.gmra.mrb[40].mxu1 %vm947_vm1, %v6047_v61  ;;  %1138 = vmatprep.mubr.f32.mxu0 %v8377_v36 }
 0x16e   :  { %1299 = vmatprep.mubr.f32.mxu1 %v8377_v36 }
 0x170   :  { %4651 = vmatmul.mubr.msk.f32.gmra.mrb[42].mxu0 %vm947_vm1, %v6058_v16 }
 0x171   :  { %4667 = vmatmul.mubr.msk.f32.gmra.mrb[42].mxu1 %vm947_vm1, %v6058_v16  ;;  %1144 = vmatprep.mubr.f32.mxu0 %v8377_v36 }
 0x172   :  { %1305 = vmatprep.mubr.f32.mxu1 %v8377_v36 }
 0x174   :  { %4652 = vmatmul.mubr.msk.f32.gmra.mrb[44].mxu0 %vm947_vm1, %v6069_v52 }
 0x175   :  { %4668 = vmatmul.mubr.msk.f32.gmra.mrb[44].mxu1 %vm947_vm1, %v6069_v52  ;;  %1150 = vmatprep.mubr.f32.mxu0 %v8377_v36 }
 0x176   :  { %1311 = vmatprep.mubr.f32.mxu1 %v8377_v36 }
 0x178   :  { %4653 = vmatmul.mubr.msk.f32.gmra.mrb[46].mxu0 %vm947_vm1, %v6080_v42 }
 0x179   :  { %4669 = vmatmul.mubr.msk.f32.gmra.mrb[46].mxu1 %vm947_vm1, %v6080_v42  ;;  %1382 = vmatprep.mubr.f32.mxu0 %v8377_v36 }
 0x17a   :  { %1543 = vmatprep.mubr.f32.mxu1 %v8377_v36 }
 0x17c   :  { %4670 = vmatmul.mubr.msk.f32.vlgmr.msra.gmra.mrb[48].mxu0 %vm947_vm1, %v5864_v38 }
 0x17d   :  { %4686 = vmatmul.mubr.msk.f32.vlgmr.msra.gmra.mrb[48].mxu1 %vm947_vm1, %v5864_v38  ;;  %1388 = vmatprep.mubr.f32.mxu0 %v8377_v36 }
 0x17e   :  { %1549 = vmatprep.mubr.f32.mxu1 %v8377_v36 }
 0x180   :  { %4671 = vmatmul.mubr.msk.f32.gmra.mrb[50].mxu0 %vm947_vm1, %v5893_v0 }
 0x181   :  { %4687 = vmatmul.mubr.msk.f32.gmra.mrb[50].mxu1 %vm947_vm1, %v5893_v0  ;;  %1394 = vmatprep.mubr.f32.mxu0 %v8377_v36 }
 0x182   :  { %1555 = vmatprep.mubr.f32.mxu1 %v8377_v36 }
 0x184   :  { %4672 = vmatmul.mubr.msk.f32.gmra.mrb[52].mxu0 %vm947_vm1, %v5919_v19 }
 0x185   :  { %4688 = vmatmul.mubr.msk.f32.gmra.mrb[52].mxu1 %vm947_vm1, %v5919_v19  ;;  %1400 = vmatprep.mubr.f32.mxu0 %v8377_v36 }
 0x186   :  { %1561 = vmatprep.mubr.f32.mxu1 %v8377_v36 }
 0x188   :  { %4673 = vmatmul.mubr.msk.f32.gmra.mrb[54].mxu0 %vm947_vm1, %v5943_v48 }
 0x189   :  { %4689 = vmatmul.mubr.msk.f32.gmra.mrb[54].mxu1 %vm947_vm1, %v5943_v48  ;;  %1406 = vmatprep.mubr.f32.mxu0 %v8377_v36 }
 0x18a   :  { %1567 = vmatprep.mubr.f32.mxu1 %v8377_v36 }
 0x18c   :  { %4674 = vmatmul.mubr.msk.f32.gmra.mrb[56].mxu0 %vm947_vm1, %v5958_v7 }
 0x18d   :  { %4690 = vmatmul.mubr.msk.f32.gmra.mrb[56].mxu1 %vm947_vm1, %v5958_v7  ;;  %1412 = vmatprep.mubr.f32.mxu0 %v8377_v36 }
 0x18e   :  { %1573 = vmatprep.mubr.f32.mxu1 %v8377_v36 }
 0x190   :  { %4675 = vmatmul.mubr.msk.f32.gmra.mrb[58].mxu0 %vm947_vm1, %v5970_v5 }
 0x191   :  { %4691 = vmatmul.mubr.msk.f32.gmra.mrb[58].mxu1 %vm947_vm1, %v5970_v5  ;;  %1418 = vmatprep.mubr.f32.mxu0 %v8377_v36 }
 0x192   :  { %1579 = vmatprep.mubr.f32.mxu1 %v8377_v36 }
 0x194   :  { %4676 = vmatmul.mubr.msk.f32.gmra.mrb[60].mxu0 %vm947_vm1, %v5981_v13 }
 0x195   :  { %4692 = vmatmul.mubr.msk.f32.gmra.mrb[60].mxu1 %vm947_vm1, %v5981_v13  ;;  %1424 = vmatprep.mubr.f32.mxu0 %v8377_v36  ;;  %v6197_v13 = vpop.permute.xlu0 %919 }
 0x196   :  { %1585 = vmatprep.mubr.f32.mxu1 %v8377_v36 }
 0x198   :  { %4677 = vmatmul.mubr.msk.f32.gmra.mrb[62].mxu0 %vm947_vm1, %v5992_v21 }
 0x199   :  { %4693 = vmatmul.mubr.msk.f32.gmra.mrb[62].mxu1 %vm947_vm1, %v5992_v21  ;;  %1430 = vmatprep.mubr.f32.mxu0 %v8377_v36 }
 0x19a   :  { %1591 = vmatprep.mubr.f32.mxu1 %v8377_v36 }
 0x19c   :  { %4678 = vmatmul.mubr.msk.f32.gmra.mrb[64].mxu0 %vm947_vm1, %v6003_v55 }
 0x19d   :  { %4694 = vmatmul.mubr.msk.f32.gmra.mrb[64].mxu1 %vm947_vm1, %v6003_v55  ;;  %1436 = vmatprep.mubr.f32.mxu0 %v8377_v36 }
 0x19e   :  { %1597 = vmatprep.mubr.f32.mxu1 %v8377_v36 }
 0x1a0   :  { %4679 = vmatmul.mubr.msk.f32.gmra.mrb[66].mxu0 %vm947_vm1, %v6014_v51 }
 0x1a1   :  { %4695 = vmatmul.mubr.msk.f32.gmra.mrb[66].mxu1 %vm947_vm1, %v6014_v51  ;;  %1442 = vmatprep.mubr.f32.mxu0 %v8377_v36 }
 0x1a2   :  { %1603 = vmatprep.mubr.f32.mxu1 %v8377_v36 }
 0x1a4   :  { %4680 = vmatmul.mubr.msk.f32.gmra.mrb[68].mxu0 %vm947_vm1, %v6025_v57 }
 0x1a5   :  { %4696 = vmatmul.mubr.msk.f32.gmra.mrb[68].mxu1 %vm947_vm1, %v6025_v57  ;;  %1448 = vmatprep.mubr.f32.mxu0 %v8377_v36  ;;  %v6205_v57 = vpop.permute.xlu1 %874 }
 0x1a6   :  { %1609 = vmatprep.mubr.f32.mxu1 %v8377_v36 }
 0x1a8   :  { %4681 = vmatmul.mubr.msk.f32.gmra.mrb[70].mxu0 %vm947_vm1, %v6036_v47 }
 0x1a9   :  { %4697 = vmatmul.mubr.msk.f32.gmra.mrb[70].mxu1 %vm947_vm1, %v6036_v47  ;;  %1454 = vmatprep.mubr.f32.mxu0 %v8377_v36  ;;  %v6219_v12 = vpop.permute.xlu1 %924 }
 0x1aa   :  { %1615 = vmatprep.mubr.f32.mxu1 %v8377_v36 }
 0x1ac   :  { %4682 = vmatmul.mubr.msk.f32.gmra.mrb[72].mxu0 %vm947_vm1, %v6047_v61 }
 0x1ad   :  { %4698 = vmatmul.mubr.msk.f32.gmra.mrb[72].mxu1 %vm947_vm1, %v6047_v61  ;;  %1460 = vmatprep.mubr.f32.mxu0 %v8377_v36  ;;  %v6241_v2 = vpop.permute.xlu1 %884 }
 0x1ae   :  { %1621 = vmatprep.mubr.f32.mxu1 %v8377_v36 }
 0x1b0   :  { %4683 = vmatmul.mubr.msk.f32.gmra.mrb[74].mxu0 %vm947_vm1, %v6058_v16 }
 0x1b1   :  { %4699 = vmatmul.mubr.msk.f32.gmra.mrb[74].mxu1 %vm947_vm1, %v6058_v16  ;;  %1466 = vmatprep.mubr.f32.mxu0 %v8377_v36 }
 0x1b2   :  { %1627 = vmatprep.mubr.f32.mxu1 %v8377_v36 }
 0x1b4   :  { %4684 = vmatmul.mubr.msk.f32.gmra.mrb[76].mxu0 %vm947_vm1, %v6069_v52 }
 0x1b5   :  { %4700 = vmatmul.mubr.msk.f32.gmra.mrb[76].mxu1 %vm947_vm1, %v6069_v52  ;;  %1472 = vmatprep.mubr.f32.mxu0 %v8377_v36 }
 0x1b6   :  { %1633 = vmatprep.mubr.f32.mxu1 %v8377_v36 }
 0x1b8   :  { %4685 = vmatmul.mubr.msk.f32.gmra.mrb[78].mxu0 %vm947_vm1, %v6080_v42 }
 0x1b9   :  { %4701 = vmatmul.mubr.msk.f32.gmra.mrb[78].mxu1 %vm947_vm1, %v6080_v42  ;;  %1873 = vmatprep.mubr.f32.mxu0 %v8377_v36  ;;  %v6215_v42 = vpop.permute.xlu0 %879 }
 0x1ba   :  { %1962 = vmatprep.mubr.f32.mxu1 %v8377_v36 }
 0x1bd   :  { %v6231_v34 = vpop.permute.xlu0 %929 }
 0x1c1   :  { %v6268_v40 = vpop.permute.xlu0 %889 }
 0x1c2   :  { %8383 = vst [vmem:[#allocation38_spill] sm:$0xff] %v6268_v40 }
 0x20e   :  { %v1062_v38 = vpop.f32.mrb[16].mxu0 }
 0x20f   :  { %v1223_v0 = vpop.f32.mrb[16].mxu1  ;;  %v1064_v19 = vpop.f32.mrb[17].mxu0  ;;  %v1063_v62 = vadd.f32 %v1062_v38, %v6187_v10 }
 0x210   :  { %v1225_v15 = vpop.f32.mrb[17].mxu1  ;;  %v1224_v22 = vadd.f32 %v1223_v0, %v6187_v10  ;;  %v1065_v54 = vadd.f32 %v1064_v19, %v6187_v10 }
 0x211   :  { %v1226_v17 = vadd.f32 %v1225_v15, %v6187_v10 }
 0x213   :  { %v1068_v8 = vpop.f32.mrb[18].mxu0  ;;  %v1229_v6 = vpop.f32.mrb[18].mxu1 }
 0x214   :  { %v1070_v26 = vpop.f32.mrb[19].mxu0  ;;  %v1231_v9 = vpop.f32.mrb[19].mxu1  ;;  %v1069_v53 = vadd.f32 %v1068_v8, %v6205_v57  ;;  %v1230_v30 = vadd.f32 %v1229_v6, %v6205_v57 }
 0x215   :  { %v1071_v3 = vadd.f32 %v1070_v26, %v6205_v57  ;;  %v1232_v50 = vadd.f32 %v1231_v9, %v6205_v57 }
 0x217   :  { %v1074_v24 = vpop.f32.mrb[20].mxu0  ;;  %v1235_v35 = vpop.f32.mrb[20].mxu1 }
 0x218   :  { %v1076_v44 = vpop.f32.mrb[21].mxu0  ;;  %v1237_v63 = vpop.f32.mrb[21].mxu1  ;;  %v1075_v25 = vadd.f32 %v1074_v24, %v6215_v42  ;;  %v6244_v19 = vadd.f32 %v1235_v35, %v6215_v42 }
 0x219   :  { %v6247_v15 = vadd.f32 %v1076_v44, %v6215_v42  ;;  %v6252_v9 = vadd.f32 %v1237_v63, %v6215_v42 }
 0x21b   :  { %v1080_v48 = vpop.f32.mrb[22].mxu0 }
 0x21c   :  { %v1241_v29 = vpop.f32.mrb[22].mxu1  ;;  %v1082_v33 = vpop.f32.mrb[23].mxu0 }
 0x21d   :  { %v1243_v11 = vpop.f32.mrb[23].mxu1  ;;  %v6259_v35 = vadd.f32 %v1241_v29, %v6241_v2  ;;  %v6262_v44 = vadd.f32 %v1082_v33, %v6241_v2 }
 0x21f   :  { %v1086_v18 = vpop.f32.mrb[24].mxu0 }
 0x220   :  { %v6191_v7 = vpop.f32.mrb[24].mxu1  ;;  %v6193_v4 = vpop.f32.mrb[25].mxu0 }
 0x221   :  { %v6195_v5 = vpop.f32.mrb[25].mxu1 }
 0x223   :  { %v6199_v21 = vpop.f32.mrb[26].mxu0 }
 0x224   :  { %v6201_v55 = vpop.f32.mrb[26].mxu1  ;;  %v6203_v51 = vpop.f32.mrb[27].mxu0 }
 0x225   :  { %v6207_v47 = vpop.f32.mrb[27].mxu1 }
 0x227   :  { %v6209_v61 = vpop.f32.mrb[28].mxu0 }
 0x228   :  { %v6211_v16 = vpop.f32.mrb[28].mxu1  ;;  %v6213_v52 = vpop.f32.mrb[29].mxu0 }
 0x229   :  { %v6217_v37 = vpop.f32.mrb[29].mxu1 }
 0x22b   :  { %v6221_v58 = vpop.f32.mrb[30].mxu0 }
 0x22c   :  { %v6223_v41 = vpop.f32.mrb[30].mxu1  ;;  %v6225_v56 = vpop.f32.mrb[31].mxu0 }
 0x22d   :  { %v6227_v20 = vpop.f32.mrb[31].mxu1 }
 0x22f   :  { %v1110_v14 = vpop.f32.mrb[32].mxu0 }
 0x230   :  { %v1111_v38 = vadd.f32 %v1110_v14, %v6185_v43  ;;  %v1271_v0 = vpop.f32.mrb[32].mxu1  ;;  %v1112_v23 = vpop.f32.mrb[33].mxu0  ;;  %v6255_v14 = vadd.f32 %v1080_v48, %v6241_v2 }
 0x231   :  { %v1272_v8 = vadd.f32 %v1271_v0, %v6185_v43  ;;  %v1113_v6 = vadd.f32 %v1112_v23, %v6185_v43  ;;  %v1273_v26 = vpop.f32.mrb[33].mxu1  ;;  %v6265_v23 = vadd.f32 %v1243_v11, %v6241_v2 }
 0x232   :  { %v1640_v24 = vmax.f32 %v1111_v38, 0.0  ;;  %v1274_v1 = vadd.f32 %v1273_v26, %v6185_v43 }
 0x233   :  { %v1642_v60 = vmax.f32 %v1272_v8, 0.0  ;;  %v1641_v0 = vmax.f32 %v1113_v6, 0.0  ;;  %v1116_v59 = vpop.f32.mrb[34].mxu0  ;;  %v6273_v6 = vadd.f32 %v1086_v18, %v6268_v40  ;;  %v6288_v18 = vadd.f32 %v6195_v5, %v6268_v40 }
 0x234   :  { %v1704_v63 = vmul.f32 %v1640_v24, %v1063_v62  ;;  %v1643_v46 = vmax.f32 %v1274_v1, 0.0  ;;  %v1117_v48 = vadd.f32 %v1116_v59, %v6189_v49  ;;  %v1277_v45 = vpop.f32.mrb[34].mxu1  ;;  %v1118_v38 = vpop.f32.mrb[35].mxu0  ;;  %v6280_v59 = vadd.f32 %v6191_v7, %v6268_v40 }
 0x235   :  { %v1706_v26 = vmul.f32 %v1642_v60, %v1224_v22  ;;  %v1705_v29 = vmul.f32 %v1641_v0, %v1065_v54  ;;  %v1278_v39 = vadd.f32 %v1277_v45, %v6189_v49  ;;  %v1119_v33 = vadd.f32 %v1118_v38, %v6189_v49  ;;  %v1279_v8 = vpop.f32.mrb[35].mxu1  ;;  %v6276_v62 = vpop.permute.xlu1 %934 }
 0x236   :  { %v1707_v11 = vmul.f32 %v1643_v46, %v1226_v17  ;;  %v1648_v32 = vmax.f32 %v1117_v48, 0.0  ;;  %v1280_v1 = vadd.f32 %v1279_v8, %v6189_v49  ;;  %v6284_v60 = vadd.f32 %v6193_v4, %v6268_v40 }
 0x237   :  { %v1650_v45 = vmax.f32 %v1278_v39, 0.0  ;;  %v1649_v54 = vmax.f32 %v1119_v33, 0.0  ;;  %v1122_v22 = vpop.f32.mrb[36].mxu0 }
 0x238   :  { %v1712_v46 = vmul.f32 %v1648_v32, %v1069_v53  ;;  %v1651_v17 = vmax.f32 %v1280_v1, 0.0  ;;  %v1123_v24 = vadd.f32 %v1122_v22, %v6197_v13  ;;  %v1283_v0 = vpop.f32.mrb[36].mxu1  ;;  %v1124_v48 = vpop.f32.mrb[37].mxu0 }
 0x239   :  { %v1714_v38 = vmul.f32 %v1650_v45, %v1230_v30  ;;  %v1713_v7 = vmul.f32 %v1649_v54, %v1071_v3  ;;  %v1284_v8 = vadd.f32 %v1283_v0, %v6197_v13  ;;  %v1125_v4 = vadd.f32 %v1124_v48, %v6197_v13  ;;  %v1285_v31 = vpop.f32.mrb[37].mxu1  ;;  %v6297_v0 = vpop.permute.xlu1 %894 }
 0x23a   :  { %v4852_v39 = vpack.c.bf16 %v1712_v46, %v1704_v63  ;;  %v1715_v33 = vmul.f32 %v1651_v17, %v1232_v50  ;;  %v1656_v28 = vmax.f32 %v1123_v24, 0.0  ;;  %v1286_v27 = vadd.f32 %v1285_v31, %v6197_v13 }
 0x23b   :  { %v4868_v5 = vpack.c.bf16 %v1714_v38, %v1706_v26  ;;  %v1658_v40 = vmax.f32 %v1284_v8, 0.0  ;;  %v1657_v32 = vmax.f32 %v1125_v4, 0.0  ;;  %v1128_v53 = vpop.f32.mrb[38].mxu0  ;;  %v4850_v1 = vpack.c.bf16 %v1713_v7, %v1705_v29 }
 0x23c   :  { %v6294_v22 = vmul.f32 %v1656_v28, %v1075_v25  ;;  %v1659_v49 = vmax.f32 %v1286_v27, 0.0  ;;  %v1129_v30 = vadd.f32 %v1128_v53, %v6219_v12  ;;  %v1289_v3 = vpop.f32.mrb[38].mxu1  ;;  %v1130_v45 = vpop.f32.mrb[39].mxu0  ;;  %v4866_v54 = vpack.c.bf16 %v1715_v33, %v1707_v11 }
 0x23d   :  { %v6300_v50 = vmul.f32 %v1658_v40, %v6244_v19  ;;  %v1721_v31 = vmul.f32 %v1657_v32, %v6247_v15  ;;  %v1290_v63 = vadd.f32 %v1289_v3, %v6219_v12  ;;  %v1131_v26 = vadd.f32 %v1130_v45, %v6219_v12  ;;  %v1291_v29 = vpop.f32.mrb[39].mxu1  ;;  %4851 = vmatprep.subr.bf16.mxu0 %v4850_v1  ;;  %v6309_v40 = vpop.permute.xlu0 %939 }
 0x23e   :  { %v1093_v27 = vadd.f32 %v6199_v21, %v6297_v0  ;;  %v1723_v28 = vmul.f32 %v1659_v49, %v6252_v9  ;;  %v1664_v25 = vmax.f32 %v1129_v30, 0.0  ;;  %v1292_v11 = vadd.f32 %v1291_v29, %v6219_v12  ;;  %4867 = vmatprep.subr.bf16.mxu1 %v4866_v54  ;;  %4853 = vmatpush1.bf16.msra.mxu0 %v4852_v39 }
 0x23f   :  { %v1254_v19 = vadd.f32 %v6201_v55, %v6297_v0  ;;  %v1095_v15 = vadd.f32 %v6203_v51, %v6297_v0  ;;  %v1666_v46 = vmax.f32 %v1290_v63, 0.0  ;;  %v1665_v17 = vmax.f32 %v1131_v26, 0.0  ;;  %4869 = vmatpush1.bf16.msra.mxu1 %v4868_v5  ;;  %v1134_v24 = vpop.f32.mrb[40].mxu0 }
 0x240   :  { %v1256_v49 = vadd.f32 %v6207_v47, %v6297_v0  ;;  %v1728_v21 = vmul.f32 %v1664_v25, %v6255_v14  ;;  %v1667_v9 = vmax.f32 %v1292_v11, 0.0  ;;  %v1135_v48 = vadd.f32 %v1134_v24, %v6231_v34  ;;  %v1295_v38 = vpop.f32.mrb[40].mxu1  ;;  %v1136_v7 = vpop.f32.mrb[41].mxu0 }
 0x241   :  { %v1730_v8 = vmul.f32 %v1666_v46, %v6259_v35  ;;  %v1729_v55 = vmul.f32 %v1665_v17, %v6262_v44  ;;  %v1296_v51 = vadd.f32 %v1295_v38, %v6231_v34  ;;  %v1137_v4 = vadd.f32 %v1136_v7, %v6231_v34  ;;  %v1297_v39 = vpop.f32.mrb[41].mxu1  ;;  %v6331_v26 = vpop.permute.xlu0 %899 }
 0x242   :  { %v4856_v33 = vpack.c.bf16 %v1728_v21, %v6294_v22  ;;  %v1731_v47 = vmul.f32 %v1667_v9, %v6265_v23  ;;  %v1672_v5 = vmax.f32 %v1135_v48, 0.0  ;;  %v1298_v14 = vadd.f32 %v1297_v39, %v6231_v34  ;;  %v6341_v17 = vpop.permute.xlu1 %944 }
 0x243   :  { %v4872_v32 = vpack.c.bf16 %v1730_v8, %v6300_v50  ;;  %v1674_v53 = vmax.f32 %v1296_v51, 0.0  ;;  %v1673_v1 = vmax.f32 %v1137_v4, 0.0  ;;  %v1140_v30 = vpop.f32.mrb[42].mxu0  ;;  %v4854_v35 = vpack.c.bf16 %v1729_v55, %v1721_v31 }
 0x244   :  { %v6328_v44 = vmul.f32 %v1672_v5, %v6273_v6  ;;  %v1675_v3 = vmax.f32 %v1298_v14, 0.0  ;;  %v1141_v45 = vadd.f32 %v1140_v30, %v6276_v62  ;;  %v1301_v54 = vpop.f32.mrb[42].mxu1  ;;  %v1142_v63 = vpop.f32.mrb[43].mxu0  ;;  %v4870_v22 = vpack.c.bf16 %v1731_v47, %v1723_v28 }
 0x245   :  { %v1738_v23 = vmul.f32 %v1674_v53, %v6280_v59  ;;  %v1737_v29 = vmul.f32 %v1673_v1, %v6284_v60  ;;  %v1302_v50 = vadd.f32 %v1301_v54, %v6276_v62  ;;  %v1143_v25 = vadd.f32 %v1142_v63, %v6276_v62  ;;  %v1303_v31 = vpop.f32.mrb[43].mxu1  ;;  %4855 = vmatprep.subr.bf16.mxu0 %v4854_v35 }
 0x246   :  { %v1099_v6 = vadd.f32 %v6209_v61, %v6331_v26  ;;  %v1739_v11 = vmul.f32 %v1675_v3, %v6288_v18  ;;  %v1680_v46 = vmax.f32 %v1141_v45, 0.0  ;;  %v1304_v28 = vadd.f32 %v1303_v31, %v6276_v62  ;;  %4871 = vmatprep.subr.bf16.mxu1 %v4870_v22  ;;  %4857 = vmatpush1.bf16.msra.mxu0 %v4856_v33  ;;  %v6355_v45 = vpop.permute.xlu1 %904 }
 0x247   :  { %v1260_v59 = vadd.f32 %v6211_v16, %v6331_v26  ;;  %v1101_v60 = vadd.f32 %v6213_v52, %v6331_v26  ;;  %v1682_v24 = vmax.f32 %v1302_v50, 0.0  ;;  %v1681_v21 = vmax.f32 %v1143_v25, 0.0  ;;  %4873 = vmatpush1.bf16.msra.mxu1 %v4872_v32  ;;  %v1146_v9 = vpop.f32.mrb[44].mxu0 }
 0x248   :  { %v1262_v61 = vadd.f32 %v6217_v37, %v6331_v26  ;;  %v1744_v18 = vmul.f32 %v1680_v46, %v1093_v27  ;;  %v1683_v48 = vmax.f32 %v1304_v28, 0.0  ;;  %v1147_v38 = vadd.f32 %v1146_v9, %v6309_v40  ;;  %v1307_v7 = vpop.f32.mrb[44].mxu1  ;;  %v1148_v8 = vpop.f32.mrb[45].mxu0 }
 0x249   :  { %v1746_v55 = vmul.f32 %v1682_v24, %v1254_v19  ;;  %v1745_v51 = vmul.f32 %v1681_v21, %v1095_v15  ;;  %v1308_v16 = vadd.f32 %v1307_v7, %v6309_v40  ;;  %v1149_v4 = vadd.f32 %v1148_v8, %v6309_v40  ;;  %v1309_v52 = vpop.f32.mrb[45].mxu1 }
 0x24a   :  { %v4860_v39 = vpack.c.bf16 %v1744_v18, %v6328_v44  ;;  %v1747_v33 = vmul.f32 %v1683_v48, %v1256_v49  ;;  %v1688_v47 = vmax.f32 %v1147_v38, 0.0  ;;  %v1310_v5 = vadd.f32 %v1309_v52, %v6309_v40 }
 0x24b   :  { %v4876_v37 = vpack.c.bf16 %v1746_v55, %v1738_v23  ;;  %v1690_v27 = vmax.f32 %v1308_v16, 0.0  ;;  %v1689_v14 = vmax.f32 %v1149_v4, 0.0  ;;  %v1152_v32 = vpop.f32.mrb[46].mxu0  ;;  %v4858_v53 = vpack.c.bf16 %v1745_v51, %v1737_v29 }
 0x24c   :  { %v1752_v1 = vmul.f32 %v1688_v47, %v1099_v6  ;;  %v1691_v30 = vmax.f32 %v1310_v5, 0.0  ;;  %v1153_v19 = vadd.f32 %v1152_v32, %v6341_v17  ;;  %v1313_v15 = vpop.f32.mrb[46].mxu1  ;;  %v1154_v35 = vpop.f32.mrb[47].mxu0  ;;  %v4874_v3 = vpack.c.bf16 %v1747_v33, %v1739_v11  ;;  %v6387_v47 = vld [vmem:[%s8230_s3 + $0x8] sm:$0xff]  ;;  %v6398_v32 = vld [vmem:[%s8230_s3 + $0x10] sm:$0xff] }
 0x24d   :  { %v1754_v54 = vmul.f32 %v1690_v27, %v1260_v59  ;;  %v1753_v44 = vmul.f32 %v1689_v14, %v1101_v60  ;;  %v1314_v49 = vadd.f32 %v1313_v15, %v6341_v17  ;;  %v1155_v63 = vadd.f32 %v1154_v35, %v6341_v17  ;;  %v1315_v22 = vpop.f32.mrb[47].mxu1  ;;  %4859 = vmatprep.subr.bf16.mxu0 %v4858_v53  ;;  %v6417_v15 = vld [vmem:[%s8230_s3 + $0x18] sm:$0xff] }
 0x24e   :  { %v1105_v23 = vadd.f32 %v6221_v58, %v6355_v45  ;;  %v1755_v29 = vmul.f32 %v1691_v30, %v1262_v61  ;;  %v1696_v50 = vmax.f32 %v1153_v19, 0.0  ;;  %v1316_v25 = vadd.f32 %v1315_v22, %v6341_v17  ;;  %4875 = vmatprep.subr.bf16.mxu1 %v4874_v3  ;;  %4861 = vmatpush1.bf16.msra.mxu0 %v4860_v39 }
 0x24f   :  { %v1266_v31 = vadd.f32 %v6223_v41, %v6355_v45  ;;  %v1107_v6 = vadd.f32 %v6225_v56, %v6355_v45  ;;  %v1698_v11 = vmax.f32 %v1314_v49, 0.0  ;;  %v1697_v46 = vmax.f32 %v1155_v63, 0.0  ;;  %4877 = vmatpush1.bf16.msra.mxu1 %v4876_v37  ;;  %v6366_v28 = vpop.f32.mrb[48].mxu0  ;;  %8384 = vst [vmem:[#allocation39_spill] sm:$0xff] %v6387_v47  ;;  %8385 = vst [vmem:[#allocation40_spill] sm:$0xff] %v6398_v32 }
 0x250   :  { %v1268_v58 = vadd.f32 %v6227_v20, %v6355_v45  ;;  %v1760_v59 = vmul.f32 %v1696_v50, %v1105_v23  ;;  %v1699_v60 = vmax.f32 %v1316_v25, 0.0  ;;  %v6370_v24 = vpop.f32.mrb[48].mxu1  ;;  %v6372_v21 = vpop.f32.mrb[49].mxu0  ;;  %v6377_v20 = vld [vmem:[%s8230_s3] sm:$0xff]  ;;  %8386 = vst [vmem:[#allocation41_spill] sm:$0xff] %v6417_v15 }
 0x251   :  { %v1762_v9 = vmul.f32 %v1698_v11, %v1266_v31  ;;  %v1761_v61 = vmul.f32 %v1697_v46, %v1107_v6  ;;  %v1547_v41 = vpop.f32.mrb[49].mxu1  ;;  %v1385_v6 = vadd.f32 %v6366_v28, %v6187_v10  ;;  %v1546_v11 = vadd.f32 %v6370_v24, %v6187_v10 }
 0x252   :  { %v4864_v18 = vpack.c.bf16 %v1760_v59, %v1752_v1  ;;  %v1763_v48 = vmul.f32 %v1699_v60, %v1268_v58  ;;  %v1387_v46 = vadd.f32 %v6372_v21, %v6187_v10  ;;  %v1548_v58 = vadd.f32 %v1547_v41, %v6187_v10 }
 0x253   :  { %v4880_v56 = vpack.c.bf16 %v1762_v9, %v1754_v54  ;;  %v1390_v38 = vpop.f32.mrb[50].mxu0  ;;  %v4862_v7 = vpack.c.bf16 %v1761_v61, %v1753_v44 }
 0x254   :  { %v1551_v8 = vpop.f32.mrb[50].mxu1  ;;  %v1392_v55 = vpop.f32.mrb[51].mxu0  ;;  %v4878_v51 = vpack.c.bf16 %v1763_v48, %v1755_v29  ;;  %v1391_v59 = vadd.f32 %v1390_v38, %v6205_v57 }
 0x255   :  { %v1553_v16 = vpop.f32.mrb[51].mxu1  ;;  %4863 = vmatprep.subr.bf16.mxu0 %v4862_v7  ;;  %v1552_v60 = vadd.f32 %v1551_v8, %v6205_v57  ;;  %v1393_v61 = vadd.f32 %v1392_v55, %v6205_v57 }
 0x256   :  { %4879 = vmatprep.subr.bf16.mxu1 %v4878_v51  ;;  %4865 = vmatpush1.bf16.msra.mxu0 %v4864_v18  ;;  %v1554_v18 = vadd.f32 %v1553_v16, %v6205_v57 }
 0x257   :  { %4881 = vmatpush1.bf16.msra.mxu1 %v4880_v56  ;;  %v1396_v4 = vpop.f32.mrb[52].mxu0 }
 0x258   :  { %v1557_v52 = vpop.f32.mrb[52].mxu1  ;;  %v1398_v39 = vpop.f32.mrb[53].mxu0  ;;  %v1397_v48 = vadd.f32 %v1396_v4, %v6215_v42 }
 0x259   :  { %v1559_v33 = vpop.f32.mrb[53].mxu1  ;;  %4702 = vmatmul.mubr.msk.f32.vlgmr.msra.gmra.mrb[80].mxu0 %vm1796_vm2, %v6377_v20  ;;  %v1558_v7 = vadd.f32 %v1557_v52, %v6215_v42  ;;  %v1399_v21 = vadd.f32 %v1398_v39, %v6215_v42 }
 0x25a   :  { %4706 = vmatmul.mubr.msk.f32.vlgmr.msra.gmra.mrb[80].mxu1 %vm1796_vm2, %v6377_v20  ;;  %1879 = vmatprep.mubr.f32.mxu0 %v8377_v36  ;;  %v1560_v8 = vadd.f32 %v1559_v33, %v6215_v42  ;;  %v8387_v33 = vld [vmem:[#allocation37_spill] sm:$0xff] }
 0x25b   :  { %v1402_v5 = vpop.f32.mrb[54].mxu0  ;;  %1968 = vmatprep.mubr.f32.mxu1 %v8377_v36 }
 0x25c   :  { %v1563_v37 = vpop.f32.mrb[54].mxu1  ;;  %v1404_v27 = vpop.f32.mrb[55].mxu0  ;;  %v6469_v55 = vadd.f32 %v1402_v5, %v6241_v2 }
 0x25d   :  { %v1565_v14 = vpop.f32.mrb[55].mxu1  ;;  %4703 = vmatmul.mubr.msk.f32.gmra.mrb[82].mxu0 %vm1796_vm2, %v6387_v47  ;;  %v6473_v16 = vadd.f32 %v1563_v37, %v6241_v2  ;;  %v6476_v4 = vadd.f32 %v1404_v27, %v6241_v2 }
 0x25e   :  { %4707 = vmatmul.mubr.msk.f32.gmra.mrb[82].mxu1 %vm1796_vm2, %v6387_v47  ;;  %1885 = vmatprep.mubr.f32.mxu0 %v8377_v36  ;;  %v8388_v47 = vld [vmem:[#allocation38_spill] sm:$0xff] }
 0x25f   :  { %v6400_v53 = vpop.f32.mrb[56].mxu0  ;;  %1974 = vmatprep.mubr.f32.mxu1 %v8377_v36 }
 0x260   :  { %v6403_v1 = vpop.f32.mrb[56].mxu1  ;;  %v6405_v30 = vpop.f32.mrb[57].mxu0 }
 0x261   :  { %v6407_v19 = vpop.f32.mrb[57].mxu1  ;;  %4704 = vmatmul.mubr.msk.f32.gmra.mrb[84].mxu0 %vm1796_vm2, %v6398_v32 }
 0x262   :  { %4708 = vmatmul.mubr.msk.f32.gmra.mrb[84].mxu1 %vm1796_vm2, %v6398_v32  ;;  %1891 = vmatprep.mubr.f32.mxu0 %v8377_v36 }
 0x263   :  { %v6419_v35 = vpop.f32.mrb[58].mxu0  ;;  %1980 = vmatprep.mubr.f32.mxu1 %v8377_v36 }
 0x264   :  { %v6422_v3 = vpop.f32.mrb[58].mxu1  ;;  %v6424_v54 = vpop.f32.mrb[59].mxu0 }
 0x265   :  { %v6426_v44 = vpop.f32.mrb[59].mxu1  ;;  %4705 = vmatmul.mubr.msk.f32.gmra.mrb[86].mxu0 %vm1796_vm2, %v6417_v15 }
 0x266   :  { %4709 = vmatmul.mubr.msk.f32.gmra.mrb[86].mxu1 %vm1796_vm2, %v6417_v15  ;;  %2051 = vmatprep.mubr.f32.mxu0 %v8377_v36 }
 0x267   :  { %v6433_v49 = vpop.f32.mrb[60].mxu0  ;;  %2140 = vmatprep.mubr.f32.mxu1 %v8377_v36 }
 0x268   :  { %v6436_v63 = vpop.f32.mrb[60].mxu1  ;;  %v6438_v22 = vpop.f32.mrb[61].mxu0 }
 0x269   :  { %v6440_v23 = vpop.f32.mrb[61].mxu1 }
 0x26b   :  { %v6442_v29 = vpop.f32.mrb[62].mxu0 }
 0x26c   :  { %v6444_v50 = vpop.f32.mrb[62].mxu1  ;;  %v6446_v25 = vpop.f32.mrb[63].mxu0 }
 0x26d   :  { %v6448_v31 = vpop.f32.mrb[63].mxu1 }
 0x26f   :  { %v1432_v9 = vpop.f32.mrb[64].mxu0 }
 0x270   :  { %v1433_v28 = vadd.f32 %v1432_v9, %v6185_v43  ;;  %v1593_v56 = vpop.f32.mrb[64].mxu1  ;;  %v1434_v24 = vpop.f32.mrb[65].mxu0 }
 0x271   :  { %v1594_v10 = vadd.f32 %v1593_v56, %v6185_v43  ;;  %v1435_v41 = vadd.f32 %v1434_v24, %v6185_v43  ;;  %v1595_v38 = vpop.f32.mrb[65].mxu1  ;;  %v6479_v56 = vadd.f32 %v1565_v14, %v6241_v2 }
 0x272   :  { %v1644_v57 = vmax.f32 %v1433_v28, 0.0  ;;  %v1596_v51 = vadd.f32 %v1595_v38, %v6185_v43 }
 0x273   :  { %v1646_v52 = vmax.f32 %v1594_v10, 0.0  ;;  %v1645_v39 = vmax.f32 %v1435_v41, 0.0  ;;  %v1438_v9 = vpop.f32.mrb[66].mxu0  ;;  %v6486_v10 = vadd.f32 %v6400_v53, %v8388_v47 }
 0x274   :  { %v1708_v24 = vmul.f32 %v1644_v57, %v1385_v6  ;;  %v1647_v42 = vmax.f32 %v1596_v51, 0.0  ;;  %v1439_v5 = vadd.f32 %v1438_v9, %v8387_v33  ;;  %v1599_v15 = vpop.f32.mrb[66].mxu1  ;;  %v1440_v28 = vpop.f32.mrb[67].mxu0  ;;  %v6491_v6 = vadd.f32 %v6403_v1, %v8388_v47 }
 0x275   :  { %v1710_v32 = vmul.f32 %v1646_v52, %v1546_v11  ;;  %v1709_v43 = vmul.f32 %v1645_v39, %v1387_v46  ;;  %v1600_v37 = vadd.f32 %v1599_v15, %v8387_v33  ;;  %v1441_v38 = vadd.f32 %v1440_v28, %v8387_v33  ;;  %v1601_v27 = vpop.f32.mrb[67].mxu1 }
 0x276   :  { %v1711_v41 = vmul.f32 %v1647_v42, %v1548_v58  ;;  %v1652_v2 = vmax.f32 %v1439_v5, 0.0  ;;  %v1602_v14 = vadd.f32 %v1601_v27, %v8387_v33  ;;  %v6495_v11 = vadd.f32 %v6405_v30, %v8388_v47 }
 0x277   :  { %v1654_v15 = vmax.f32 %v1600_v37, 0.0  ;;  %v1653_v46 = vmax.f32 %v1441_v38, 0.0  ;;  %v1444_v57 = vpop.f32.mrb[68].mxu0  ;;  %v6499_v51 = vadd.f32 %v6407_v19, %v8388_v47 }
 0x278   :  { %v1716_v53 = vmul.f32 %v1652_v2, %v1391_v59  ;;  %v1655_v58 = vmax.f32 %v1602_v14, 0.0  ;;  %v1445_v52 = vadd.f32 %v1444_v57, %v6197_v13  ;;  %v1605_v39 = vpop.f32.mrb[68].mxu1  ;;  %v1446_v9 = vpop.f32.mrb[69].mxu0 }
 0x279   :  { %v1718_v42 = vmul.f32 %v1654_v15, %v1552_v60  ;;  %v1717_v1 = vmul.f32 %v1653_v46, %v1393_v61  ;;  %v1606_v33 = vadd.f32 %v1605_v39, %v6197_v13  ;;  %v1447_v30 = vadd.f32 %v1446_v9, %v6197_v13  ;;  %v1607_v5 = vpop.f32.mrb[69].mxu1 }
 0x27a   :  { %v4884_v28 = vpack.c.bf16 %v1716_v53, %v1708_v24  ;;  %v1719_v37 = vmul.f32 %v1655_v58, %v1554_v18  ;;  %v1660_v38 = vmax.f32 %v1445_v52, 0.0  ;;  %v1608_v27 = vadd.f32 %v1607_v5, %v6197_v13 }
 0x27b   :  { %v4900_v47 = vpack.c.bf16 %v1718_v42, %v1710_v32  ;;  %v1662_v19 = vmax.f32 %v1606_v33, 0.0  ;;  %v1661_v59 = vmax.f32 %v1447_v30, 0.0  ;;  %v1450_v2 = vpop.f32.mrb[70].mxu0  ;;  %v4882_v14 = vpack.c.bf16 %v1717_v1, %v1709_v43 }
 0x27c   :  { %v1724_v57 = vmul.f32 %v1660_v38, %v1397_v48  ;;  %v1663_v36 = vmax.f32 %v1608_v27, 0.0  ;;  %v1451_v60 = vadd.f32 %v1450_v2, %v6219_v12  ;;  %v1611_v61 = vpop.f32.mrb[70].mxu1  ;;  %v1452_v15 = vpop.f32.mrb[71].mxu0  ;;  %v4898_v46 = vpack.c.bf16 %v1719_v37, %v1711_v41 }
 0x27d   :  { %v1726_v39 = vmul.f32 %v1662_v19, %v1558_v7  ;;  %v1725_v9 = vmul.f32 %v1661_v59, %v1399_v21  ;;  %v1612_v24 = vadd.f32 %v1611_v61, %v6219_v12  ;;  %v1453_v18 = vadd.f32 %v1452_v15, %v6219_v12  ;;  %v1613_v53 = vpop.f32.mrb[71].mxu1  ;;  %4883 = vmatprep.subr.bf16.mxu0 %v4882_v14 }
 0x27e   :  { %v1415_v13 = vadd.f32 %v6419_v35, %v6297_v0  ;;  %v1727_v32 = vmul.f32 %v1663_v36, %v1560_v8  ;;  %v1668_v43 = vmax.f32 %v1451_v60, 0.0  ;;  %v1614_v48 = vadd.f32 %v1613_v53, %v6219_v12  ;;  %4899 = vmatprep.subr.bf16.mxu1 %v4898_v46  ;;  %4885 = vmatpush1.bf16.msra.mxu0 %v4884_v28 }
 0x27f   :  { %v1576_v41 = vadd.f32 %v6422_v3, %v6297_v0  ;;  %v1417_v7 = vadd.f32 %v6424_v54, %v6297_v0  ;;  %v1670_v21 = vmax.f32 %v1612_v24, 0.0  ;;  %v1669_v58 = vmax.f32 %v1453_v18, 0.0  ;;  %4901 = vmatpush1.bf16.msra.mxu1 %v4900_v47  ;;  %v1456_v52 = vpop.f32.mrb[72].mxu0 }
 0x280   :  { %v1578_v42 = vadd.f32 %v6426_v44, %v6297_v0  ;;  %v1732_v36 = vmul.f32 %v1668_v43, %v6469_v55  ;;  %v1671_v35 = vmax.f32 %v1614_v48, 0.0  ;;  %v1457_v12 = vadd.f32 %v1456_v52, %v6231_v34  ;;  %v1617_v8 = vpop.f32.mrb[72].mxu1  ;;  %v1458_v1 = vpop.f32.mrb[73].mxu0 }
 0x281   :  { %v1734_v33 = vmul.f32 %v1670_v21, %v6473_v16  ;;  %v1733_v3 = vmul.f32 %v1669_v58, %v6476_v4  ;;  %v1618_v54 = vadd.f32 %v1617_v8, %v6231_v34  ;;  %v1459_v30 = vadd.f32 %v1458_v1, %v6231_v34  ;;  %v1619_v5 = vpop.f32.mrb[73].mxu1 }
 0x282   :  { %v4888_v28 = vpack.c.bf16 %v1732_v36, %v1724_v57  ;;  %v1735_v37 = vmul.f32 %v1671_v35, %v6479_v56  ;;  %v1676_v0 = vmax.f32 %v1457_v12, 0.0  ;;  %v1620_v44 = vadd.f32 %v1619_v5, %v6231_v34 }
 0x283   :  { %v4904_v55 = vpack.c.bf16 %v1734_v33, %v1726_v39  ;;  %v1678_v38 = vmax.f32 %v1618_v54, 0.0  ;;  %v1677_v27 = vmax.f32 %v1459_v30, 0.0  ;;  %v1462_v47 = vpop.f32.mrb[74].mxu0  ;;  %v4886_v19 = vpack.c.bf16 %v1733_v3, %v1725_v9 }
 0x284   :  { %v1740_v16 = vmul.f32 %v1676_v0, %v6486_v10  ;;  %v1679_v59 = vmax.f32 %v1620_v44, 0.0  ;;  %v1463_v4 = vadd.f32 %v1462_v47, %v6276_v62  ;;  %v1623_v2 = vpop.f32.mrb[74].mxu1  ;;  %v1464_v14 = vpop.f32.mrb[75].mxu0  ;;  %v4902_v60 = vpack.c.bf16 %v1735_v37, %v1727_v32 }
 0x285   :  { %v1742_v57 = vmul.f32 %v1678_v38, %v6491_v6  ;;  %v1741_v56 = vmul.f32 %v1677_v27, %v6495_v11  ;;  %v1624_v61 = vadd.f32 %v1623_v2, %v6276_v62  ;;  %v1465_v34 = vadd.f32 %v1464_v14, %v6276_v62  ;;  %v1625_v15 = vpop.f32.mrb[75].mxu1  ;;  %4887 = vmatprep.subr.bf16.mxu0 %v4886_v19 }
 0x286   :  { %v1421_v46 = vadd.f32 %v6433_v49, %v6331_v26  ;;  %v1743_v10 = vmul.f32 %v1679_v59, %v6499_v51  ;;  %v1684_v39 = vmax.f32 %v1463_v4, 0.0  ;;  %v1626_v9 = vadd.f32 %v1625_v15, %v6276_v62  ;;  %4903 = vmatprep.subr.bf16.mxu1 %v4902_v60  ;;  %4889 = vmatpush1.bf16.msra.mxu0 %v4888_v28 }
 0x287   :  { %v1582_v6 = vadd.f32 %v6436_v63, %v6331_v26  ;;  %v1423_v11 = vadd.f32 %v6438_v22, %v6331_v26  ;;  %v1686_v24 = vmax.f32 %v1624_v61, 0.0  ;;  %v1685_v18 = vmax.f32 %v1465_v34, 0.0  ;;  %4905 = vmatpush1.bf16.msra.mxu1 %v4904_v55  ;;  %v1468_v53 = vpop.f32.mrb[76].mxu0 }
 0x288   :  { %v1584_v49 = vadd.f32 %v6440_v23, %v6331_v26  ;;  %v1748_v32 = vmul.f32 %v1684_v39, %v1415_v13  ;;  %v1687_v51 = vmax.f32 %v1626_v9, 0.0  ;;  %v1469_v43 = vadd.f32 %v1468_v53, %v6309_v40  ;;  %v1629_v62 = vpop.f32.mrb[76].mxu1  ;;  %v1470_v48 = vpop.f32.mrb[77].mxu0 }
 0x289   :  { %v1750_v21 = vmul.f32 %v1686_v24, %v1576_v41  ;;  %v1749_v58 = vmul.f32 %v1685_v18, %v1417_v7  ;;  %v1630_v63 = vadd.f32 %v1629_v62, %v6309_v40  ;;  %v1471_v52 = vadd.f32 %v1470_v48, %v6309_v40  ;;  %v1631_v22 = vpop.f32.mrb[77].mxu1  ;;  %v8393_v24 = vld [vmem:[#allocation5_spill] sm:$0xff] }
 0x28a   :  { %v4892_v36 = vpack.c.bf16 %v1748_v32, %v1740_v16  ;;  %v1751_v35 = vmul.f32 %v1687_v51, %v1578_v42  ;;  %v1692_v12 = vmax.f32 %v1469_v43, 0.0  ;;  %v1632_v8 = vadd.f32 %v1631_v22, %v6309_v40  ;;  %v8395_v32 = vld [vmem:[#allocation6_spill] sm:$0xff]  ;;  %v8397_v43 = vld [vmem:[#allocation7_spill] sm:$0xff] }
 0x28b   :  { %v4908_v1 = vpack.c.bf16 %v1750_v21, %v1742_v57  ;;  %v1694_v26 = vmax.f32 %v1630_v63, 0.0  ;;  %v1693_v23 = vmax.f32 %v1471_v52, 0.0  ;;  %v1474_v13 = vpop.f32.mrb[78].mxu0  ;;  %v4890_v33 = vpack.c.bf16 %v1749_v58, %v1741_v56  ;;  %v8399_v21 = vld [vmem:[#allocation8_spill] sm:$0xff] }
 0x28c   :  { %v1756_v3 = vmul.f32 %v1692_v12, %v1421_v46  ;;  %v1695_v54 = vmax.f32 %v1632_v8, 0.0  ;;  %v1475_v41 = vadd.f32 %v1474_v13, %v6341_v17  ;;  %v1635_v7 = vpop.f32.mrb[78].mxu1  ;;  %v1476_v30 = vpop.f32.mrb[79].mxu0  ;;  %v4906_v5 = vpack.c.bf16 %v1751_v35, %v1743_v10 }
 0x28d   :  { %v1758_v28 = vmul.f32 %v1694_v26, %v1582_v6  ;;  %v1757_v37 = vmul.f32 %v1693_v23, %v1423_v11  ;;  %v1636_v0 = vadd.f32 %v1635_v7, %v6341_v17  ;;  %v1477_v42 = vadd.f32 %v1476_v30, %v6341_v17  ;;  %v1637_v44 = vpop.f32.mrb[79].mxu1  ;;  %4891 = vmatprep.subr.bf16.mxu0 %v4890_v33  ;;  %v8401_v26 = vld [vmem:[#allocation9_spill] sm:$0xff]  ;;  %v8405_v30 = vld [vmem:[#allocation11_spill] sm:$0xff] }
 0x28e   :  { %v1427_v40 = vadd.f32 %v6442_v29, %v6355_v45  ;;  %v1759_v55 = vmul.f32 %v1695_v54, %v1584_v49  ;;  %v1700_v38 = vmax.f32 %v1475_v41, 0.0  ;;  %v1638_v27 = vadd.f32 %v1637_v44, %v6341_v17  ;;  %4907 = vmatprep.subr.bf16.mxu1 %v4906_v5  ;;  %4893 = vmatpush1.bf16.msra.mxu0 %v4892_v36  ;;  %v6590_v49 = vpop.permute.xlu1 %1783  ;;  %v8403_v41 = vld [vmem:[#allocation10_spill] sm:$0xff] }
 0x28f   :  { %v1588_v47 = vadd.f32 %v6444_v50, %v6355_v45  ;;  %v1429_v19 = vadd.f32 %v6446_v25, %v6355_v45  ;;  %v1702_v16 = vmax.f32 %v1636_v0, 0.0  ;;  %v1701_v59 = vmax.f32 %v1477_v42, 0.0  ;;  %4909 = vmatpush1.bf16.msra.mxu1 %v4908_v1  ;;  %v8390_v50 = vld [vmem:[#allocation39_spill] sm:$0xff]  ;;  %v8391_v25 = vld [vmem:[#allocation40_spill] sm:$0xff] }
 0x290   :  { %v1590_v4 = vadd.f32 %v6448_v31, %v6355_v45  ;;  %v1764_v2 = vmul.f32 %v1700_v38, %v1427_v40  ;;  %v1703_v29 = vmax.f32 %v1638_v27, 0.0  ;;  %v8389_v45 = vmov 0.0   ;;  %v6581_v31 = vpop.permute.xlu0 %1778  ;;  %v8407_v42 = vld [vmem:[#allocation12_spill] sm:$0xff] }
 0x291   :  { %v1766_v14 = vmul.f32 %v1702_v16, %v1588_v47  ;;  %v1765_v60 = vmul.f32 %v1701_v59, %v1429_v19 }
 0x292   :  { %v4896_v57 = vpack.c.bf16 %v1764_v2, %v1756_v3  ;;  %v1767_v17 = vmul.f32 %v1703_v29, %v1590_v4 }
 0x293   :  { %v4912_v56 = vpack.c.bf16 %v1766_v14, %v1758_v28  ;;  %v4894_v61 = vpack.c.bf16 %v1765_v60, %v1757_v37  ;;  %v8409_v14 = vld [vmem:[#allocation13_spill] sm:$0xff] }
 0x294   :  { %v4910_v34 = vpack.c.bf16 %v1767_v17, %v1759_v55  ;;  %v6612_v33 = vpop.permute.xlu0 %1788 }
 0x295   :  { %4895 = vmatprep.subr.bf16.mxu0 %v4894_v61 }
 0x296   :  { %4911 = vmatprep.subr.bf16.mxu1 %v4910_v34  ;;  %4897 = vmatpush1.bf16.msra.mxu0 %v4896_v57  ;;  %v6647_v57 = vpop.permute.xlu1 %1793 }
 0x297   :  { %4913 = vmatpush1.bf16.msra.mxu1 %v4912_v56 }
 0x299   :  { %4710 = vmatmul.mubr.msk.f32.vlgmr.msra.gmra.mrb[88].mxu0 %vm1796_vm2, %v6377_v20 }
 0x29a   :  { %4714 = vmatmul.mubr.msk.f32.vlgmr.msra.gmra.mrb[88].mxu1 %vm1796_vm2, %v6377_v20  ;;  %2057 = vmatprep.mubr.f32.mxu0 %v8389_v45  ;;  %v8392_v20 = vld [vmem:[#allocation41_spill] sm:$0xff] }
 0x29b   :  { %2146 = vmatprep.mubr.f32.mxu1 %v8389_v45 }
 0x29d   :  { %4711 = vmatmul.mubr.msk.f32.gmra.mrb[90].mxu0 %vm1796_vm2, %v8390_v50 }
 0x29e   :  { %4715 = vmatmul.mubr.msk.f32.gmra.mrb[90].mxu1 %vm1796_vm2, %v8390_v50  ;;  %2063 = vmatprep.mubr.f32.mxu0 %v8389_v45 }
 0x29f   :  { %2152 = vmatprep.mubr.f32.mxu1 %v8389_v45 }
 0x2a1   :  { %4712 = vmatmul.mubr.msk.f32.gmra.mrb[92].mxu0 %vm1796_vm2, %v8391_v25 }
 0x2a2   :  { %4716 = vmatmul.mubr.msk.f32.gmra.mrb[92].mxu1 %vm1796_vm2, %v8391_v25  ;;  %2069 = vmatprep.mubr.f32.mxu0 %v8389_v45 }
 0x2a3   :  { %2158 = vmatprep.mubr.f32.mxu1 %v8389_v45 }
 0x2a5   :  { %4713 = vmatmul.mubr.msk.f32.gmra.mrb[94].mxu0 %vm1796_vm2, %v8392_v20 }
 0x2a6   :  { %4717 = vmatmul.mubr.msk.f32.gmra.mrb[94].mxu1 %vm1796_vm2, %v8392_v20  ;;  %2830 = vmatprep.mubr.f32.mxu0 %v8389_v45 }
 0x2a7   :  { %2991 = vmatprep.mubr.f32.mxu1 %v8389_v45 }
 0x32c   :  { %v1875_v15 = vpop.f32.mrb[80].mxu0 }
 0x32d   :  { %v1876_v46 = vadd.f32 %v1875_v15, %v6581_v31  ;;  %v1964_v10 = vpop.f32.mrb[80].mxu1  ;;  %v1877_v39 = vpop.f32.mrb[81].mxu0 }
 0x32e   :  { %v1965_v9 = vadd.f32 %v1964_v10, %v6581_v31  ;;  %v1878_v6 = vadd.f32 %v1877_v39, %v6581_v31  ;;  %v1966_v11 = vpop.f32.mrb[81].mxu1 }
 0x32f   :  { %v6587_v18 = vadd.f32 %v1876_v46, %v8393_v24  ;;  %v1967_v53 = vadd.f32 %v1966_v11, %v6581_v31  ;;  %v8413_v11 = vld [vmem:[#allocation15_spill] sm:$0xff] }
 0x330   :  { %v6593_v51 = vadd.f32 %v1965_v9, %v8395_v32  ;;  %v6596_v62 = vadd.f32 %v1878_v6, %v8397_v43  ;;  %v1881_v48 = vpop.f32.mrb[82].mxu0  ;;  %v8411_v9 = vld [vmem:[#allocation14_spill] sm:$0xff] }
 0x331   :  { %8394 = vst [vmem:[#allocation37_spill] sm:$0xff] %v6587_v18  ;;  %v6599_v58 = vadd.f32 %v1967_v53, %v8399_v21  ;;  %v1882_v63 = vadd.f32 %v1881_v48, %v6590_v49  ;;  %v1970_v52 = vpop.f32.mrb[82].mxu1  ;;  %v1883_v22 = vpop.f32.mrb[83].mxu0  ;;  %v2285_v8 = vmul.f32 %v6587_v18, %v6587_v18  ;;  %v8415_v21 = vld [vmem:[#allocation16_spill] sm:$0xff] }
 0x332   :  { %8396 = vst [vmem:[#allocation38_spill] sm:$0xff] %v6593_v51  ;;  %8398 = vst [vmem:[#allocation39_spill] sm:$0xff] %v6596_v62  ;;  %v1971_v36 = vadd.f32 %v1970_v52, %v6590_v49  ;;  %v1884_v35 = vadd.f32 %v1883_v22, %v6590_v49  ;;  %v1972_v12 = vpop.f32.mrb[83].mxu1  ;;  %v2287_v1 = vmul.f32 %v6593_v51, %v6593_v51 }
 0x333   :  { %8400 = vst [vmem:[#allocation40_spill] sm:$0xff] %v6599_v58  ;;  %v6609_v23 = vadd.f32 %v1882_v63, %v8401_v26  ;;  %v1973_v13 = vadd.f32 %v1972_v12, %v6590_v49  ;;  %v2286_v3 = vmul.f32 %v6596_v62, %v6596_v62  ;;  %v2288_v54 = vmul.f32 %v6599_v58, %v6599_v58 }
 0x334   :  { %v6619_v7 = vadd.f32 %v1971_v36, %v8403_v41  ;;  %v6622_v5 = vadd.f32 %v1884_v35, %v8405_v30  ;;  %v1887_v28 = vpop.f32.mrb[84].mxu0 }
 0x335   :  { %8402 = vst [vmem:[#allocation41_spill] sm:$0xff] %v6609_v23  ;;  %v2205_v37 = vadd.f32 %v6609_v23, %v6587_v18  ;;  %v2293_v0 = vmul.f32 %v6609_v23, %v6609_v23  ;;  %v6629_v44 = vadd.f32 %v1973_v13, %v8407_v42  ;;  %v1888_v40 = vadd.f32 %v1887_v28, %v6612_v33  ;;  %v1976_v55 = vpop.f32.mrb[84].mxu1  ;;  %v1889_v38 = vpop.f32.mrb[85].mxu0  ;;  %v8417_v13 = vld [vmem:[#allocation17_spill] sm:$0xff]  ;;  %v8423_v42 = vld [vmem:[#allocation20_spill] sm:$0xff] }
 0x336   :  { %8404 = vst [vmem:[#allocation5_spill] sm:$0xff] %v6619_v7  ;;  %8406 = vst [vmem:[#allocation6_spill] sm:$0xff] %v6622_v5  ;;  %v2223_v27 = vadd.f32 %v6619_v7, %v6593_v51  ;;  %v2295_v47 = vmul.f32 %v6619_v7, %v6619_v7  ;;  %v2214_v19 = vadd.f32 %v6622_v5, %v6596_v62  ;;  %v1978_v59 = vpop.f32.mrb[85].mxu1 }
 0x337   :  { %8408 = vst [vmem:[#allocation7_spill] sm:$0xff] %v6629_v44  ;;  %v2294_v16 = vmul.f32 %v6622_v5, %v6622_v5  ;;  %v2317_v4 = vadd.f32 %v2293_v0, %v2285_v8  ;;  %v2232_v2 = vadd.f32 %v6629_v44, %v6599_v58  ;;  %v2296_v29 = vmul.f32 %v6629_v44, %v6629_v44 }
 0x338   :  { %v6645_v60 = vadd.f32 %v1888_v40, %v8409_v14  ;;  %v2335_v17 = vadd.f32 %v2295_v47, %v2287_v1  ;;  %v1977_v61 = vadd.f32 %v1976_v55, %v6612_v33  ;;  %v1890_v34 = vadd.f32 %v1889_v38, %v6612_v33  ;;  %v1893_v50 = vpop.f32.mrb[86].mxu0 }
 0x339   :  { %v2326_v56 = vadd.f32 %v2294_v16, %v2286_v3  ;;  %v2344_v25 = vadd.f32 %v2296_v29, %v2288_v54  ;;  %v1979_v46 = vadd.f32 %v1978_v59, %v6612_v33  ;;  %v1982_v10 = vpop.f32.mrb[86].mxu1  ;;  %v1895_v39 = vpop.f32.mrb[87].mxu0  ;;  %v1894_v53 = vadd.f32 %v1893_v50, %v6647_v57  ;;  %v8419_v54 = vld [vmem:[#allocation18_spill] sm:$0xff] }
 0x33a   :  { %8410 = vst [vmem:[#allocation8_spill] sm:$0xff] %v6645_v60  ;;  %v2206_v20 = vadd.f32 %v2205_v37, %v6645_v60  ;;  %v2301_v15 = vmul.f32 %v6645_v60, %v6645_v60  ;;  %v6656_v6 = vadd.f32 %v1977_v61, %v8411_v9  ;;  %v6659_v24 = vadd.f32 %v1890_v34, %v8413_v11  ;;  %v1984_v43 = vpop.f32.mrb[87].mxu1  ;;  %v8421_v37 = vld [vmem:[#allocation19_spill] sm:$0xff] }
 0x33b   :  { %v1983_v32 = vadd.f32 %v1982_v10, %v6647_v57  ;;  %v6664_v63 = vadd.f32 %v1979_v46, %v8415_v21  ;;  %v1896_v52 = vadd.f32 %v1895_v39, %v6647_v57  ;;  %v1985_v22 = vadd.f32 %v1984_v43, %v6647_v57 }
 0x33c   :  { %8412 = vst [vmem:[#allocation9_spill] sm:$0xff] %v6656_v6  ;;  %8414 = vst [vmem:[#allocation10_spill] sm:$0xff] %v6659_v24  ;;  %v2318_v48 = vadd.f32 %v2317_v4, %v2301_v15  ;;  %v2224_v36 = vadd.f32 %v2223_v27, %v6656_v6  ;;  %v2303_v35 = vmul.f32 %v6656_v6, %v6656_v6 }
 0x33d   :  { %8416 = vst [vmem:[#allocation11_spill] sm:$0xff] %v6664_v63  ;;  %v2215_v12 = vadd.f32 %v2214_v19, %v6659_v24  ;;  %v2302_v8 = vmul.f32 %v6659_v24, %v6659_v24  ;;  %v2233_v1 = vadd.f32 %v2232_v2, %v6664_v63  ;;  %v2304_v26 = vmul.f32 %v6664_v63, %v6664_v63 }
 0x33e   :  { %v6678_v3 = vadd.f32 %v1894_v53, %v8417_v13  ;;  %v6681_v41 = vadd.f32 %v1983_v32, %v8419_v54  ;;  %v2336_v30 = vadd.f32 %v2335_v17, %v2303_v35  ;;  %v6684_v0 = vadd.f32 %v1896_v52, %v8421_v37 }
 0x33f   :  { %v2327_v28 = vadd.f32 %v2326_v56, %v2302_v8  ;;  %v6687_v40 = vadd.f32 %v1985_v22, %v8423_v42  ;;  %v2345_v55 = vadd.f32 %v2344_v25, %v2304_v26 }
 0x340   :  { %8418 = vst [vmem:[#allocation12_spill] sm:$0xff] %v6678_v3  ;;  %8420 = vst [vmem:[#allocation13_spill] sm:$0xff] %v6681_v41  ;;  %v2207_v38 = vadd.f32 %v2206_v20, %v6678_v3  ;;  %v2309_v27 = vmul.f32 %v6678_v3, %v6678_v3  ;;  %v2225_v47 = vadd.f32 %v2224_v36, %v6681_v41 }
 0x341   :  { %8422 = vst [vmem:[#allocation14_spill] sm:$0xff] %v6684_v0  ;;  %8424 = vst [vmem:[#allocation15_spill] sm:$0xff] %v6687_v40  ;;  %v2311_v19 = vmul.f32 %v6681_v41, %v6681_v41  ;;  %v2216_v16 = vadd.f32 %v2215_v12, %v6684_v0  ;;  %v2310_v59 = vmul.f32 %v6684_v0, %v6684_v0 }
 0x342   :  { %v2234_v4 = vadd.f32 %v2233_v1, %v6687_v40  ;;  %v2208_v2 = vrot.slane %v2207_v38, 4  ;;  %v2319_v29 = vadd.f32 %v2318_v48, %v2309_v27  ;;  %v2226_v14 = vrot.slane %v2225_v47, 4 }
 0x343   :  { %v2312_v17 = vmul.f32 %v6687_v40, %v6687_v40  ;;  %v2337_v56 = vadd.f32 %v2336_v30, %v2311_v19  ;;  %v2217_v61 = vrot.slane %v2216_v16, 4  ;;  %v2328_v34 = vadd.f32 %v2327_v28, %v2310_v59 }
 0x344   :  { %v2235_v50 = vrot.slane %v2234_v4, 4  ;;  %v2209_v25 = vadd.f32 %v2208_v2, %v2207_v38  ;;  %v2320_v20 = vrot.slane %v2319_v29, 4  ;;  %v2227_v15 = vadd.f32 %v2226_v14, %v2225_v47 }
 0x345   :  { %v2346_v46 = vadd.f32 %v2345_v55, %v2312_v17  ;;  %v2338_v10 = vrot.slane %v2337_v56, 4  ;;  %v2218_v39 = vadd.f32 %v2217_v61, %v2216_v16  ;;  %v2329_v9 = vrot.slane %v2328_v34, 4 }
 0x346   :  { %v2236_v11 = vadd.f32 %v2235_v50, %v2234_v4  ;;  %v2210_v53 = vrot.slane %v2209_v25, 2  ;;  %v2321_v32 = vadd.f32 %v2320_v20, %v2319_v29  ;;  %v2228_v43 = vrot.slane %v2227_v15, 2 }
 0x347   :  { %v2347_v48 = vrot.slane %v2346_v46, 4  ;;  %v2339_v21 = vadd.f32 %v2338_v10, %v2337_v56  ;;  %v2219_v52 = vrot.slane %v2218_v39, 2  ;;  %v2330_v22 = vadd.f32 %v2329_v9, %v2328_v34 }
 0x348   :  { %v2237_v36 = vrot.slane %v2236_v11, 2  ;;  %v2211_v35 = vadd.f32 %v2210_v53, %v2209_v25  ;;  %v2322_v12 = vrot.slane %v2321_v32, 2  ;;  %v2229_v8 = vadd.f32 %v2228_v43, %v2227_v15 }
 0x349   :  { %v2348_v1 = vadd.f32 %v2347_v48, %v2346_v46  ;;  %v2340_v26 = vrot.slane %v2339_v21, 2  ;;  %v2220_v13 = vadd.f32 %v2219_v52, %v2218_v39  ;;  %v2331_v54 = vrot.slane %v2330_v22, 2 }
 0x34a   :  { %v2238_v30 = vadd.f32 %v2237_v36, %v2236_v11  ;;  %v2212_v28 = vrot.slane %v2211_v35, 1  ;;  %v2323_v37 = vadd.f32 %v2322_v12, %v2321_v32  ;;  %v2230_v42 = vrot.slane %v2229_v8, 1 }
 0x34b   :  { %v2349_v55 = vrot.slane %v2348_v1, 2  ;;  %v2341_v38 = vadd.f32 %v2340_v26, %v2339_v21  ;;  %v2221_v27 = vrot.slane %v2220_v13, 1  ;;  %v2332_v47 = vadd.f32 %v2331_v54, %v2330_v22 }
 0x34c   :  { %v2239_v19 = vrot.slane %v2238_v30, 1  ;;  %v2213_v16 = vadd.f32 %v2212_v28, %v2211_v35  ;;  %v2324_v59 = vrot.slane %v2323_v37, 1  ;;  %v2231_v4 = vadd.f32 %v2230_v42, %v2229_v8  ;;  %v6711_v42 = vpop.permute.xlu0 %2503 }
 0x34d   :  { %v2350_v2 = vadd.f32 %v2349_v55, %v2348_v1  ;;  %v2342_v29 = vrot.slane %v2341_v38, 1  ;;  %v2222_v14 = vadd.f32 %v2221_v27, %v2220_v13  ;;  %v2333_v17 = vrot.slane %v2332_v47, 1 }
 0x34e   :  { %v2240_v56 = vadd.f32 %v2239_v19, %v2238_v30  ;;  %v2277_v61 = vmul.f32 0.03125, %v2213_v16  ;;  %v2325_v34 = vadd.f32 %v2324_v59, %v2323_v37  ;;  %v2279_v50 = vmul.f32 0.03125, %v2231_v4  ;;  %v6709_v37 = vpop.permute.xlu1 %2508 }
 0x34f   :  { %v2351_v25 = vrot.slane %v2350_v2, 1  ;;  %v2343_v20 = vadd.f32 %v2342_v29, %v2341_v38  ;;  %v6701_v15 = vmul.f32 0.03125, %v2222_v14  ;;  %v2334_v46 = vadd.f32 %v2333_v17, %v2332_v47 }
 0x350   :  { %v6703_v10 = vmul.f32 0.03125, %v2240_v56  ;;  %v2389_v39 = vmul.f32 0.03125, %v2325_v34  ;;  %v2397_v9 = vmul.f32 %v2277_v61, %v2277_v61  ;;  %v2399_v11 = vmul.f32 %v2279_v50, %v2279_v50  ;;  %v6715_v27 = vpop.permute.xlu0 %2555 }
 0x351   :  { %v2391_v53 = vmul.f32 0.03125, %v2343_v20  ;;  %v2390_v32 = vmul.f32 0.03125, %v2334_v46  ;;  %v2398_v43 = vmul.f32 %v6701_v15, %v6701_v15  ;;  %v2352_v21 = vadd.f32 %v2351_v25, %v2350_v2 }
 0x352   :  { %v2405_v48 = vsub.f32 %v2389_v39, %v2397_v9  ;;  %v2400_v52 = vmul.f32 %v6703_v10, %v6703_v10  ;;  %v6713_v38 = vpop.permute.xlu1 %2560  ;;  %v2445_v47 = vsub.f32 %v6678_v3, %v2277_v61  ;;  %v2447_v19 = vsub.f32 %v6681_v41, %v2279_v50 }
 0x353   :  { %v2407_v22 = vsub.f32 %v2391_v53, %v2399_v11  ;;  %v2406_v36 = vsub.f32 %v2390_v32, %v2398_v43  ;;  %v2392_v12 = vmul.f32 0.03125, %v2352_v21  ;;  %v2446_v16 = vsub.f32 %v6684_v0, %v6701_v15 }
 0x354   :  { %v2413_v35 = vmax.f32 %v2405_v48, 0.0  ;;  %v2448_v59 = vsub.f32 %v6687_v40, %v6703_v10  ;;  %v2422_v4 = vsub.f32 %v6596_v62, %v6701_v15  ;;  %v2430_v2 = vsub.f32 %v6622_v5, %v6701_v15 }
 0x355   :  { %v2415_v8 = vmax.f32 %v2407_v22, 0.0  ;;  %v2414_v1 = vmax.f32 %v2406_v36, 0.0  ;;  %v2408_v13 = vsub.f32 %v2392_v12, %v2400_v52  ;;  %v2424_v29 = vsub.f32 %v6599_v58, %v6703_v10 }
 0x356   :  { %v2453_v26 = vadd.f32 1e-05, %v2413_v35  ;;  %v2432_v14 = vsub.f32 %v6629_v44, %v6703_v10  ;;  %v2421_v17 = vsub.f32 %v6587_v18, %v2277_v61  ;;  %v2429_v56 = vsub.f32 %v6609_v23, %v2277_v61  ;;  %v6743_v12 = vpop.permute.xlu1 %2518 }
 0x357   :  { %v2455_v54 = vadd.f32 1e-05, %v2415_v8  ;;  %v2454_v30 = vadd.f32 1e-05, %v2414_v1  ;;  %v2416_v28 = vmax.f32 %v2408_v13, 0.0  ;;  %v2423_v34 = vsub.f32 %v6593_v51, %v2279_v50  ;;  %v6745_v8 = vpop.permute.xlu0 %2513 }
 0x358   :  { %5032 = vrsqrt.f32 %v2453_v26  ;;  %v2437_v25 = vsub.f32 %v6645_v60, %v2277_v61  ;;  %v2431_v46 = vsub.f32 %v6619_v7, %v2279_v50  ;;  %v2438_v39 = vsub.f32 %v6659_v24, %v6701_v15 }
 0x359   :  { %5034 = vrsqrt.f32 %v2455_v54  ;;  %v2456_v55 = vadd.f32 1e-05, %v2416_v28  ;;  %v2440_v9 = vsub.f32 %v6664_v63, %v6703_v10  ;;  %v2439_v11 = vsub.f32 %v6656_v6, %v2279_v50 }
 0x35a   :  { %5036 = vrsqrt.f32 %v2454_v30 }
 0x35b   :  { %5038 = vrsqrt.f32 %v2456_v55 }
 0x362   :  { %v5033_v20 = vpop.eup %5032 }
 0x363   :  { %v5035_v53 = vpop.eup %5034  ;;  %v2493_v32 = vmul.f32 %v5033_v20, %v2445_v47  ;;  %v2469_v43 = vmul.f32 %v5033_v20, %v2421_v17  ;;  %v2477_v48 = vmul.f32 %v5033_v20, %v2429_v56  ;;  %v2485_v21 = vmul.f32 %v5033_v20, %v2437_v25 }
 0x364   :  { %v5037_v52 = vpop.eup %5036  ;;  %v6741_v22 = vmul.f32 %v5035_v53, %v2447_v19  ;;  %v2471_v61 = vmul.f32 %v5035_v53, %v2423_v34  ;;  %v2479_v36 = vmul.f32 %v5035_v53, %v2431_v46  ;;  %v2487_v35 = vmul.f32 %v5035_v53, %v2439_v11  ;;  %v6763_v53 = vpop.permute.xlu1 %2570 }
 0x365   :  { %v2470_v15 = vmul.f32 %v5037_v52, %v2422_v4  ;;  %v2478_v1 = vmul.f32 %v5037_v52, %v2430_v2  ;;  %v2521_v10 = vmul.f32 %v6711_v42, %v2469_v43  ;;  %v2529_v50 = vmul.f32 %v6709_v37, %v2477_v48  ;;  %v5039_v26 = vpop.eup %5038  ;;  %v6765_v43 = vpop.permute.xlu0 %2565 }
 0x366   :  { %v2523_v13 = vmul.f32 %v6711_v42, %v2471_v61  ;;  %v2531_v54 = vmul.f32 %v6709_v37, %v2479_v36  ;;  %v2486_v30 = vmul.f32 %v5037_v52, %v2438_v39  ;;  %v2494_v28 = vmul.f32 %v5037_v52, %v2446_v16 }
 0x367   :  { %v2522_v55 = vmul.f32 %v6711_v42, %v2470_v15  ;;  %v2530_v47 = vmul.f32 %v6709_v37, %v2478_v1  ;;  %v2472_v19 = vmul.f32 %v5039_v26, %v2424_v29  ;;  %v2480_v17 = vmul.f32 %v5039_v26, %v2432_v14 }
 0x368   :  { %v2573_v4 = vadd.f32 %v6715_v27, %v2521_v10  ;;  %v2581_v2 = vadd.f32 %v6713_v38, %v2529_v50  ;;  %v2575_v56 = vadd.f32 %v6715_v27, %v2523_v13  ;;  %v2583_v34 = vadd.f32 %v6713_v38, %v2531_v54 }
 0x369   :  { %v2574_v25 = vadd.f32 %v6715_v27, %v2522_v55  ;;  %v2582_v20 = vadd.f32 %v6713_v38, %v2530_v47  ;;  %v2524_v16 = vmul.f32 %v6711_v42, %v2472_v19  ;;  %v2532_v46 = vmul.f32 %v6709_v37, %v2480_v17 }
 0x36a   :  { %v4916_v39 = vpack.c.bf16 %v2581_v2, %v2573_v4  ;;  %v4924_v11 = vpack.c.bf16 %v2583_v34, %v2575_v56  ;;  %v2538_v29 = vmul.f32 %v6745_v8, %v2486_v30  ;;  %v2546_v14 = vmul.f32 %v6743_v12, %v2494_v28  ;;  %v8425_v34 = vld [vmem:[#allocation21_spill] sm:$0xff] }
 0x36b   :  { %v4914_v48 = vpack.c.bf16 %v2582_v20, %v2574_v25  ;;  %v2576_v52 = vadd.f32 %v6715_v27, %v2524_v16  ;;  %v2584_v61 = vadd.f32 %v6713_v38, %v2532_v46  ;;  %v2488_v36 = vmul.f32 %v5039_v26, %v2440_v9  ;;  %v8427_v16 = vld [vmem:[#allocation22_spill] sm:$0xff] }
 0x36c   :  { %v2590_v15 = vadd.f32 %v6765_v43, %v2538_v29  ;;  %v2598_v1 = vadd.f32 %v6763_v53, %v2546_v14  ;;  %v2496_v10 = vmul.f32 %v5039_v26, %v2448_v59  ;;  %v2537_v50 = vmul.f32 %v6745_v8, %v2485_v21  ;;  %v2053_v30 = vpop.f32.mrb[88].mxu0 }
 0x36d   :  { %4915 = vmatprep.subr.bf16.mxu0 %v4914_v48  ;;  %v4922_v13 = vpack.c.bf16 %v2584_v61, %v2576_v52  ;;  %v2540_v54 = vmul.f32 %v6745_v8, %v2488_v36  ;;  %v2545_v28 = vmul.f32 %v6743_v12, %v2493_v32  ;;  %v2539_v55 = vmul.f32 %v6745_v8, %v2487_v35  ;;  %v2142_v17 = vpop.f32.mrb[88].mxu1  ;;  %v2055_v4 = vpop.f32.mrb[89].mxu0 }
 0x36e   :  { %4917 = vmatpush1.bf16.msra.mxu0 %v4916_v39  ;;  %v4918_v47 = vpack.c.bf16 %v2598_v1, %v2590_v15  ;;  %v2548_v9 = vmul.f32 %v6743_v12, %v2496_v10  ;;  %v2054_v19 = vadd.f32 %v2053_v30, %v6581_v31  ;;  %v2589_v59 = vadd.f32 %v6765_v43, %v2537_v50  ;;  %v2144_v32 = vpop.f32.mrb[89].mxu1  ;;  %v8429_v39 = vld [vmem:[#allocation23_spill] sm:$0xff]  ;;  %v8431_v1 = vld [vmem:[#allocation24_spill] sm:$0xff] }
 0x36f   :  { %4923 = vmatprep.subr.bf16.mxu1 %v4922_v13  ;;  %v2592_v21 = vadd.f32 %v6765_v43, %v2540_v54  ;;  %v2143_v26 = vadd.f32 %v2142_v17, %v6581_v31  ;;  %v2056_v2 = vadd.f32 %v2055_v4, %v6581_v31  ;;  %v2597_v35 = vadd.f32 %v6763_v53, %v2545_v28  ;;  %v6804_v54 = vld [vmem:[%s8229_s2 + $0x80] sm:$0xff]  ;;  %v8433_v17 = vld [vmem:[#allocation25_spill] sm:$0xff] }
 0x370   :  { %4925 = vmatpush1.bf16.msra.mxu1 %v4924_v11  ;;  %4919 = vmatprep.subr.bf16.mxu0 %v4918_v47  ;;  %v2600_v56 = vadd.f32 %v6763_v53, %v2548_v9  ;;  %v6784_v25 = vadd.f32 %v2054_v19, %v8425_v34  ;;  %v2145_v20 = vadd.f32 %v2144_v32, %v6581_v31  ;;  %v2059_v52 = vpop.f32.mrb[90].mxu0 }
 0x371   :  { %v6788_v46 = vadd.f32 %v2143_v26, %v8427_v16  ;;  %v6791_v29 = vadd.f32 %v2056_v2, %v8429_v39  ;;  %v4920_v14 = vpack.c.bf16 %v2597_v35, %v2589_v59  ;;  %v2547_v48 = vmul.f32 %v6743_v12, %v6741_v22  ;;  %v2148_v36 = vpop.f32.mrb[90].mxu1  ;;  %v2061_v15 = vpop.f32.mrb[91].mxu0  ;;  %v8437_v2 = vld [vmem:[#allocation27_spill] sm:$0xff]  ;;  %v8439_v35 = vld [vmem:[#allocation28_spill] sm:$0xff] }
 0x372   :  { %8426 = vst [vmem:[#allocation16_spill] sm:$0xff] %v6784_v25  ;;  %v4926_v11 = vpack.c.bf16 %v2600_v56, %v2592_v21  ;;  %v2591_v61 = vadd.f32 %v6765_v43, %v2539_v55  ;;  %v6797_v10 = vadd.f32 %v2145_v20, %v8431_v1  ;;  %v2060_v50 = vadd.f32 %v2059_v52, %v6590_v49  ;;  %v2150_v13 = vpop.f32.mrb[91].mxu1  ;;  %v8435_v21 = vld [vmem:[#allocation26_spill] sm:$0xff] }
 0x373   :  { %8428 = vst [vmem:[#allocation17_spill] sm:$0xff] %v6788_v46  ;;  %8430 = vst [vmem:[#allocation18_spill] sm:$0xff] %v6791_v29  ;;  %4921 = vmatpush1.bf16.msra.mxu0 %v4920_v14  ;;  %v2599_v31 = vadd.f32 %v6763_v53, %v2547_v48  ;;  %v2289_v22 = vmul.f32 %v6784_v25, %v6784_v25  ;;  %v2149_v30 = vadd.f32 %v2148_v36, %v6590_v49 }
 0x374   :  { %8432 = vst [vmem:[#allocation19_spill] sm:$0xff] %v6797_v10  ;;  %4927 = vmatprep.subr.bf16.mxu1 %v4926_v11  ;;  %v2062_v28 = vadd.f32 %v2061_v15, %v6590_v49  ;;  %v2151_v55 = vadd.f32 %v2150_v13, %v6590_v49  ;;  %v2291_v47 = vmul.f32 %v6788_v46, %v6788_v46  ;;  %v2065_v59 = vpop.f32.mrb[92].mxu0 }
 0x375   :  { %v2290_v9 = vmul.f32 %v6791_v29, %v6791_v29  ;;  %v4928_v19 = vpack.c.bf16 %v2599_v31, %v2591_v61  ;;  %v6816_v4 = vadd.f32 %v2060_v50, %v8433_v17  ;;  %v6819_v26 = vadd.f32 %v2149_v30, %v8435_v21  ;;  %v2154_v34 = vpop.f32.mrb[92].mxu1  ;;  %v2067_v20 = vpop.f32.mrb[93].mxu0  ;;  %v8441_v50 = vld [vmem:[#allocation29_spill] sm:$0xff] }
 0x376   :  { %v6822_v32 = vadd.f32 %v2062_v28, %v8437_v2  ;;  %v6825_v56 = vadd.f32 %v2151_v55, %v8439_v35  ;;  %4734 = vmatmul.mubr.msk.f32.vlgmr.msra.gmra.mrb[96].mxu0 %vm947_vm1, %v6804_v54  ;;  %v2066_v49 = vadd.f32 %v2065_v59, %v6612_v33  ;;  %v2292_v16 = vmul.f32 %v6797_v10, %v6797_v10  ;;  %v2156_v48 = vpop.f32.mrb[93].mxu1  ;;  %v6854_v30 = vld [vmem:[%s8229_s2 + $0x88] sm:$0xff] }
 0x377   :  { %8434 = vst [vmem:[#allocation20_spill] sm:$0xff] %v6816_v4  ;;  %8436 = vst [vmem:[#allocation21_spill] sm:$0xff] %v6819_v26  ;;  %4929 = vmatpush1.bf16.msra.mxu1 %v4928_v19  ;;  %v2297_v39 = vmul.f32 %v6816_v4, %v6816_v4  ;;  %v2155_v14 = vadd.f32 %v2154_v34, %v6612_v33  ;;  %2836 = vmatprep.mubr.f32.mxu0 %v8389_v45 }
 0x378   :  { %8438 = vst [vmem:[#allocation22_spill] sm:$0xff] %v6822_v32  ;;  %8440 = vst [vmem:[#allocation23_spill] sm:$0xff] %v6825_v56  ;;  %v2241_v52 = vadd.f32 %v6816_v4, %v6784_v25  ;;  %v2259_v11 = vadd.f32 %v6819_v26, %v6788_v46  ;;  %v2299_v61 = vmul.f32 %v6819_v26, %v6819_v26  ;;  %v2071_v28 = vpop.f32.mrb[94].mxu0 }
 0x379   :  { %v2298_v36 = vmul.f32 %v6822_v32, %v6822_v32  ;;  %v2353_v15 = vadd.f32 %v2297_v39, %v2289_v22  ;;  %v2250_v1 = vadd.f32 %v6822_v32, %v6791_v29  ;;  %v2300_v31 = vmul.f32 %v6825_v56, %v6825_v56  ;;  %v8443_v22 = vld [vmem:[#allocation30_spill] sm:$0xff]  ;;  %v2160_v21 = vpop.f32.mrb[94].mxu1  ;;  %v2073_v2 = vpop.f32.mrb[95].mxu0 }
 0x37a   :  { %v6849_v13 = vadd.f32 %v2066_v49, %v8441_v50  ;;  %v2371_v55 = vadd.f32 %v2299_v61, %v2291_v47  ;;  %v2268_v19 = vadd.f32 %v6825_v56, %v6797_v10  ;;  %4750 = vmatmul.mubr.msk.f32.vlgmr.msra.gmra.mrb[96].mxu1 %vm947_vm1, %v6804_v54  ;;  %v6861_v17 = vadd.f32 %v2155_v14, %v8443_v22  ;;  %v2162_v39 = vpop.f32.mrb[95].mxu1  ;;  %v8445_v50 = vld [vmem:[#allocation31_spill] sm:$0xff] }
 0x37b   :  { %v2068_v59 = vadd.f32 %v2067_v20, %v6612_v33  ;;  %v2362_v35 = vadd.f32 %v2298_v36, %v2290_v9  ;;  %v2380_v49 = vadd.f32 %v2300_v31, %v2292_v16  ;;  %2997 = vmatprep.mubr.f32.mxu1 %v8389_v45  ;;  %v2157_v47 = vadd.f32 %v2156_v48, %v6612_v33  ;;  %v8447_v16 = vld [vmem:[#allocation32_spill] sm:$0xff] }
 0x37c   :  { %8442 = vst [vmem:[#allocation24_spill] sm:$0xff] %v6849_v13  ;;  %8444 = vst [vmem:[#allocation25_spill] sm:$0xff] %v6861_v17  ;;  %v2305_v34 = vmul.f32 %v6849_v13, %v6849_v13  ;;  %v2242_v61 = vadd.f32 %v2241_v52, %v6849_v13  ;;  %v2307_v14 = vmul.f32 %v6861_v17, %v6861_v17  ;;  %4735 = vmatmul.mubr.msk.f32.gmra.mrb[98].mxu0 %vm947_vm1, %v6854_v30  ;;  %v6887_v52 = vld [vmem:[%s8229_s2 + $0x90] sm:$0xff] }
 0x37d   :  { %v6872_v22 = vadd.f32 %v2068_v59, %v8445_v50  ;;  %v2072_v9 = vadd.f32 %v2071_v28, %v6647_v57  ;;  %v2260_v20 = vadd.f32 %v2259_v11, %v6861_v17  ;;  %v6879_v36 = vadd.f32 %v2157_v47, %v8447_v16  ;;  %2842 = vmatprep.mubr.f32.mxu0 %v8389_v45  ;;  %v8449_v11 = vld [vmem:[#allocation33_spill] sm:$0xff]  ;;  %v8451_v50 = vld [vmem:[#allocation34_spill] sm:$0xff] }
 0x37e   :  { %v2161_v33 = vadd.f32 %v2160_v21, %v6647_v57  ;;  %v2074_v48 = vadd.f32 %v2073_v2, %v6647_v57  ;;  %v2354_v31 = vadd.f32 %v2353_v15, %v2305_v34  ;;  %v2372_v59 = vadd.f32 %v2371_v55, %v2307_v14  ;;  %4751 = vmatmul.mubr.msk.f32.gmra.mrb[98].mxu1 %vm947_vm1, %v6854_v30  ;;  %v8453_v15 = vld [vmem:[#allocation35_spill] sm:$0xff] }
 0x37f   :  { %8446 = vst [vmem:[#allocation26_spill] sm:$0xff] %v6872_v22  ;;  %8448 = vst [vmem:[#allocation27_spill] sm:$0xff] %v6879_v36  ;;  %v2306_v28 = vmul.f32 %v6872_v22, %v6872_v22  ;;  %v6894_v47 = vadd.f32 %v2072_v9, %v8449_v11  ;;  %v2251_v21 = vadd.f32 %v2250_v1, %v6872_v22  ;;  %3003 = vmatprep.mubr.f32.mxu1 %v8389_v45 }
 0x380   :  { %v2308_v2 = vmul.f32 %v6879_v36, %v6879_v36  ;;  %v6900_v16 = vadd.f32 %v2161_v33, %v8451_v50  ;;  %v6904_v55 = vadd.f32 %v2074_v48, %v8453_v15  ;;  %v2269_v34 = vadd.f32 %v2268_v19, %v6879_v36  ;;  %4736 = vmatmul.mubr.msk.f32.gmra.mrb[100].mxu0 %vm947_vm1, %v6887_v52  ;;  %v6921_v19 = vld [vmem:[%s8229_s2 + $0x98] sm:$0xff] }
 0x381   :  { %8450 = vst [vmem:[#allocation28_spill] sm:$0xff] %v6894_v47  ;;  %v2243_v14 = vadd.f32 %v2242_v61, %v6894_v47  ;;  %v2313_v9 = vmul.f32 %v6894_v47, %v6894_v47  ;;  %v2163_v1 = vadd.f32 %v2162_v39, %v6647_v57  ;;  %v2363_v11 = vadd.f32 %v2362_v35, %v2306_v28  ;;  %v8455_v35 = vld [vmem:[#allocation36_spill] sm:$0xff] }
 0x382   :  { %8452 = vst [vmem:[#allocation29_spill] sm:$0xff] %v6900_v16  ;;  %8454 = vst [vmem:[#allocation30_spill] sm:$0xff] %v6904_v55  ;;  %v2261_v33 = vadd.f32 %v2260_v20, %v6900_v16  ;;  %v2315_v50 = vmul.f32 %v6900_v16, %v6900_v16  ;;  %v2252_v48 = vadd.f32 %v2251_v21, %v6904_v55  ;;  %2848 = vmatprep.mubr.f32.mxu0 %v8389_v45 }
 0x383   :  { %v2244_v61 = vrot.slane %v2243_v14, 4  ;;  %v2355_v57 = vadd.f32 %v2354_v31, %v2313_v9  ;;  %v2314_v39 = vmul.f32 %v6904_v55, %v6904_v55  ;;  %v6926_v28 = vadd.f32 %v2163_v1, %v8455_v35  ;;  %4752 = vmatmul.mubr.msk.f32.gmra.mrb[100].mxu1 %vm947_vm1, %v6887_v52 }
 0x384   :  { %v2381_v20 = vadd.f32 %v2380_v49, %v2308_v2  ;;  %v2262_v21 = vrot.slane %v2261_v33, 4  ;;  %v2373_v15 = vadd.f32 %v2372_v59, %v2315_v50  ;;  %v2253_v40 = vrot.slane %v2252_v48, 4  ;;  %3009 = vmatprep.mubr.f32.mxu1 %v8389_v45  ;;  %4737 = vmatmul.mubr.msk.f32.gmra.mrb[102].mxu0 %vm947_vm1, %v6921_v19  ;;  %v6940_v49 = vld [vmem:[%s8229_s2 + $0xa0] sm:$0xff] }
 0x385   :  { %8456 = vst [vmem:[#allocation31_spill] sm:$0xff] %v6926_v28  ;;  %v2245_v0 = vadd.f32 %v2244_v61, %v2243_v14  ;;  %v2356_v41 = vrot.slane %v2355_v57, 4  ;;  %v2364_v3 = vadd.f32 %v2363_v11, %v2314_v39  ;;  %v2270_v31 = vadd.f32 %v2269_v34, %v6926_v28  ;;  %2854 = vmatprep.mubr.f32.mxu0 %v8389_v45 }
 0x386   :  { %v2263_v9 = vadd.f32 %v2262_v21, %v2261_v33  ;;  %v2374_v1 = vrot.slane %v2373_v15, 4  ;;  %v2254_v35 = vadd.f32 %v2253_v40, %v2252_v48  ;;  %v2316_v63 = vmul.f32 %v6926_v28, %v6926_v28 }
 0x387   :  { %v2246_v59 = vrot.slane %v2245_v0, 2  ;;  %v2357_v2 = vadd.f32 %v2356_v41, %v2355_v57  ;;  %v2365_v14 = vrot.slane %v2364_v3, 4  ;;  %v2271_v34 = vrot.slane %v2270_v31, 4  ;;  %4753 = vmatmul.mubr.msk.f32.gmra.mrb[102].mxu1 %vm947_vm1, %v6921_v19 }
 0x388   :  { %v2264_v11 = vrot.slane %v2263_v9, 2  ;;  %v2375_v33 = vadd.f32 %v2374_v1, %v2373_v15  ;;  %v2255_v40 = vrot.slane %v2254_v35, 2  ;;  %v2382_v50 = vadd.f32 %v2381_v20, %v2316_v63  ;;  %3015 = vmatprep.mubr.f32.mxu1 %v8389_v45  ;;  %4738 = vmatmul.mubr.msk.f32.gmra.mrb[104].mxu0 %vm947_vm1, %v6940_v49  ;;  %v6951_v15 = vld [vmem:[%s8229_s2 + $0xa8] sm:$0xff] }
 0x389   :  { %v2247_v48 = vadd.f32 %v2246_v59, %v2245_v0  ;;  %v2358_v61 = vrot.slane %v2357_v2, 2  ;;  %v2366_v39 = vadd.f32 %v2365_v14, %v2364_v3  ;;  %v2272_v21 = vadd.f32 %v2271_v34, %v2270_v31  ;;  %2860 = vmatprep.mubr.f32.mxu0 %v8389_v45 }
 0x38a   :  { %v2265_v6 = vadd.f32 %v2264_v11, %v2263_v9  ;;  %v2376_v41 = vrot.slane %v2375_v33, 2  ;;  %v2256_v57 = vadd.f32 %v2255_v40, %v2254_v35  ;;  %v2383_v24 = vrot.slane %v2382_v50, 4 }
 0x38b   :  { %v2248_v63 = vrot.slane %v2247_v48, 1  ;;  %v2359_v20 = vadd.f32 %v2358_v61, %v2357_v2  ;;  %v2367_v0 = vrot.slane %v2366_v39, 2  ;;  %v2273_v1 = vrot.slane %v2272_v21, 2  ;;  %4754 = vmatmul.mubr.msk.f32.gmra.mrb[104].mxu1 %vm947_vm1, %v6940_v49 }
 0x38c   :  { %v2266_v3 = vrot.slane %v2265_v6, 1  ;;  %v2377_v31 = vadd.f32 %v2376_v41, %v2375_v33  ;;  %v2257_v9 = vrot.slane %v2256_v57, 1  ;;  %v2384_v59 = vadd.f32 %v2383_v24, %v2382_v50  ;;  %3021 = vmatprep.mubr.f32.mxu1 %v8389_v45  ;;  %4739 = vmatmul.mubr.msk.f32.gmra.mrb[106].mxu0 %vm947_vm1, %v6951_v15  ;;  %v6962_v33 = vld [vmem:[%s8229_s2 + $0xb0] sm:$0xff] }
 0x38d   :  { %v2249_v35 = vadd.f32 %v2248_v63, %v2247_v48  ;;  %v2360_v14 = vrot.slane %v2359_v20, 1  ;;  %v2368_v34 = vadd.f32 %v2367_v0, %v2366_v39  ;;  %v2274_v11 = vadd.f32 %v2273_v1, %v2272_v21  ;;  %2866 = vmatprep.mubr.f32.mxu0 %v8389_v45 }
 0x38e   :  { %v2267_v40 = vadd.f32 %v2266_v3, %v2265_v6  ;;  %v2378_v2 = vrot.slane %v2377_v31, 1  ;;  %v2258_v61 = vadd.f32 %v2257_v9, %v2256_v57  ;;  %v2385_v60 = vrot.slane %v2384_v59, 2 }
 0x38f   :  { %v6964_v24 = vmul.f32 0.03125, %v2249_v35  ;;  %v2361_v50 = vadd.f32 %v2360_v14, %v2359_v20  ;;  %v2369_v48 = vrot.slane %v2368_v34, 1  ;;  %v2275_v39 = vrot.slane %v2274_v11, 1  ;;  %4755 = vmatmul.mubr.msk.f32.gmra.mrb[106].mxu1 %vm947_vm1, %v6951_v15 }
 0x390   :  { %v6968_v21 = vmul.f32 0.03125, %v2267_v40  ;;  %v2379_v6 = vadd.f32 %v2378_v2, %v2377_v31  ;;  %v6970_v41 = vmul.f32 0.03125, %v2258_v61  ;;  %v2386_v57 = vadd.f32 %v2385_v60, %v2384_v59  ;;  %3027 = vmatprep.mubr.f32.mxu1 %v8389_v45  ;;  %4740 = vmatmul.mubr.msk.f32.gmra.mrb[108].mxu0 %vm947_vm1, %v6962_v33  ;;  %v6985_v60 = vld [vmem:[%s8229_s2 + $0xb8] sm:$0xff] }
 0x391   :  { %v2393_v63 = vmul.f32 0.03125, %v2361_v50  ;;  %v2401_v0 = vmul.f32 %v6964_v24, %v6964_v24  ;;  %v2370_v1 = vadd.f32 %v2369_v48, %v2368_v34  ;;  %2872 = vmatprep.mubr.f32.mxu0 %v8389_v45  ;;  %v2276_v35 = vadd.f32 %v2275_v39, %v2274_v11  ;;  %v6998_v11 = vld [vmem:[%s8229_s2 + $0xc0] sm:$0xff] }
 0x392   :  { %v2395_v20 = vmul.f32 0.03125, %v2379_v6  ;;  %v2403_v3 = vmul.f32 %v6968_v21, %v6968_v21  ;;  %v2402_v31 = vmul.f32 %v6970_v41, %v6970_v41  ;;  %v2387_v34 = vrot.slane %v2386_v57, 1 }
 0x393   :  { %v2409_v9 = vsub.f32 %v2393_v63, %v2401_v0  ;;  %v2394_v59 = vmul.f32 0.03125, %v2370_v1  ;;  %4756 = vmatmul.mubr.msk.f32.gmra.mrb[108].mxu1 %vm947_vm1, %v6962_v33  ;;  %v6990_v61 = vmul.f32 0.03125, %v2276_v35  ;;  %v2449_v35 = vsub.f32 %v6894_v47, %v6964_v24 }
 0x394   :  { %v2411_v14 = vsub.f32 %v2395_v20, %v2403_v3  ;;  %3033 = vmatprep.mubr.f32.mxu1 %v8389_v45  ;;  %4741 = vmatmul.mubr.msk.f32.gmra.mrb[110].mxu0 %vm947_vm1, %v6985_v60  ;;  %v2388_v48 = vadd.f32 %v2387_v34, %v2386_v57  ;;  %v7011_v3 = vld [vmem:[%s8229_s2 + $0xc8] sm:$0xff]  ;;  %v2450_v34 = vsub.f32 %v6904_v55, %v6970_v41 }
 0x395   :  { %v2417_v40 = vmax.f32 %v2409_v9, 0.0  ;;  %v2410_v2 = vsub.f32 %v2394_v59, %v2402_v31  ;;  %2878 = vmatprep.mubr.f32.mxu0 %v8389_v45  ;;  %v2404_v63 = vmul.f32 %v6990_v61, %v6990_v61  ;;  %v7022_v59 = vld [vmem:[%s8229_s2 + $0xd0] sm:$0xff] }
 0x396   :  { %v2419_v50 = vmax.f32 %v2411_v14, 0.0  ;;  %v2396_v1 = vmul.f32 0.03125, %v2388_v48  ;;  %v2451_v14 = vsub.f32 %v6900_v16, %v6968_v21  ;;  %v2433_v48 = vsub.f32 %v6816_v4, %v6964_v24 }
 0x397   :  { %v2457_v39 = vadd.f32 1e-05, %v2417_v40  ;;  %v2418_v6 = vmax.f32 %v2410_v2, 0.0  ;;  %4757 = vmatmul.mubr.msk.f32.gmra.mrb[110].mxu1 %vm947_vm1, %v6985_v60  ;;  %v2426_v40 = vsub.f32 %v6791_v29, %v6970_v41  ;;  %v2434_v2 = vsub.f32 %v6822_v32, %v6970_v41 }
 0x398   :  { %v2459_v0 = vadd.f32 1e-05, %v2419_v50  ;;  %3039 = vmatprep.mubr.f32.mxu1 %v8389_v45  ;;  %4742 = vmatmul.mubr.msk.f32.gmra.mrb[112].mxu0 %vm947_vm1, %v6998_v11  ;;  %v2412_v20 = vsub.f32 %v2396_v1, %v2404_v63  ;;  %v2425_v50 = vsub.f32 %v6784_v25, %v6964_v24  ;;  %v2428_v63 = vsub.f32 %v6797_v10, %v6990_v61 }
 0x399   :  { %5040 = vrsqrt.f32 %v2457_v39  ;;  %v2458_v57 = vadd.f32 1e-05, %v2418_v6  ;;  %2884 = vmatprep.mubr.f32.mxu0 %v8389_v45  ;;  %v2452_v39 = vsub.f32 %v6926_v28, %v6990_v61  ;;  %v7049_v6 = vld [vmem:[%s8229_s2 + $0xd8] sm:$0xff]  ;;  %v2427_v1 = vsub.f32 %v6788_v46, %v6968_v21 }
 0x39a   :  { %5042 = vrsqrt.f32 %v2459_v0  ;;  %v2420_v31 = vmax.f32 %v2412_v20, 0.0  ;;  %v2436_v0 = vsub.f32 %v6825_v56, %v6990_v61  ;;  %v2435_v20 = vsub.f32 %v6819_v26, %v6968_v21 }
 0x39b   :  { %5044 = vrsqrt.f32 %v2458_v57  ;;  %4758 = vmatmul.mubr.msk.f32.gmra.mrb[112].mxu1 %vm947_vm1, %v6998_v11  ;;  %v2441_v28 = vsub.f32 %v6849_v13, %v6964_v24  ;;  %v2443_v32 = vsub.f32 %v6861_v17, %v6968_v21  ;;  %v7078_v24 = vld [vmem:[%s8229_s2 + $0xe0] sm:$0xff] }
 0x39c   :  { %3045 = vmatprep.mubr.f32.mxu1 %v8389_v45  ;;  %4743 = vmatmul.mubr.msk.f32.gmra.mrb[114].mxu0 %vm947_vm1, %v7011_v3  ;;  %v2460_v9 = vadd.f32 1e-05, %v2420_v31  ;;  %v2442_v31 = vsub.f32 %v6872_v22, %v6970_v41 }
 0x39d   :  { %2890 = vmatprep.mubr.f32.mxu0 %v8389_v45 }
 0x39e   :  { %5046 = vrsqrt.f32 %v2460_v9  ;;  %v2444_v9 = vsub.f32 %v6879_v36, %v6990_v61 }
 0x39f   :  { %4759 = vmatmul.mubr.msk.f32.gmra.mrb[114].mxu1 %vm947_vm1, %v7011_v3 }
 0x3a0   :  { %3051 = vmatprep.mubr.f32.mxu1 %v8389_v45  ;;  %4744 = vmatmul.mubr.msk.f32.gmra.mrb[116].mxu0 %vm947_vm1, %v7022_v59 }
 0x3a1   :  { %2896 = vmatprep.mubr.f32.mxu0 %v8389_v45 }
 0x3a3   :  { %v5041_v57 = vpop.eup %5040  ;;  %4760 = vmatmul.mubr.msk.f32.gmra.mrb[116].mxu1 %vm947_vm1, %v7022_v59 }
 0x3a4   :  { %v5043_v55 = vpop.eup %5042  ;;  %v2497_v16 = vmul.f32 %v5041_v57, %v2449_v35  ;;  %3057 = vmatprep.mubr.f32.mxu1 %v8389_v45  ;;  %v2473_v47 = vmul.f32 %v5041_v57, %v2425_v50  ;;  %v2481_v56 = vmul.f32 %v5041_v57, %v2433_v48  ;;  %4745 = vmatmul.mubr.msk.f32.gmra.mrb[118].mxu0 %vm947_vm1, %v7049_v6 }
 0x3a5   :  { %v5045_v4 = vpop.eup %5044  ;;  %v7070_v26 = vmul.f32 %v5043_v55, %v2451_v14  ;;  %v2475_v41 = vmul.f32 %v5043_v55, %v2427_v1  ;;  %v2483_v61 = vmul.f32 %v5043_v55, %v2435_v20  ;;  %v2489_v36 = vmul.f32 %v5041_v57, %v2441_v28  ;;  %2902 = vmatprep.mubr.f32.mxu0 %v8389_v45 }
 0x3a6   :  { %v2474_v35 = vmul.f32 %v5045_v4, %v2426_v40  ;;  %v2482_v50 = vmul.f32 %v5045_v4, %v2434_v2  ;;  %v2525_v21 = vmul.f32 %v6711_v42, %v2473_v47  ;;  %v2533_v14 = vmul.f32 %v6709_v37, %v2481_v56 }
 0x3a7   :  { %4761 = vmatmul.mubr.msk.f32.gmra.mrb[118].mxu1 %vm947_vm1, %v7049_v6  ;;  %v2527_v48 = vmul.f32 %v6711_v42, %v2475_v41  ;;  %v2535_v28 = vmul.f32 %v6709_v37, %v2483_v61  ;;  %v2490_v1 = vmul.f32 %v5045_v4, %v2442_v31  ;;  %v2498_v57 = vmul.f32 %v5045_v4, %v2450_v34  ;;  %v7100_v61 = vld [vmem:[%s8229_s2 + $0xe8] sm:$0xff] }
 0x3a8   :  { %3063 = vmatprep.mubr.f32.mxu1 %v8389_v45  ;;  %v2526_v20 = vmul.f32 %v6711_v42, %v2474_v35  ;;  %v2534_v40 = vmul.f32 %v6709_v37, %v2482_v50  ;;  %v2577_v2 = vadd.f32 %v6715_v27, %v2525_v21  ;;  %v2585_v47 = vadd.f32 %v6713_v38, %v2533_v14  ;;  %v5047_v34 = vpop.eup %5046 }
 0x3a9   :  { %4746 = vmatmul.mubr.msk.f32.gmra.mrb[120].mxu0 %vm947_vm1, %v7078_v24  ;;  %v2579_v56 = vadd.f32 %v6715_v27, %v2527_v48  ;;  %v2542_v41 = vmul.f32 %v6745_v8, %v2490_v1  ;;  %v2550_v31 = vmul.f32 %v6743_v12, %v2498_v57  ;;  %v2491_v4 = vmul.f32 %v5043_v55, %v2443_v32 }
 0x3aa   :  { %2908 = vmatprep.mubr.f32.mxu0 %v8389_v45  ;;  %v2578_v35 = vadd.f32 %v6715_v27, %v2526_v20  ;;  %v2586_v50 = vadd.f32 %v6713_v38, %v2534_v40  ;;  %v2587_v21 = vadd.f32 %v6713_v38, %v2535_v28  ;;  %v2541_v14 = vmul.f32 %v6745_v8, %v2489_v36  ;;  %v7121_v40 = vld [vmem:[%s8229_s2 + $0xf0] sm:$0xff] }
 0x3ab   :  { %4762 = vmatmul.mubr.msk.f32.gmra.mrb[120].mxu1 %vm947_vm1, %v7078_v24  ;;  %v2476_v32 = vmul.f32 %v5047_v34, %v2428_v63  ;;  %v2484_v55 = vmul.f32 %v5047_v34, %v2436_v0  ;;  %v4932_v48 = vpack.c.bf16 %v2585_v47, %v2577_v2  ;;  %v2594_v1 = vadd.f32 %v6765_v43, %v2542_v41 }
 0x3ac   :  { %3069 = vmatprep.mubr.f32.mxu1 %v8389_v45  ;;  %v4930_v57 = vpack.c.bf16 %v2586_v50, %v2578_v35  ;;  %v2602_v22 = vadd.f32 %v6763_v53, %v2550_v31  ;;  %v2492_v20 = vmul.f32 %v5047_v34, %v2444_v9  ;;  %v2500_v17 = vmul.f32 %v5047_v34, %v2452_v39  ;;  %v7142_v31 = vld [vmem:[%s8229_s2 + $0xf8] sm:$0xff]  ;;  %v7255_v50 = vpop.permute.xlu1 %2685 }
 0x3ad   :  { %4747 = vmatmul.mubr.msk.f32.gmra.mrb[122].mxu0 %vm947_vm1, %v7100_v61  ;;  %v2528_v36 = vmul.f32 %v6711_v42, %v2476_v32  ;;  %v2536_v28 = vmul.f32 %v6709_v37, %v2484_v55  ;;  %v2549_v63 = vmul.f32 %v6743_v12, %v2497_v16  ;;  %v2593_v0 = vadd.f32 %v6765_v43, %v2541_v14 }
 0x3ae   :  { %2914 = vmatprep.mubr.f32.mxu0 %v8389_v45  ;;  %4931 = vmatprep.subr.bf16.mxu0 %v4930_v57  ;;  %v4934_v39 = vpack.c.bf16 %v2602_v22, %v2594_v1  ;;  %v2544_v9 = vmul.f32 %v6745_v8, %v2492_v20  ;;  %v2552_v2 = vmul.f32 %v6743_v12, %v2500_v17 }
 0x3af   :  { %4763 = vmatmul.mubr.msk.f32.gmra.mrb[122].mxu1 %vm947_vm1, %v7100_v61  ;;  %v2580_v37 = vadd.f32 %v6715_v27, %v2528_v36  ;;  %v2588_v42 = vadd.f32 %v6713_v38, %v2536_v28  ;;  %4933 = vmatpush1.bf16.msra.mxu0 %v4932_v48  ;;  %v2601_v16 = vadd.f32 %v6763_v53, %v2549_v63 }
 0x3b0   :  { %3075 = vmatprep.mubr.f32.mxu1 %v8389_v45  ;;  %4935 = vmatprep.subr.bf16.mxu0 %v4934_v39  ;;  %v2596_v47 = vadd.f32 %v6765_v43, %v2544_v9  ;;  %v2604_v22 = vadd.f32 %v6763_v53, %v2552_v2  ;;  %v2543_v41 = vmul.f32 %v6745_v8, %v2491_v4  ;;  %v7269_v20 = vpop.permute.xlu1 %2645 }
 0x3b1   :  { %4748 = vmatmul.mubr.msk.f32.gmra.mrb[124].mxu0 %vm947_vm1, %v7121_v40  ;;  %v4938_v17 = vpack.c.bf16 %v2588_v42, %v2580_v37  ;;  %v2551_v27 = vmul.f32 %v6743_v12, %v7070_v26  ;;  %v4940_v38 = vpack.c.bf16 %v2587_v21, %v2579_v56  ;;  %v4936_v12 = vpack.c.bf16 %v2601_v16, %v2593_v0 }
 0x3b2   :  { %2920 = vmatprep.mubr.f32.mxu0 %v8389_v45  ;;  %v2595_v34 = vadd.f32 %v6765_v43, %v2543_v41  ;;  %v4942_v8 = vpack.c.bf16 %v2604_v22, %v2596_v47  ;;  %8457 = vst [vmem:[#allocation32_spill] sm:$0xff] %v7255_v50 }
 0x3b3   :  { %4764 = vmatmul.mubr.msk.f32.gmra.mrb[124].mxu1 %vm947_vm1, %v7121_v40  ;;  %4939 = vmatprep.subr.bf16.mxu1 %v4938_v17  ;;  %v2603_v4 = vadd.f32 %v6763_v53, %v2551_v27 }
 0x3b4   :  { %4941 = vmatpush1.bf16.msra.mxu1 %v4940_v38  ;;  %3081 = vmatprep.mubr.f32.mxu1 %v8389_v45  ;;  %v7285_v2 = vpop.permute.xlu1 %2695 }
 0x3b5   :  { %4943 = vmatprep.subr.bf16.mxu1 %v4942_v8  ;;  %4749 = vmatmul.mubr.msk.f32.gmra.mrb[126].mxu0 %vm947_vm1, %v7142_v31  ;;  %v4944_v26 = vpack.c.bf16 %v2603_v4, %v2595_v34 }
 0x3b6   :  { %4937 = vmatpush1.bf16.msra.mxu0 %v4936_v12  ;;  %3152 = vmatprep.mubr.f32.mxu0 %v8389_v45 }
 0x3b7   :  { %4765 = vmatmul.mubr.msk.f32.gmra.mrb[126].mxu1 %vm947_vm1, %v7142_v31 }
 0x3b8   :  { %4945 = vmatpush1.bf16.msra.mxu1 %v4944_v26  ;;  %3313 = vmatprep.mubr.f32.mxu1 %v8389_v45  ;;  %v7305_v13 = vpop.permute.xlu1 %2655 }
 0x3b9   :  { %4766 = vmatmul.mubr.msk.f32.vlgmr.msra.gmra.mrb[128].mxu0 %vm947_vm1, %v6804_v54 }
 0x3ba   :  { %3158 = vmatprep.mubr.f32.mxu0 %v8389_v45 }
 0x3bb   :  { %4782 = vmatmul.mubr.msk.f32.vlgmr.msra.gmra.mrb[128].mxu1 %vm947_vm1, %v6804_v54 }
 0x3bc   :  { %3319 = vmatprep.mubr.f32.mxu1 %v8389_v45 }
 0x3bd   :  { %4767 = vmatmul.mubr.msk.f32.gmra.mrb[130].mxu0 %vm947_vm1, %v6854_v30 }
 0x3be   :  { %3164 = vmatprep.mubr.f32.mxu0 %v8389_v45 }
 0x3bf   :  { %4783 = vmatmul.mubr.msk.f32.gmra.mrb[130].mxu1 %vm947_vm1, %v6854_v30 }
 0x3c0   :  { %3325 = vmatprep.mubr.f32.mxu1 %v8389_v45 }
 0x3c1   :  { %4768 = vmatmul.mubr.msk.f32.gmra.mrb[132].mxu0 %vm947_vm1, %v6887_v52 }
 0x3c2   :  { %3170 = vmatprep.mubr.f32.mxu0 %v8389_v45 }
 0x3c3   :  { %4784 = vmatmul.mubr.msk.f32.gmra.mrb[132].mxu1 %vm947_vm1, %v6887_v52 }
 0x3c4   :  { %3331 = vmatprep.mubr.f32.mxu1 %v8389_v45 }
 0x3c5   :  { %4769 = vmatmul.mubr.msk.f32.gmra.mrb[134].mxu0 %vm947_vm1, %v6921_v19 }
 0x3c6   :  { %3176 = vmatprep.mubr.f32.mxu0 %v8389_v45 }
 0x3c7   :  { %4785 = vmatmul.mubr.msk.f32.gmra.mrb[134].mxu1 %vm947_vm1, %v6921_v19 }
 0x3c8   :  { %3337 = vmatprep.mubr.f32.mxu1 %v8389_v45 }
 0x3c9   :  { %4770 = vmatmul.mubr.msk.f32.gmra.mrb[136].mxu0 %vm947_vm1, %v6940_v49 }
 0x3ca   :  { %3182 = vmatprep.mubr.f32.mxu0 %v8389_v45 }
 0x3cb   :  { %4786 = vmatmul.mubr.msk.f32.gmra.mrb[136].mxu1 %vm947_vm1, %v6940_v49 }
 0x3cc   :  { %3343 = vmatprep.mubr.f32.mxu1 %v8389_v45 }
 0x3cd   :  { %4771 = vmatmul.mubr.msk.f32.gmra.mrb[138].mxu0 %vm947_vm1, %v6951_v15 }
 0x3ce   :  { %3188 = vmatprep.mubr.f32.mxu0 %v8389_v45 }
 0x3cf   :  { %4787 = vmatmul.mubr.msk.f32.gmra.mrb[138].mxu1 %vm947_vm1, %v6951_v15 }
 0x3d0   :  { %3349 = vmatprep.mubr.f32.mxu1 %v8389_v45 }
 0x3d1   :  { %4772 = vmatmul.mubr.msk.f32.gmra.mrb[140].mxu0 %vm947_vm1, %v6962_v33 }
 0x3d2   :  { %3194 = vmatprep.mubr.f32.mxu0 %v8389_v45 }
 0x3d3   :  { %4788 = vmatmul.mubr.msk.f32.gmra.mrb[140].mxu1 %vm947_vm1, %v6962_v33  ;;  %v7251_v33 = vpop.permute.xlu0 %2680 }
 0x3d4   :  { %3355 = vmatprep.mubr.f32.mxu1 %v8389_v45 }
 0x3d5   :  { %4773 = vmatmul.mubr.msk.f32.gmra.mrb[142].mxu0 %vm947_vm1, %v6985_v60 }
 0x3d6   :  { %3200 = vmatprep.mubr.f32.mxu0 %v8389_v45 }
 0x3d7   :  { %4789 = vmatmul.mubr.msk.f32.gmra.mrb[142].mxu1 %vm947_vm1, %v6985_v60  ;;  %v7253_v56 = vpop.permute.xlu0 %2640 }
 0x3d8   :  { %3361 = vmatprep.mubr.f32.mxu1 %v8389_v45 }
 0x3d9   :  { %4774 = vmatmul.mubr.msk.f32.gmra.mrb[144].mxu0 %vm947_vm1, %v6998_v11 }
 0x3da   :  { %3206 = vmatprep.mubr.f32.mxu0 %v8389_v45 }
 0x3db   :  { %4790 = vmatmul.mubr.msk.f32.gmra.mrb[144].mxu1 %vm947_vm1, %v6998_v11  ;;  %v7263_v48 = vpop.permute.xlu0 %2690 }
 0x3dc   :  { %3367 = vmatprep.mubr.f32.mxu1 %v8389_v45 }
 0x3dd   :  { %4775 = vmatmul.mubr.msk.f32.gmra.mrb[146].mxu0 %vm947_vm1, %v7011_v3 }
 0x3de   :  { %3212 = vmatprep.mubr.f32.mxu0 %v8389_v45 }
 0x3df   :  { %4791 = vmatmul.mubr.msk.f32.gmra.mrb[146].mxu1 %vm947_vm1, %v7011_v3 }
 0x3e0   :  { %3373 = vmatprep.mubr.f32.mxu1 %v8389_v45 }
 0x3e1   :  { %4776 = vmatmul.mubr.msk.f32.gmra.mrb[148].mxu0 %vm947_vm1, %v7022_v59 }
 0x3e2   :  { %3218 = vmatprep.mubr.f32.mxu0 %v8389_v45 }
 0x3e3   :  { %4792 = vmatmul.mubr.msk.f32.gmra.mrb[148].mxu1 %vm947_vm1, %v7022_v59 }
 0x3e4   :  { %3379 = vmatprep.mubr.f32.mxu1 %v8389_v45 }
 0x3e5   :  { %4777 = vmatmul.mubr.msk.f32.gmra.mrb[150].mxu0 %vm947_vm1, %v7049_v6 }
 0x3e6   :  { %3224 = vmatprep.mubr.f32.mxu0 %v8389_v45 }
 0x3e7   :  { %4793 = vmatmul.mubr.msk.f32.gmra.mrb[150].mxu1 %vm947_vm1, %v7049_v6 }
 0x3e8   :  { %3385 = vmatprep.mubr.f32.mxu1 %v8389_v45 }
 0x3e9   :  { %4778 = vmatmul.mubr.msk.f32.gmra.mrb[152].mxu0 %vm947_vm1, %v7078_v24 }
 0x3ea   :  { %3230 = vmatprep.mubr.f32.mxu0 %v8389_v45 }
 0x3eb   :  { %4794 = vmatmul.mubr.msk.f32.gmra.mrb[152].mxu1 %vm947_vm1, %v7078_v24 }
 0x3ec   :  { %3391 = vmatprep.mubr.f32.mxu1 %v8389_v45 }
 0x3ed   :  { %4779 = vmatmul.mubr.msk.f32.gmra.mrb[154].mxu0 %vm947_vm1, %v7100_v61 }
 0x3ee   :  { %3236 = vmatprep.mubr.f32.mxu0 %v8389_v45 }
 0x3ef   :  { %4795 = vmatmul.mubr.msk.f32.gmra.mrb[154].mxu1 %vm947_vm1, %v7100_v61 }
 0x3f0   :  { %3397 = vmatprep.mubr.f32.mxu1 %v8389_v45 }
 0x3f1   :  { %4780 = vmatmul.mubr.msk.f32.gmra.mrb[156].mxu0 %vm947_vm1, %v7121_v40 }
 0x3f2   :  { %3242 = vmatprep.mubr.f32.mxu0 %v8389_v45 }
 0x3f3   :  { %4796 = vmatmul.mubr.msk.f32.gmra.mrb[156].mxu1 %vm947_vm1, %v7121_v40  ;;  %v7279_v40 = vpop.permute.xlu0 %2650 }
 0x3f4   :  { %3403 = vmatprep.mubr.f32.mxu1 %v8389_v45 }
 0x3f5   :  { %4781 = vmatmul.mubr.msk.f32.gmra.mrb[158].mxu0 %vm947_vm1, %v7142_v31 }
 0x3f6   :  { %3643 = vmatprep.mubr.f32.mxu0 %v8389_v45 }
 0x3f7   :  { %4797 = vmatmul.mubr.msk.f32.gmra.mrb[158].mxu1 %vm947_vm1, %v7142_v31  ;;  %v7295_v22 = vpop.permute.xlu0 %2700 }
 0x3f8   :  { %3732 = vmatprep.mubr.f32.mxu1 %v8389_v45 }
 0x449   :  { %v2832_v53 = vpop.f32.mrb[96].mxu0 }
 0x44a   :  { %v2834_v43 = vpop.f32.mrb[97].mxu0  ;;  %v2833_v41 = vadd.f32 %v2832_v53, %v7253_v56 }
 0x44b   :  { %v2835_v27 = vadd.f32 %v2834_v43, %v7253_v56 }
 0x44d   :  { %v2993_v54 = vpop.f32.mrb[96].mxu1 }
 0x44e   :  { %v2995_v30 = vpop.f32.mrb[97].mxu1  ;;  %v2994_v17 = vadd.f32 %v2993_v54, %v7253_v56 }
 0x44f   :  { %v2838_v52 = vpop.f32.mrb[98].mxu0  ;;  %v2996_v38 = vadd.f32 %v2995_v30, %v7253_v56 }
 0x450   :  { %v2840_v19 = vpop.f32.mrb[99].mxu0  ;;  %v2839_v34 = vadd.f32 %v2838_v52, %v7269_v20 }
 0x451   :  { %v2999_v49 = vpop.f32.mrb[98].mxu1  ;;  %v2841_v4 = vadd.f32 %v2840_v19, %v7269_v20 }
 0x452   :  { %v3001_v15 = vpop.f32.mrb[99].mxu1  ;;  %v3000_v8 = vadd.f32 %v2999_v49, %v7269_v20 }
 0x453   :  { %v2844_v60 = vpop.f32.mrb[100].mxu0  ;;  %v3002_v53 = vadd.f32 %v3001_v15, %v7269_v20 }
 0x454   :  { %v2846_v11 = vpop.f32.mrb[101].mxu0  ;;  %v2845_v54 = vadd.f32 %v2844_v60, %v7279_v40 }
 0x455   :  { %v2847_v43 = vadd.f32 %v2846_v11, %v7279_v40 }
 0x456   :  { %v3005_v3 = vpop.f32.mrb[100].mxu1 }
 0x457   :  { %v3007_v59 = vpop.f32.mrb[101].mxu1  ;;  %v2850_v6 = vpop.f32.mrb[102].mxu0  ;;  %v7312_v52 = vadd.f32 %v3005_v3, %v7279_v40 }
 0x458   :  { %v2852_v24 = vpop.f32.mrb[103].mxu0  ;;  %v7315_v49 = vadd.f32 %v3007_v59, %v7279_v40  ;;  %v7319_v46 = vadd.f32 %v2850_v6, %v7305_v13 }
 0x459   :  { %v7322_v15 = vadd.f32 %v2852_v24, %v7305_v13 }
 0x45a   :  { %v3011_v61 = vpop.f32.mrb[102].mxu1 }
 0x45b   :  { %v3013_v35 = vpop.f32.mrb[103].mxu1  ;;  %v2856_v21 = vpop.f32.mrb[104].mxu0  ;;  %v7326_v3 = vadd.f32 %v3011_v61, %v7305_v13 }
 0x45c   :  { %v7257_v14 = vpop.f32.mrb[105].mxu0  ;;  %v7332_v6 = vadd.f32 %v3013_v35, %v7305_v13 }
 0x45e   :  { %v7259_v32 = vpop.f32.mrb[104].mxu1 }
 0x45f   :  { %v7261_v55 = vpop.f32.mrb[105].mxu1  ;;  %v7265_v1 = vpop.f32.mrb[106].mxu0 }
 0x460   :  { %v7267_v57 = vpop.f32.mrb[107].mxu0 }
 0x462   :  { %v7271_v36 = vpop.f32.mrb[106].mxu1 }
 0x463   :  { %v7273_v28 = vpop.f32.mrb[107].mxu1  ;;  %v7275_v63 = vpop.f32.mrb[108].mxu0 }
 0x464   :  { %v7277_v0 = vpop.f32.mrb[109].mxu0 }
 0x466   :  { %v7281_v39 = vpop.f32.mrb[108].mxu1 }
 0x467   :  { %v7283_v9 = vpop.f32.mrb[109].mxu1  ;;  %v7287_v37 = vpop.f32.mrb[110].mxu0 }
 0x468   :  { %v7289_v42 = vpop.f32.mrb[111].mxu0 }
 0x46a   :  { %v7291_v16 = vpop.f32.mrb[110].mxu1 }
 0x46b   :  { %v7293_v47 = vpop.f32.mrb[111].mxu1  ;;  %v2880_v31 = vpop.f32.mrb[112].mxu0 }
 0x46c   :  { %v2881_v12 = vadd.f32 %v2880_v31, %v7251_v33  ;;  %v2882_v26 = vpop.f32.mrb[113].mxu0 }
 0x46d   :  { %v2883_v30 = vadd.f32 %v2882_v26, %v7251_v33 }
 0x46e   :  { %v3041_v10 = vpop.f32.mrb[112].mxu1  ;;  %v3410_v19 = vmax.f32 %v2881_v12, 0.0 }
 0x46f   :  { %v3042_v31 = vadd.f32 %v3041_v10, %v7251_v33  ;;  %v3043_v29 = vpop.f32.mrb[113].mxu1  ;;  %v3411_v60 = vmax.f32 %v2883_v30, 0.0  ;;  %v2886_v26 = vpop.f32.mrb[114].mxu0 }
 0x470   :  { %v3044_v11 = vadd.f32 %v3043_v29, %v7251_v33  ;;  %v3474_v25 = vmul.f32 %v3410_v19, %v2833_v41  ;;  %v2887_v12 = vadd.f32 %v2886_v26, %v7255_v50  ;;  %v2888_v44 = vpop.f32.mrb[115].mxu0  ;;  %v7329_v10 = vpop.permute.xlu0 %2660 }
 0x471   :  { %v3412_v59 = vmax.f32 %v3042_v31, 0.0  ;;  %8458 = vst [vmem:[#allocation33_spill] sm:$0xff] %v7329_v10  ;;  %v3475_v7 = vmul.f32 %v3411_v60, %v2835_v27  ;;  %v2889_v30 = vadd.f32 %v2888_v44, %v7255_v50  ;;  %v7336_v29 = vadd.f32 %v2856_v21, %v7329_v10  ;;  %v7339_v31 = vpop.permute.xlu1 %2705 }
 0x472   :  { %v3413_v24 = vmax.f32 %v3044_v11, 0.0  ;;  %v3047_v5 = vpop.f32.mrb[114].mxu1  ;;  %v3418_v23 = vmax.f32 %v2887_v12, 0.0  ;;  %v7343_v26 = vadd.f32 %v7257_v14, %v7329_v10  ;;  %v7348_v44 = vadd.f32 %v7259_v32, %v7329_v10 }
 0x473   :  { %v3476_v61 = vmul.f32 %v3412_v59, %v2994_v17  ;;  %v3048_v41 = vadd.f32 %v3047_v5, %v7255_v50  ;;  %v3049_v19 = vpop.f32.mrb[115].mxu1  ;;  %v3419_v27 = vmax.f32 %v2889_v30, 0.0  ;;  %v2892_v11 = vpop.f32.mrb[116].mxu0  ;;  %v7353_v12 = vadd.f32 %v7261_v55, %v7329_v10 }
 0x474   :  { %v3477_v35 = vmul.f32 %v3413_v24, %v2996_v38  ;;  %v3050_v60 = vadd.f32 %v3049_v19, %v7255_v50  ;;  %v3482_v21 = vmul.f32 %v3418_v23, %v2839_v34  ;;  %v2893_v5 = vadd.f32 %v2892_v11, %v7263_v48  ;;  %v2894_v59 = vpop.f32.mrb[117].mxu0 }
 0x475   :  { %v3420_v17 = vmax.f32 %v3048_v41, 0.0  ;;  %v3483_v14 = vmul.f32 %v3419_v27, %v2841_v4  ;;  %v2895_v24 = vadd.f32 %v2894_v59, %v7263_v48 }
 0x476   :  { %v3421_v58 = vmax.f32 %v3050_v60, 0.0  ;;  %v3053_v38 = vpop.f32.mrb[116].mxu1  ;;  %v4948_v30 = vpack.c.bf16 %v3482_v21, %v3474_v25  ;;  %v3426_v51 = vmax.f32 %v2893_v5, 0.0  ;;  %v7359_v60 = vpop.permute.xlu1 %2665 }
 0x477   :  { %v3484_v19 = vmul.f32 %v3420_v17, %v3000_v8  ;;  %v3054_v32 = vadd.f32 %v3053_v38, %v7263_v48  ;;  %v3055_v62 = vpop.f32.mrb[117].mxu1  ;;  %v3427_v34 = vmax.f32 %v2895_v24, 0.0  ;;  %v2898_v11 = vpop.f32.mrb[118].mxu0  ;;  %v4946_v18 = vpack.c.bf16 %v3483_v14, %v3475_v7 }
 0x478   :  { %v3485_v23 = vmul.f32 %v3421_v58, %v3002_v53  ;;  %v3056_v41 = vadd.f32 %v3055_v62, %v7263_v48  ;;  %v3490_v55 = vmul.f32 %v3426_v51, %v2845_v54  ;;  %v2899_v4 = vadd.f32 %v2898_v11, %v7285_v2  ;;  %v2900_v27 = vpop.f32.mrb[119].mxu0 }
 0x479   :  { %v4964_v50 = vpack.c.bf16 %v3484_v19, %v3476_v61  ;;  %v3428_v10 = vmax.f32 %v3054_v32, 0.0  ;;  %v3491_v25 = vmul.f32 %v3427_v34, %v2847_v43  ;;  %v2901_v17 = vadd.f32 %v2900_v27, %v7285_v2  ;;  %4947 = vmatprep.subr.bf16.mxu0 %v4946_v18  ;;  %v7366_v61 = vpop.permute.xlu0 %2710 }
 0x47a   :  { %v3429_v8 = vmax.f32 %v3056_v41, 0.0  ;;  %v3059_v21 = vpop.f32.mrb[118].mxu1  ;;  %v4962_v58 = vpack.c.bf16 %v3485_v23, %v3477_v35  ;;  %v2863_v62 = vadd.f32 %v7265_v1, %v7359_v60  ;;  %v3434_v53 = vmax.f32 %v2899_v4, 0.0  ;;  %4949 = vmatpush1.bf16.msra.mxu0 %v4948_v30 }
 0x47b   :  { %v3492_v7 = vmul.f32 %v3428_v10, %v7312_v52  ;;  %v3060_v51 = vadd.f32 %v3059_v21, %v7285_v2  ;;  %v3061_v54 = vpop.f32.mrb[119].mxu1  ;;  %v2865_v43 = vadd.f32 %v7267_v57, %v7359_v60  ;;  %v3435_v59 = vmax.f32 %v2901_v17, 0.0 }
 0x47c   :  { %v3493_v5 = vmul.f32 %v3429_v8, %v7315_v49  ;;  %v3062_v18 = vadd.f32 %v3061_v54, %v7285_v2  ;;  %4963 = vmatprep.subr.bf16.mxu1 %v4962_v58  ;;  %v2904_v35 = vpop.f32.mrb[120].mxu0  ;;  %v3024_v1 = vadd.f32 %v7271_v36, %v7359_v60  ;;  %v3498_v52 = vmul.f32 %v3434_v53, %v7319_v46 }
 0x47d   :  { %v3436_v10 = vmax.f32 %v3060_v51, 0.0  ;;  %4965 = vmatpush1.bf16.msra.mxu1 %v4964_v50  ;;  %v2905_v14 = vadd.f32 %v2904_v35, %v7295_v22  ;;  %v2906_v38 = vpop.f32.mrb[121].mxu0  ;;  %v3026_v57 = vadd.f32 %v7273_v28, %v7359_v60  ;;  %v3499_v49 = vmul.f32 %v3435_v59, %v7322_v15  ;;  %v7386_v17 = vpop.permute.xlu0 %2670 }
 0x47e   :  { %v3437_v24 = vmax.f32 %v3062_v18, 0.0  ;;  %v3065_v30 = vpop.f32.mrb[120].mxu1  ;;  %v2907_v19 = vadd.f32 %v2906_v38, %v7295_v22  ;;  %v4952_v32 = vpack.c.bf16 %v3498_v52, %v3490_v55  ;;  %v7394_v18 = vpop.permute.xlu1 %2715 }
 0x47f   :  { %v3500_v23 = vmul.f32 %v3436_v10, %v7326_v3  ;;  %v3442_v36 = vmax.f32 %v2905_v14, 0.0  ;;  %v3066_v46 = vadd.f32 %v3065_v30, %v7295_v22  ;;  %v3067_v34 = vpop.f32.mrb[121].mxu1  ;;  %v4950_v28 = vpack.c.bf16 %v3499_v49, %v3491_v25 }
 0x480   :  { %v3501_v50 = vmul.f32 %v3437_v24, %v7332_v6  ;;  %v3443_v41 = vmax.f32 %v2907_v19, 0.0  ;;  %v3068_v11 = vadd.f32 %v3067_v34, %v7295_v22  ;;  %v2910_v4 = vpop.f32.mrb[122].mxu0  ;;  %v2869_v25 = vadd.f32 %v7275_v63, %v7386_v17 }
 0x481   :  { %v4968_v27 = vpack.c.bf16 %v3500_v23, %v3492_v7  ;;  %v3506_v15 = vmul.f32 %v3442_v36, %v7336_v29  ;;  %v3444_v8 = vmax.f32 %v3066_v46, 0.0  ;;  %v2911_v21 = vadd.f32 %v2910_v4, %v7339_v31  ;;  %v2912_v55 = vpop.f32.mrb[123].mxu0  ;;  %4951 = vmatprep.subr.bf16.mxu0 %v4950_v28 }
 0x482   :  { %v3507_v3 = vmul.f32 %v3443_v41, %v7343_v26  ;;  %v3445_v58 = vmax.f32 %v3068_v11, 0.0  ;;  %v3071_v53 = vpop.f32.mrb[122].mxu1  ;;  %v2913_v6 = vadd.f32 %v2912_v55, %v7339_v31  ;;  %v4966_v51 = vpack.c.bf16 %v3501_v50, %v3493_v5  ;;  %4953 = vmatpush1.bf16.msra.mxu0 %v4952_v32 }
 0x483   :  { %v3508_v7 = vmul.f32 %v3444_v8, %v7348_v44  ;;  %v3450_v29 = vmax.f32 %v2911_v21, 0.0  ;;  %v3072_v54 = vadd.f32 %v3071_v53, %v7339_v31  ;;  %v3073_v59 = vpop.f32.mrb[123].mxu1  ;;  %v2871_v26 = vadd.f32 %v7277_v0, %v7386_v17  ;;  %v7409_v8 = vpop.permute.xlu1 %2675 }
 0x484   :  { %v3509_v35 = vmul.f32 %v3445_v58, %v7353_v12  ;;  %v3451_v52 = vmax.f32 %v2913_v6, 0.0  ;;  %v3074_v5 = vadd.f32 %v3073_v59, %v7339_v31  ;;  %4967 = vmatprep.subr.bf16.mxu1 %v4966_v51  ;;  %v2916_v10 = vpop.f32.mrb[124].mxu0  ;;  %v3030_v63 = vadd.f32 %v7281_v39, %v7386_v17 }
 0x485   :  { %v3514_v44 = vmul.f32 %v3450_v29, %v2863_v62  ;;  %v3452_v14 = vmax.f32 %v3072_v54, 0.0  ;;  %4969 = vmatpush1.bf16.msra.mxu1 %v4968_v27  ;;  %v2917_v38 = vadd.f32 %v2916_v10, %v7366_v61  ;;  %v2918_v49 = vpop.f32.mrb[125].mxu0  ;;  %v3032_v24 = vadd.f32 %v7283_v9, %v7386_v17 }
 0x486   :  { %v3515_v0 = vmul.f32 %v3451_v52, %v2865_v43  ;;  %v3453_v30 = vmax.f32 %v3074_v5, 0.0  ;;  %v3077_v12 = vpop.f32.mrb[124].mxu1  ;;  %v2919_v19 = vadd.f32 %v2918_v49, %v7366_v61  ;;  %v2875_v58 = vadd.f32 %v7287_v37, %v7409_v8 }
 0x487   :  { %v4956_v32 = vpack.c.bf16 %v3514_v44, %v3506_v15  ;;  %v3516_v23 = vmul.f32 %v3452_v14, %v3024_v1  ;;  %v3458_v36 = vmax.f32 %v2917_v38, 0.0  ;;  %v3078_v46 = vadd.f32 %v3077_v12, %v7366_v61  ;;  %v3079_v39 = vpop.f32.mrb[125].mxu1 }
 0x488   :  { %v3517_v62 = vmul.f32 %v3453_v30, %v3026_v57  ;;  %v3459_v34 = vmax.f32 %v2919_v19, 0.0  ;;  %v3080_v50 = vadd.f32 %v3079_v39, %v7366_v61  ;;  %v2922_v41 = vpop.f32.mrb[126].mxu0  ;;  %v4954_v11 = vpack.c.bf16 %v3515_v0, %v3507_v3 }
 0x489   :  { %v4972_v4 = vpack.c.bf16 %v3516_v23, %v3508_v7  ;;  %v3522_v28 = vmul.f32 %v3458_v36, %v2869_v25  ;;  %v3460_v9 = vmax.f32 %v3078_v46, 0.0  ;;  %v2923_v43 = vadd.f32 %v2922_v41, %v7394_v18  ;;  %v2924_v27 = vpop.f32.mrb[127].mxu0 }
 0x48a   :  { %v3523_v15 = vmul.f32 %v3459_v34, %v2871_v26  ;;  %v3461_v1 = vmax.f32 %v3080_v50, 0.0  ;;  %v3083_v21 = vpop.f32.mrb[126].mxu1  ;;  %v2925_v55 = vadd.f32 %v2924_v27, %v7394_v18  ;;  %4955 = vmatprep.subr.bf16.mxu0 %v4954_v11  ;;  %v4970_v57 = vpack.c.bf16 %v3517_v62, %v3509_v35  ;;  %v7437_v62 = vld [vmem:[%s8230_s3 + $0x28] sm:$0xff] }
 0x48b   :  { %v3524_v53 = vmul.f32 %v3460_v9, %v3030_v63  ;;  %v3466_v3 = vmax.f32 %v2923_v43, 0.0  ;;  %v3084_v6 = vadd.f32 %v3083_v21, %v7394_v18  ;;  %v3085_v51 = vpop.f32.mrb[127].mxu1  ;;  %4957 = vmatpush1.bf16.msra.mxu0 %v4956_v32  ;;  %v2877_v25 = vadd.f32 %v7289_v42, %v7409_v8  ;;  %8459 = vst [vmem:[#allocation34_spill] sm:$0xff] %v7437_v62 }
 0x48c   :  { %v3525_v7 = vmul.f32 %v3461_v1, %v3032_v24  ;;  %v3467_v29 = vmax.f32 %v2925_v55, 0.0  ;;  %v3086_v54 = vadd.f32 %v3085_v51, %v7394_v18  ;;  %4971 = vmatprep.subr.bf16.mxu1 %v4970_v57  ;;  %v7418_v59 = vpop.f32.mrb[128].mxu0  ;;  %v3036_v26 = vadd.f32 %v7291_v16, %v7409_v8 }
 0x48d   :  { %v3530_v37 = vmul.f32 %v3466_v3, %v2875_v58  ;;  %v3468_v35 = vmax.f32 %v3084_v6, 0.0  ;;  %4973 = vmatpush1.bf16.msra.mxu1 %v4972_v4  ;;  %v7422_v52 = vpop.f32.mrb[129].mxu0  ;;  %v3038_v5 = vadd.f32 %v7293_v47, %v7409_v8  ;;  %v7429_v47 = vld [vmem:[%s8230_s3 + $0x20] sm:$0xff]  ;;  %v7448_v4 = vld [vmem:[%s8230_s3 + $0x30] sm:$0xff] }
 0x48e   :  { %v3531_v10 = vmul.f32 %v3467_v29, %v2877_v25  ;;  %v3469_v42 = vmax.f32 %v3086_v54, 0.0  ;;  %v3315_v63 = vpop.f32.mrb[128].mxu1  ;;  %8460 = vst [vmem:[#allocation35_spill] sm:$0xff] %v7448_v4  ;;  %v3155_v54 = vadd.f32 %v7418_v59, %v7253_v56 }
 0x48f   :  { %v4960_v44 = vpack.c.bf16 %v3530_v37, %v3522_v28  ;;  %v3532_v14 = vmul.f32 %v3468_v35, %v3036_v26  ;;  %v3317_v38 = vpop.f32.mrb[129].mxu1  ;;  %v3316_v26 = vadd.f32 %v3315_v63, %v7253_v56  ;;  %v3157_v37 = vadd.f32 %v7422_v52, %v7253_v56 }
 0x490   :  { %v3533_v49 = vmul.f32 %v3469_v42, %v3038_v5  ;;  %v3160_v24 = vpop.f32.mrb[130].mxu0  ;;  %v4958_v0 = vpack.c.bf16 %v3531_v10, %v3523_v15  ;;  %v7465_v15 = vld [vmem:[%s8230_s3 + $0x38] sm:$0xff]  ;;  %v3318_v35 = vadd.f32 %v3317_v38, %v7253_v56  ;;  %s5091_s3 = smov [#allocation2]  }
 0x491   :  { %v4976_v30 = vpack.c.bf16 %v3532_v14, %v3524_v53  ;;  %v3162_v12 = vpop.f32.mrb[131].mxu0  ;;  %8461 = vst [vmem:[#allocation36_spill] sm:$0xff] %v7465_v15  ;;  %v3161_v10 = vadd.f32 %v3160_v24, %v7269_v20  ;;  %s4614_s23 = sshll.u32 %s5091_s3, 4  ;;  %s4615_s23 = int_to_ptr.vmem [resolvable:$true] %s4614_s23 }
 0x492   :  { %v3321_v16 = vpop.f32.mrb[130].mxu1  ;;  %4959 = vmatprep.subr.bf16.mxu0 %v4958_v0  ;;  %v4974_v19 = vpack.c.bf16 %v3533_v49, %v3525_v7  ;;  %s5064_s24 = scalar_lea.vmem %s4615_s23, 128  ;;  %p5069_p1 = scmp.lt.s32.totalorder %s4615_s23, %s4615_s23 }
 0x493   :  { %v3323_v32 = vpop.f32.mrb[131].mxu1  ;;  %4961 = vmatpush1.bf16.msra.mxu0 %v4960_v44  ;;  %v3322_v42 = vadd.f32 %v3321_v16, %v7269_v20  ;;  %v3163_v44 = vadd.f32 %v3162_v12, %v7269_v20  ;;  %p5065_p0 = scmp.ne.s32.totalorder %s4615_s23, %s5064_s24  ;;  %p5070_p2 = scmp.lt.s32.totalorder %s5064_s24, %s5064_s24 }
 0x494   :  { %4975 = vmatprep.subr.bf16.mxu1 %v4974_v19  ;;  %v3166_v23 = vpop.f32.mrb[132].mxu0  ;;  %v3324_v0 = vadd.f32 %v3323_v32, %v7269_v20 }
 0x495   :  { %4977 = vmatpush1.bf16.msra.mxu1 %v4976_v30  ;;  %v3168_v36 = vpop.f32.mrb[133].mxu0  ;;  %v3167_v59 = vadd.f32 %v3166_v23, %v7279_v40  ;;  %p5071_p3 = por %p5070_p2, %p5069_p1 }
 0x496   :  { %v3327_v46 = vpop.f32.mrb[132].mxu1  ;;  %4802 = vmatmul.mubr.msk.f32.vlgmr.msra.gmra.mrb[160].mxu0 %vm1796_vm2, %v7429_v47  ;;  %v3169_v63 = vadd.f32 %v3168_v36, %v7279_v40 }
 0x497   :  { %v3329_v39 = vpop.f32.mrb[133].mxu1  ;;  %3649 = vmatprep.mubr.f32.mxu0 %v8389_v45  ;;  %v3328_v56 = vadd.f32 %v3327_v46, %v7279_v40  ;;  %p5072_p4 = pnand %p5071_p3, %p5065_p0 }
 0x498   :  { %4806 = vmatmul.mubr.msk.f32.vlgmr.msra.gmra.mrb[160].mxu1 %vm1796_vm2, %v7429_v47  ;;  %v3172_v34 = vpop.f32.mrb[134].mxu0  ;;  %v7516_v38 = vadd.f32 %v3329_v39, %v7279_v40  ;;  %v8462_v39 = vld [vmem:[#allocation32_spill] sm:$0xff] }
 0x499   :  { %v3174_v50 = vpop.f32.mrb[135].mxu0  ;;  %3738 = vmatprep.mubr.f32.mxu1 %v8389_v45  ;;  %v7520_v19 = vadd.f32 %v3172_v34, %v7305_v13 }
 0x49a   :  { %v3333_v41 = vpop.f32.mrb[134].mxu1  ;;  %4803 = vmatmul.mubr.msk.f32.gmra.mrb[162].mxu0 %vm1796_vm2, %v7437_v62  ;;  %v7523_v20 = vadd.f32 %v3174_v50, %v7305_v13 }
 0x49b   :  { %v3335_v11 = vpop.f32.mrb[135].mxu1  ;;  %3655 = vmatprep.mubr.f32.mxu0 %v8389_v45 }
 0x49c   :  { %4807 = vmatmul.mubr.msk.f32.gmra.mrb[162].mxu1 %vm1796_vm2, %v7437_v62  ;;  %v3178_v28 = vpop.f32.mrb[136].mxu0 }
 0x49d   :  { %v7452_v9 = vpop.f32.mrb[137].mxu0  ;;  %3744 = vmatprep.mubr.f32.mxu1 %v8389_v45 }
 0x49e   :  { %v7455_v43 = vpop.f32.mrb[136].mxu1  ;;  %4804 = vmatmul.mubr.msk.f32.gmra.mrb[164].mxu0 %vm1796_vm2, %v7448_v4 }
 0x49f   :  { %v7459_v27 = vpop.f32.mrb[137].mxu1  ;;  %3661 = vmatprep.mubr.f32.mxu0 %v8389_v45 }
 0x4a0   :  { %4808 = vmatmul.mubr.msk.f32.gmra.mrb[164].mxu1 %vm1796_vm2, %v7448_v4  ;;  %v7469_v1 = vpop.f32.mrb[138].mxu0 }
 0x4a1   :  { %v7471_v21 = vpop.f32.mrb[139].mxu0  ;;  %3750 = vmatprep.mubr.f32.mxu1 %v8389_v45 }
 0x4a2   :  { %v7474_v55 = vpop.f32.mrb[138].mxu1  ;;  %4805 = vmatmul.mubr.msk.f32.gmra.mrb[166].mxu0 %vm1796_vm2, %v7465_v15 }
 0x4a3   :  { %v7478_v57 = vpop.f32.mrb[139].mxu1  ;;  %3821 = vmatprep.mubr.f32.mxu0 %v8389_v45 }
 0x4a4   :  { %4809 = vmatmul.mubr.msk.f32.gmra.mrb[166].mxu1 %vm1796_vm2, %v7465_v15  ;;  %v7483_v58 = vpop.f32.mrb[140].mxu0 }
 0x4a5   :  { %v7485_v53 = vpop.f32.mrb[141].mxu0  ;;  %3910 = vmatprep.mubr.f32.mxu1 %v8389_v45 }
 0x4a6   :  { %v7488_v3 = vpop.f32.mrb[140].mxu1 }
 0x4a7   :  { %v7490_v6 = vpop.f32.mrb[141].mxu1 }
 0x4a8   :  { %v7492_v51 = vpop.f32.mrb[142].mxu0 }
 0x4a9   :  { %v7494_v25 = vpop.f32.mrb[143].mxu0 }
 0x4aa   :  { %v7496_v7 = vpop.f32.mrb[142].mxu1 }
 0x4ab   :  { %v7498_v29 = vpop.f32.mrb[143].mxu1 }
 0x4ac   :  { %v3202_v5 = vpop.f32.mrb[144].mxu0 }
 0x4ad   :  { %v3203_v14 = vadd.f32 %v3202_v5, %v7251_v33  ;;  %v3204_v49 = vpop.f32.mrb[145].mxu0  ;;  %v7527_v5 = vadd.f32 %v3333_v41, %v7305_v13 }
 0x4ae   :  { %v3363_v30 = vpop.f32.mrb[144].mxu1  ;;  %v3205_v52 = vadd.f32 %v3204_v49, %v7251_v33 }
 0x4af   :  { %v3414_v24 = vmax.f32 %v3203_v14, 0.0  ;;  %v3364_v12 = vadd.f32 %v3363_v30, %v7251_v33  ;;  %v3365_v16 = vpop.f32.mrb[145].mxu1  ;;  %v7531_v30 = vadd.f32 %v3335_v11, %v7305_v13 }
 0x4b0   :  { %v3415_v32 = vmax.f32 %v3205_v52, 0.0  ;;  %v3366_v23 = vadd.f32 %v3365_v16, %v7251_v33  ;;  %v3208_v36 = vpop.f32.mrb[146].mxu0  ;;  %v8463_v52 = vld [vmem:[#allocation33_spill] sm:$0xff] }
 0x4b1   :  { %v3478_v46 = vmul.f32 %v3414_v24, %v3155_v54  ;;  %v3416_v40 = vmax.f32 %v3364_v12, 0.0  ;;  %v3209_v14 = vadd.f32 %v3208_v36, %v8462_v39  ;;  %v3210_v49 = vpop.f32.mrb[147].mxu0  ;;  %v7535_v62 = vadd.f32 %v3178_v28, %v8463_v52 }
 0x4b2   :  { %v3479_v34 = vmul.f32 %v3415_v32, %v3157_v37  ;;  %v3417_v15 = vmax.f32 %v3366_v23, 0.0  ;;  %v3369_v4 = vpop.f32.mrb[146].mxu1  ;;  %v3211_v50 = vadd.f32 %v3210_v49, %v8462_v39  ;;  %v7540_v24 = vadd.f32 %v7452_v9, %v8463_v52 }
 0x4b3   :  { %v3480_v33 = vmul.f32 %v3416_v40, %v3316_v26  ;;  %v3422_v16 = vmax.f32 %v3209_v14, 0.0  ;;  %v3370_v41 = vadd.f32 %v3369_v4, %v8462_v39  ;;  %v3371_v54 = vpop.f32.mrb[147].mxu1  ;;  %v7545_v32 = vadd.f32 %v7455_v43, %v8463_v52 }
 0x4b4   :  { %v3481_v12 = vmul.f32 %v3417_v15, %v3318_v35  ;;  %v3423_v13 = vmax.f32 %v3211_v50, 0.0  ;;  %v3372_v11 = vadd.f32 %v3371_v54, %v8462_v39  ;;  %v3214_v37 = vpop.f32.mrb[148].mxu0  ;;  %v7550_v4 = vadd.f32 %v7459_v27, %v8463_v52 }
 0x4b5   :  { %v3486_v28 = vmul.f32 %v3422_v16, %v3161_v10  ;;  %v3424_v23 = vmax.f32 %v3370_v41, 0.0  ;;  %v3215_v26 = vadd.f32 %v3214_v37, %v7263_v48  ;;  %v3216_v36 = vpop.f32.mrb[149].mxu0 }
 0x4b6   :  { %v3487_v9 = vmul.f32 %v3423_v13, %v3163_v44  ;;  %v3425_v40 = vmax.f32 %v3372_v11, 0.0  ;;  %v3375_v15 = vpop.f32.mrb[148].mxu1  ;;  %v3217_v35 = vadd.f32 %v3216_v36, %v7263_v48 }
 0x4b7   :  { %v4980_v39 = vpack.c.bf16 %v3486_v28, %v3478_v46  ;;  %v3488_v14 = vmul.f32 %v3424_v23, %v3322_v42  ;;  %v3430_v49 = vmax.f32 %v3215_v26, 0.0  ;;  %v3376_v43 = vadd.f32 %v3375_v15, %v7263_v48  ;;  %v3377_v50 = vpop.f32.mrb[149].mxu1 }
 0x4b8   :  { %v3489_v10 = vmul.f32 %v3425_v40, %v3324_v0  ;;  %v3431_v16 = vmax.f32 %v3217_v35, 0.0  ;;  %v3378_v41 = vadd.f32 %v3377_v50, %v7263_v48  ;;  %v3220_v54 = vpop.f32.mrb[150].mxu0  ;;  %v4978_v37 = vpack.c.bf16 %v3487_v9, %v3479_v34 }
 0x4b9   :  { %v4996_v45 = vpack.c.bf16 %v3488_v14, %v3480_v33  ;;  %v3494_v27 = vmul.f32 %v3430_v49, %v3167_v59  ;;  %v3432_v52 = vmax.f32 %v3376_v43, 0.0  ;;  %v3221_v44 = vadd.f32 %v3220_v54, %v7285_v2  ;;  %v3222_v13 = vpop.f32.mrb[151].mxu0 }
 0x4ba   :  { %v3495_v11 = vmul.f32 %v3431_v16, %v3169_v63  ;;  %v3433_v36 = vmax.f32 %v3378_v41, 0.0  ;;  %v3381_v46 = vpop.f32.mrb[150].mxu1  ;;  %v3223_v42 = vadd.f32 %v3222_v13, %v7285_v2  ;;  %4979 = vmatprep.subr.bf16.mxu0 %v4978_v37  ;;  %v4994_v28 = vpack.c.bf16 %v3489_v10, %v3481_v12 }
 0x4bb   :  { %v3185_v0 = vadd.f32 %v7469_v1, %v7359_v60  ;;  %v3496_v23 = vmul.f32 %v3432_v52, %v3328_v56  ;;  %v3438_v48 = vmax.f32 %v3221_v44, 0.0  ;;  %v3382_v34 = vadd.f32 %v3381_v46, %v7285_v2  ;;  %v3383_v33 = vpop.f32.mrb[151].mxu1  ;;  %4981 = vmatpush1.bf16.msra.mxu0 %v4980_v39 }
 0x4bc   :  { %v3187_v59 = vadd.f32 %v7471_v21, %v7359_v60  ;;  %v3497_v63 = vmul.f32 %v3433_v36, %v7516_v38  ;;  %v3439_v26 = vmax.f32 %v3223_v42, 0.0  ;;  %v3384_v9 = vadd.f32 %v3383_v33, %v7285_v2  ;;  %4995 = vmatprep.subr.bf16.mxu1 %v4994_v28  ;;  %v3226_v40 = vpop.f32.mrb[152].mxu0 }
 0x4bd   :  { %v3346_v12 = vadd.f32 %v7474_v55, %v7359_v60  ;;  %v3502_v1 = vmul.f32 %v3438_v48, %v7520_v19  ;;  %v3440_v56 = vmax.f32 %v3382_v34, 0.0  ;;  %4997 = vmatpush1.bf16.msra.mxu1 %v4996_v45  ;;  %v3227_v15 = vadd.f32 %v3226_v40, %v7295_v22  ;;  %v3228_v35 = vpop.f32.mrb[153].mxu0 }
 0x4be   :  { %v3348_v21 = vadd.f32 %v7478_v57, %v7359_v60  ;;  %v3503_v38 = vmul.f32 %v3439_v26, %v7523_v20  ;;  %v3441_v39 = vmax.f32 %v3384_v9, 0.0  ;;  %v3387_v14 = vpop.f32.mrb[152].mxu1  ;;  %v3229_v2 = vadd.f32 %v3228_v35, %v7295_v22 }
 0x4bf   :  { %v4984_v49 = vpack.c.bf16 %v3502_v1, %v3494_v27  ;;  %v3504_v43 = vmul.f32 %v3440_v56, %v7527_v5  ;;  %v3446_v55 = vmax.f32 %v3227_v15, 0.0  ;;  %v3388_v19 = vadd.f32 %v3387_v14, %v7295_v22  ;;  %v3389_v50 = vpop.f32.mrb[153].mxu1 }
 0x4c0   :  { %v3505_v45 = vmul.f32 %v3441_v39, %v7531_v30  ;;  %v3447_v10 = vmax.f32 %v3229_v2, 0.0  ;;  %v3390_v16 = vadd.f32 %v3389_v50, %v7295_v22  ;;  %v3232_v41 = vpop.f32.mrb[154].mxu0  ;;  %v4982_v60 = vpack.c.bf16 %v3503_v38, %v3495_v11 }
 0x4c1   :  { %v5000_v57 = vpack.c.bf16 %v3504_v43, %v3496_v23  ;;  %v3510_v20 = vmul.f32 %v3446_v55, %v7535_v62  ;;  %v3448_v54 = vmax.f32 %v3388_v19, 0.0  ;;  %v3233_v37 = vadd.f32 %v3232_v41, %v7339_v31  ;;  %v3234_v27 = vpop.f32.mrb[155].mxu0 }
 0x4c2   :  { %v3511_v5 = vmul.f32 %v3447_v10, %v7540_v24  ;;  %v3449_v52 = vmax.f32 %v3390_v16, 0.0  ;;  %v3393_v44 = vpop.f32.mrb[154].mxu1  ;;  %v3235_v13 = vadd.f32 %v3234_v27, %v7339_v31  ;;  %4983 = vmatprep.subr.bf16.mxu0 %v4982_v60  ;;  %v4998_v30 = vpack.c.bf16 %v3505_v45, %v3497_v63 }
 0x4c3   :  { %v3191_v22 = vadd.f32 %v7483_v58, %v7386_v17  ;;  %v3512_v11 = vmul.f32 %v3448_v54, %v7545_v32  ;;  %v3454_v36 = vmax.f32 %v3233_v37, 0.0  ;;  %v3394_v62 = vadd.f32 %v3393_v44, %v7339_v31  ;;  %v3395_v46 = vpop.f32.mrb[155].mxu1  ;;  %4985 = vmatpush1.bf16.msra.mxu0 %v4984_v49 }
 0x4c4   :  { %v3193_v42 = vadd.f32 %v7485_v53, %v7386_v17  ;;  %v3513_v24 = vmul.f32 %v3449_v52, %v7550_v4  ;;  %v3455_v28 = vmax.f32 %v3235_v13, 0.0  ;;  %v3396_v23 = vadd.f32 %v3395_v46, %v7339_v31  ;;  %4999 = vmatprep.subr.bf16.mxu1 %v4998_v30  ;;  %v3238_v48 = vpop.f32.mrb[156].mxu0 }
 0x4c5   :  { %v3352_v58 = vadd.f32 %v7488_v3, %v7386_v17  ;;  %v3518_v34 = vmul.f32 %v3454_v36, %v3185_v0  ;;  %v3456_v32 = vmax.f32 %v3394_v62, 0.0  ;;  %5001 = vmatpush1.bf16.msra.mxu1 %v5000_v57  ;;  %v3239_v33 = vadd.f32 %v3238_v48, %v7366_v61  ;;  %v3240_v63 = vpop.f32.mrb[157].mxu0 }
 0x4c6   :  { %v3354_v26 = vadd.f32 %v7490_v6, %v7386_v17  ;;  %v3519_v53 = vmul.f32 %v3455_v28, %v3187_v59  ;;  %v3457_v9 = vmax.f32 %v3396_v23, 0.0  ;;  %v3399_v4 = vpop.f32.mrb[156].mxu1  ;;  %v3241_v40 = vadd.f32 %v3240_v63, %v7366_v61  ;;  %v8468_v28 = vld [vmem:[#allocation37_spill] sm:$0xff] }
 0x4c7   :  { %v4988_v31 = vpack.c.bf16 %v3518_v34, %v3510_v20  ;;  %v3520_v1 = vmul.f32 %v3456_v32, %v3346_v12  ;;  %v3462_v56 = vmax.f32 %v3239_v33, 0.0  ;;  %v3400_v15 = vadd.f32 %v3399_v4, %v7366_v61  ;;  %v3401_v3 = vpop.f32.mrb[157].mxu1  ;;  %v7638_v34 = vpop.permute.xlu1 %3554  ;;  %v8469_v32 = vld [vmem:[#allocation39_spill] sm:$0xff] }
 0x4c8   :  { %v3521_v0 = vmul.f32 %v3457_v9, %v3348_v21  ;;  %v3463_v35 = vmax.f32 %v3241_v40, 0.0  ;;  %v3402_v38 = vadd.f32 %v3401_v3, %v7366_v61  ;;  %v3244_v39 = vpop.f32.mrb[158].mxu0  ;;  %v4986_v14 = vpack.c.bf16 %v3519_v53, %v3511_v5  ;;  %v8470_v53 = vld [vmem:[#allocation38_spill] sm:$0xff] }
 0x4c9   :  { %v5004_v2 = vpack.c.bf16 %v3520_v1, %v3512_v11  ;;  %v3526_v49 = vmul.f32 %v3462_v56, %v3191_v22  ;;  %v3464_v17 = vmax.f32 %v3400_v15, 0.0  ;;  %v3245_v6 = vadd.f32 %v3244_v39, %v7394_v18  ;;  %v3246_v59 = vpop.f32.mrb[159].mxu0 }
 0x4ca   :  { %v3527_v43 = vmul.f32 %v3463_v35, %v3193_v42  ;;  %v3465_v55 = vmax.f32 %v3402_v38, 0.0  ;;  %v3405_v19 = vpop.f32.mrb[158].mxu1  ;;  %v3247_v12 = vadd.f32 %v3246_v59, %v7394_v18  ;;  %4987 = vmatprep.subr.bf16.mxu0 %v4986_v14  ;;  %v5002_v50 = vpack.c.bf16 %v3521_v0, %v3513_v24  ;;  %v8472_v35 = vld [vmem:[#allocation41_spill] sm:$0xff] }
 0x4cb   :  { %v3197_v21 = vadd.f32 %v7492_v51, %v7409_v8  ;;  %v3528_v45 = vmul.f32 %v3464_v17, %v3352_v58  ;;  %v3470_v61 = vmax.f32 %v3245_v6, 0.0  ;;  %v3406_v10 = vadd.f32 %v3405_v19, %v7394_v18  ;;  %v3407_v16 = vpop.f32.mrb[159].mxu1  ;;  %4989 = vmatpush1.bf16.msra.mxu0 %v4988_v31  ;;  %v8471_v31 = vld [vmem:[#allocation40_spill] sm:$0xff]  ;;  %v8473_v6 = vld [vmem:[#allocation6_spill] sm:$0xff] }
 0x4cc   :  { %v3199_v41 = vadd.f32 %v7494_v25, %v7409_v8  ;;  %v3529_v60 = vmul.f32 %v3465_v55, %v3354_v26  ;;  %v3471_v57 = vmax.f32 %v3247_v12, 0.0  ;;  %v3408_v20 = vadd.f32 %v3407_v16, %v7394_v18  ;;  %5003 = vmatprep.subr.bf16.mxu1 %v5002_v50  ;;  %v8474_v50 = vld [vmem:[#allocation5_spill] sm:$0xff] }
 0x4cd   :  { %v3358_v54 = vadd.f32 %v7496_v7, %v7409_v8  ;;  %v3534_v37 = vmul.f32 %v3470_v61, %v3197_v21  ;;  %v3472_v27 = vmax.f32 %v3406_v10, 0.0  ;;  %5005 = vmatpush1.bf16.msra.mxu1 %v5004_v2  ;;  %v3360_v51 = vadd.f32 %v7498_v29, %v7409_v8  ;;  %v8465_v8 = vld [vmem:[#allocation34_spill] sm:$0xff]  ;;  %v8466_v7 = vld [vmem:[#allocation35_spill] sm:$0xff]  ;;  %v7630_v29 = vpop.permute.xlu0 %3549 }
 0x4ce   :  { %v3535_v5 = vmul.f32 %v3471_v57, %v3199_v41  ;;  %v3473_v52 = vmax.f32 %v3408_v20, 0.0  ;;  %v8464_v18 = vmov 0.0   ;;  %v8475_v41 = vld [vmem:[#allocation7_spill] sm:$0xff] }
 0x4cf   :  { %v4992_v44 = vpack.c.bf16 %v3534_v37, %v3526_v49  ;;  %v3536_v13 = vmul.f32 %v3472_v27, %v3358_v54 }
 0x4d0   :  { %v3537_v30 = vmul.f32 %v3473_v52, %v3360_v51  ;;  %v4990_v25 = vpack.c.bf16 %v3535_v5, %v3527_v43  ;;  %v8476_v51 = vld [vmem:[#allocation8_spill] sm:$0xff] }
 0x4d1   :  { %v5008_v22 = vpack.c.bf16 %v3536_v13, %v3528_v45  ;;  %v7660_v2 = vpop.permute.xlu0 %3559 }
 0x4d2   :  { %4991 = vmatprep.subr.bf16.mxu0 %v4990_v25  ;;  %v5006_v11 = vpack.c.bf16 %v3537_v30, %v3529_v60 }
 0x4d3   :  { %4993 = vmatpush1.bf16.msra.mxu0 %v4992_v44 }
 0x4d4   :  { %5007 = vmatprep.subr.bf16.mxu1 %v5006_v11  ;;  %v7698_v11 = vpop.permute.xlu1 %3564 }
 0x4d5   :  { %5009 = vmatpush1.bf16.msra.mxu1 %v5008_v22 }
 0x4d6   :  { %4810 = vmatmul.mubr.msk.f32.vlgmr.msra.gmra.mrb[168].mxu0 %vm1796_vm2, %v7429_v47 }
 0x4d7   :  { %3827 = vmatprep.mubr.f32.mxu0 %v8464_v18 }
 0x4d8   :  { %4814 = vmatmul.mubr.msk.f32.vlgmr.msra.gmra.mrb[168].mxu1 %vm1796_vm2, %v7429_v47  ;;  %v8467_v47 = vld [vmem:[#allocation36_spill] sm:$0xff] }
 0x4d9   :  { %3916 = vmatprep.mubr.f32.mxu1 %v8464_v18 }
 0x4da   :  { %4811 = vmatmul.mubr.msk.f32.gmra.mrb[170].mxu0 %vm1796_vm2, %v8465_v8 }
 0x4db   :  { %3833 = vmatprep.mubr.f32.mxu0 %v8464_v18 }
 0x4dc   :  { %4815 = vmatmul.mubr.msk.f32.gmra.mrb[170].mxu1 %vm1796_vm2, %v8465_v8 }
 0x4dd   :  { %3922 = vmatprep.mubr.f32.mxu1 %v8464_v18 }
 0x4de   :  { %4812 = vmatmul.mubr.msk.f32.gmra.mrb[172].mxu0 %vm1796_vm2, %v8466_v7 }
 0x4df   :  { %3839 = vmatprep.mubr.f32.mxu0 %v8464_v18 }
 0x4e0   :  { %4816 = vmatmul.mubr.msk.f32.gmra.mrb[172].mxu1 %vm1796_vm2, %v8466_v7 }
 0x4e1   :  { %3928 = vmatprep.mubr.f32.mxu1 %v8464_v18 }
 0x4e2   :  { %4813 = vmatmul.mubr.msk.f32.gmra.mrb[174].mxu0 %vm1796_vm2, %v8467_v47 }
 0x4e4   :  { %4817 = vmatmul.mubr.msk.f32.gmra.mrb[174].mxu1 %vm1796_vm2, %v8467_v47  ;;  %v8477_v47 = vld [vmem:[#allocation10_spill] sm:$0xff] }
 0x569   :  { %v3645_v36 = vpop.f32.mrb[160].mxu0 }
 0x56a   :  { %v3646_v62 = vadd.f32 %v3645_v36, %v7630_v29  ;;  %v3647_v46 = vpop.f32.mrb[161].mxu0 }
 0x56b   :  { %v3734_v42 = vpop.f32.mrb[160].mxu1  ;;  %v3648_v24 = vadd.f32 %v3647_v46, %v7630_v29 }
 0x56c   :  { %v7635_v23 = vadd.f32 %v3646_v62, %v8468_v28  ;;  %v3735_v48 = vadd.f32 %v3734_v42, %v7630_v29  ;;  %v3736_v58 = vpop.f32.mrb[161].mxu1  ;;  %v8478_v42 = vld [vmem:[#allocation9_spill] sm:$0xff] }
 0x56d   :  { %v7641_v33 = vadd.f32 %v3648_v24, %v8469_v32  ;;  %v3737_v63 = vadd.f32 %v3736_v58, %v7630_v29  ;;  %v3651_v26 = vpop.f32.mrb[162].mxu0 }
 0x56e   :  { %v7645_v9 = vadd.f32 %v3735_v48, %v8470_v53  ;;  %v3652_v4 = vadd.f32 %v3651_v26, %v7638_v34  ;;  %v3653_v40 = vpop.f32.mrb[163].mxu0  ;;  %v4055_v3 = vmul.f32 %v7635_v23, %v7635_v23 }
 0x56f   :  { %v7649_v1 = vadd.f32 %v3737_v63, %v8471_v31  ;;  %v3740_v56 = vpop.f32.mrb[162].mxu1  ;;  %v3654_v15 = vadd.f32 %v3653_v40, %v7638_v34  ;;  %v4056_v0 = vmul.f32 %v7641_v33, %v7641_v33 }
 0x570   :  { %v7657_v38 = vadd.f32 %v3652_v4, %v8472_v35  ;;  %v3741_v39 = vadd.f32 %v3740_v56, %v7638_v34  ;;  %v3742_v14 = vpop.f32.mrb[163].mxu1  ;;  %v4057_v49 = vmul.f32 %v7645_v9, %v7645_v9  ;;  %v8479_v56 = vld [vmem:[#allocation11_spill] sm:$0xff] }
 0x571   :  { %v4058_v17 = vmul.f32 %v7649_v1, %v7649_v1  ;;  %v7667_v59 = vadd.f32 %v3654_v15, %v8473_v6  ;;  %v3743_v43 = vadd.f32 %v3742_v14, %v7638_v34  ;;  %v3657_v55 = vpop.f32.mrb[164].mxu0 }
 0x572   :  { %v3975_v19 = vadd.f32 %v7657_v38, %v7635_v23  ;;  %v4063_v12 = vmul.f32 %v7657_v38, %v7657_v38  ;;  %v7675_v21 = vadd.f32 %v3741_v39, %v8474_v50  ;;  %v3658_v45 = vadd.f32 %v3657_v55, %v7660_v2  ;;  %v3659_v61 = vpop.f32.mrb[165].mxu0  ;;  %v8481_v39 = vld [vmem:[#allocation13_spill] sm:$0xff] }
 0x573   :  { %v3984_v10 = vadd.f32 %v7667_v59, %v7641_v33  ;;  %v4064_v16 = vmul.f32 %v7667_v59, %v7667_v59  ;;  %v7683_v60 = vadd.f32 %v3743_v43, %v8475_v41  ;;  %v3746_v57 = vpop.f32.mrb[164].mxu1  ;;  %v3660_v20 = vadd.f32 %v3659_v61, %v7660_v2  ;;  %v8482_v61 = vld [vmem:[#allocation14_spill] sm:$0xff] }
 0x574   :  { %v4087_v54 = vadd.f32 %v4063_v12, %v4055_v3  ;;  %v3993_v37 = vadd.f32 %v7675_v21, %v7645_v9  ;;  %v4065_v27 = vmul.f32 %v7675_v21, %v7675_v21  ;;  %v7691_v5 = vadd.f32 %v3658_v45, %v8476_v51  ;;  %v3748_v52 = vpop.f32.mrb[165].mxu1  ;;  %v8480_v3 = vld [vmem:[#allocation12_spill] sm:$0xff] }
 0x575   :  { %v4096_v44 = vadd.f32 %v4064_v16, %v4056_v0  ;;  %v4002_v13 = vadd.f32 %v7683_v60, %v7649_v1  ;;  %v4066_v30 = vmul.f32 %v7683_v60, %v7683_v60  ;;  %v3747_v25 = vadd.f32 %v3746_v57, %v7660_v2  ;;  %v3663_v22 = vpop.f32.mrb[166].mxu0  ;;  %v8483_v57 = vld [vmem:[#allocation15_spill] sm:$0xff] }
 0x576   :  { %v4105_v18 = vadd.f32 %v4065_v27, %v4057_v49  ;;  %v3976_v8 = vadd.f32 %v3975_v19, %v7691_v5  ;;  %v4071_v7 = vmul.f32 %v7691_v5, %v7691_v5  ;;  %v7704_v36 = vadd.f32 %v3660_v20, %v8477_v47  ;;  %v3665_v62 = vpop.f32.mrb[167].mxu0 }
 0x577   :  { %v4114_v46 = vadd.f32 %v4066_v30, %v4058_v17  ;;  %v7707_v24 = vadd.f32 %v3747_v25, %v8478_v42  ;;  %v3749_v28 = vadd.f32 %v3748_v52, %v7660_v2  ;;  %v3664_v48 = vadd.f32 %v3663_v22, %v7698_v11  ;;  %v3752_v58 = vpop.f32.mrb[166].mxu1 }
 0x578   :  { %v4088_v32 = vadd.f32 %v4087_v54, %v4071_v7  ;;  %v3985_v63 = vadd.f32 %v3984_v10, %v7704_v36  ;;  %v4072_v26 = vmul.f32 %v7704_v36, %v7704_v36  ;;  %v3753_v53 = vadd.f32 %v3752_v58, %v7698_v11  ;;  %v3754_v4 = vpop.f32.mrb[167].mxu1 }
 0x579   :  { %v3994_v40 = vadd.f32 %v3993_v37, %v7707_v24  ;;  %v4073_v31 = vmul.f32 %v7707_v24, %v7707_v24  ;;  %v7719_v15 = vadd.f32 %v3749_v28, %v8479_v56  ;;  %v7722_v0 = vadd.f32 %v3664_v48, %v8480_v3 }
 0x57a   :  { %v4097_v35 = vadd.f32 %v4096_v44, %v4072_v26  ;;  %v7725_v14 = vadd.f32 %v3753_v53, %v8481_v39  ;;  %v3666_v49 = vadd.f32 %v3665_v62, %v7698_v11  ;;  %v3755_v17 = vadd.f32 %v3754_v4, %v7698_v11 }
 0x57b   :  { %v4106_v6 = vadd.f32 %v4105_v18, %v4073_v31  ;;  %v4003_v43 = vadd.f32 %v4002_v13, %v7719_v15  ;;  %v4074_v55 = vmul.f32 %v7719_v15, %v7719_v15  ;;  %v3977_v19 = vadd.f32 %v3976_v8, %v7722_v0 }
 0x57c   :  { %v4079_v12 = vmul.f32 %v7722_v0, %v7722_v0  ;;  %v3995_v50 = vadd.f32 %v3994_v40, %v7725_v14  ;;  %v4081_v45 = vmul.f32 %v7725_v14, %v7725_v14  ;;  %v7739_v10 = vadd.f32 %v3666_v49, %v8482_v61  ;;  %v7750_v61 = vpop.permute.xlu1 %4278 }
 0x57d   :  { %v4115_v16 = vadd.f32 %v4114_v46, %v4074_v55  ;;  %v3978_v41 = vrot.slane %v3977_v19, 4  ;;  %v7742_v20 = vadd.f32 %v3755_v17, %v8483_v57 }
 0x57e   :  { %v4089_v54 = vadd.f32 %v4088_v32, %v4079_v12  ;;  %v3996_v37 = vrot.slane %v3995_v50, 4  ;;  %v4107_v27 = vadd.f32 %v4106_v6, %v4081_v45  ;;  %v3986_v51 = vadd.f32 %v3985_v63, %v7739_v10 }
 0x57f   :  { %v3979_v52 = vadd.f32 %v3978_v41, %v3977_v19  ;;  %v4080_v44 = vmul.f32 %v7739_v10, %v7739_v10  ;;  %v4004_v13 = vadd.f32 %v4003_v43, %v7742_v20  ;;  %v4082_v30 = vmul.f32 %v7742_v20, %v7742_v20 }
 0x580   :  { %v4090_v25 = vrot.slane %v4089_v54, 4  ;;  %v3997_v22 = vadd.f32 %v3996_v37, %v3995_v50  ;;  %v4108_v18 = vrot.slane %v4107_v27, 4  ;;  %v3987_v8 = vrot.slane %v3986_v51, 4 }
 0x581   :  { %v3980_v7 = vrot.slane %v3979_v52, 2  ;;  %v4098_v47 = vadd.f32 %v4097_v35, %v4080_v44  ;;  %v4005_v62 = vrot.slane %v4004_v13, 4  ;;  %v4116_v46 = vadd.f32 %v4115_v16, %v4082_v30  ;;  %v7752_v16 = vpop.permute.xlu0 %4273 }
 0x582   :  { %v4091_v42 = vadd.f32 %v4090_v25, %v4089_v54  ;;  %v3998_v28 = vrot.slane %v3997_v22, 2  ;;  %v4109_v48 = vadd.f32 %v4108_v18, %v4107_v27  ;;  %v3988_v58 = vadd.f32 %v3987_v8, %v3986_v51 }
 0x583   :  { %v3981_v32 = vadd.f32 %v3980_v7, %v3979_v52  ;;  %v4099_v63 = vrot.slane %v4098_v47, 4  ;;  %v4006_v26 = vadd.f32 %v4005_v62, %v4004_v13  ;;  %v4117_v53 = vrot.slane %v4116_v46, 4 }
 0x584   :  { %v4092_v4 = vrot.slane %v4091_v42, 2  ;;  %v3999_v40 = vadd.f32 %v3998_v28, %v3997_v22  ;;  %v4110_v31 = vrot.slane %v4109_v48, 2  ;;  %v3989_v56 = vrot.slane %v3988_v58, 2 }
 0x585   :  { %v3982_v3 = vrot.slane %v3981_v32, 1  ;;  %v4100_v39 = vadd.f32 %v4099_v63, %v4098_v47  ;;  %v4007_v49 = vrot.slane %v4006_v26, 2  ;;  %v4118_v17 = vadd.f32 %v4117_v53, %v4116_v46 }
 0x586   :  { %v4093_v6 = vadd.f32 %v4092_v4, %v4091_v42  ;;  %v4000_v35 = vrot.slane %v3999_v40, 1  ;;  %v4111_v43 = vadd.f32 %v4110_v31, %v4109_v48  ;;  %v3990_v55 = vadd.f32 %v3989_v56, %v3988_v58  ;;  %v7778_v58 = vpop.permute.xlu1 %4325 }
 0x587   :  { %v3983_v19 = vadd.f32 %v3982_v3, %v3981_v32  ;;  %v4101_v12 = vrot.slane %v4100_v39, 2  ;;  %v4008_v50 = vadd.f32 %v4007_v49, %v4006_v26  ;;  %v4119_v45 = vrot.slane %v4118_v17, 2  ;;  %v7780_v32 = vpop.permute.xlu0 %4283 }
 0x588   :  { %v4094_v41 = vrot.slane %v4093_v6, 1  ;;  %v4001_v57 = vadd.f32 %v4000_v35, %v3999_v40  ;;  %v4112_v54 = vrot.slane %v4111_v43, 1  ;;  %v3991_v37 = vrot.slane %v3990_v55, 1 }
 0x589   :  { %v7754_v27 = vmul.f32 0.03125, %v3983_v19  ;;  %v4102_v51 = vadd.f32 %v4101_v12, %v4100_v39  ;;  %v4009_v52 = vrot.slane %v4008_v50, 1  ;;  %v4120_v44 = vadd.f32 %v4119_v45, %v4118_v17 }
 0x58a   :  { %v4095_v13 = vadd.f32 %v4094_v41, %v4093_v6  ;;  %v7756_v30 = vmul.f32 0.03125, %v4001_v57  ;;  %v4113_v25 = vadd.f32 %v4112_v54, %v4111_v43  ;;  %v3992_v22 = vadd.f32 %v3991_v37, %v3990_v55  ;;  %v7796_v55 = vpop.permute.xlu1 %4288 }
 0x58b   :  { %v4167_v18 = vmul.f32 %v7754_v27, %v7754_v27  ;;  %v4191_v8 = vsub.f32 %v7635_v23, %v7754_v27  ;;  %v4199_v7 = vsub.f32 %v7657_v38, %v7754_v27  ;;  %v4207_v47 = vsub.f32 %v7691_v5, %v7754_v27  ;;  %v7798_v19 = vpop.permute.xlu0 %4330 }
 0x58c   :  { %v4159_v62 = vmul.f32 0.03125, %v4095_v13  ;;  %v4215_v46 = vsub.f32 %v7722_v0, %v7754_v27  ;;  %v4161_v42 = vmul.f32 0.03125, %v4113_v25  ;;  %v4169_v28 = vmul.f32 %v7756_v30, %v7756_v30 }
 0x58d   :  { %v4193_v48 = vsub.f32 %v7645_v9, %v7756_v30  ;;  %v4201_v23 = vsub.f32 %v7675_v21, %v7756_v30  ;;  %v4209_v38 = vsub.f32 %v7707_v24, %v7756_v30  ;;  %v4217_v5 = vsub.f32 %v7725_v14, %v7756_v30 }
 0x58e   :  { %v4175_v0 = vsub.f32 %v4159_v62, %v4167_v18  ;;  %v4177_v63 = vsub.f32 %v4161_v42, %v4169_v28  ;;  %v7782_v26 = vmul.f32 0.03125, %v3992_v22  ;;  %v4103_v53 = vrot.slane %v4102_v51, 1  ;;  %v7810_v13 = vpop.permute.xlu1 %4340 }
 0x58f   :  { %v4010_v4 = vadd.f32 %v4009_v52, %v4008_v50  ;;  %v4121_v9 = vrot.slane %v4120_v44, 1  ;;  %v7812_v30 = vpop.permute.xlu0 %4335  ;;  %v5090_v18 = vmov 1966171168  }
 0x590   :  { %v4183_v40 = vmax.f32 %v4175_v0, 0.0  ;;  %v4185_v31 = vmax.f32 %v4177_v63, 0.0  ;;  %v4104_v21 = vadd.f32 %v4103_v53, %v4102_v51  ;;  %v4168_v24 = vmul.f32 %v7782_v26, %v7782_v26 }
 0x591   :  { %v4192_v14 = vsub.f32 %v7641_v33, %v7782_v26  ;;  %v4200_v56 = vsub.f32 %v7667_v59, %v7782_v26  ;;  %v4208_v3 = vsub.f32 %v7704_v36, %v7782_v26  ;;  %v4216_v39 = vsub.f32 %v7739_v10, %v7782_v26 }
 0x592   :  { %v4223_v49 = vadd.f32 1e-05, %v4183_v40  ;;  %v4225_v17 = vadd.f32 1e-05, %v4185_v31  ;;  %v4160_v6 = vmul.f32 0.03125, %v4104_v21  ;;  %v7794_v35 = vmul.f32 0.03125, %v4010_v4 }
 0x593   :  { %v4122_v43 = vadd.f32 %v4121_v9, %v4120_v44  ;;  %v7814_v62 = vunpack.c.l.s4 %v5090_v18  ;;  %v7816_v9 = vpop.permute.xlu1 %4418  ;;  %v7818_v40 = vpop.permute.xlu0 %4413 }
 0x594   :  { %5048 = vrsqrt.f32 %v4223_v49  ;;  %v4176_v12 = vsub.f32 %v4160_v6, %v4168_v24  ;;  %v4170_v50 = vmul.f32 %v7794_v35, %v7794_v35  ;;  %v4194_v45 = vsub.f32 %v7649_v1, %v7794_v35  ;;  %8484 = vst [vmem:[#allocation32_spill] sm:$0xff] %v7816_v9 }
 0x595   :  { %5050 = vrsqrt.f32 %v4225_v17  ;;  %v4162_v41 = vmul.f32 0.03125, %v4122_v43  ;;  %v4202_v57 = vsub.f32 %v7683_v60, %v7794_v35  ;;  %v4210_v54 = vsub.f32 %v7719_v15, %v7794_v35 }
 0x596   :  { %v4184_v37 = vmax.f32 %v4176_v12, 0.0  ;;  %v4218_v27 = vsub.f32 %v7742_v20, %v7794_v35 }
 0x597   :  { %v4178_v51 = vsub.f32 %v4162_v41, %v4170_v50 }
 0x598   :  { %v4224_v52 = vadd.f32 1e-05, %v4184_v37 }
 0x599   :  { %v4186_v44 = vmax.f32 %v4178_v51, 0.0 }
 0x59a   :  { %5052 = vrsqrt.f32 %v4224_v52 }
 0x59b   :  { %v4226_v25 = vadd.f32 1e-05, %v4186_v44 }
 0x59d   :  { %5054 = vrsqrt.f32 %v4226_v25 }
 0x59e   :  { %v5049_v22 = vpop.eup %5048 }
 0x59f   :  { %v5051_v28 = vpop.eup %5050  ;;  %v4239_v0 = vmul.f32 %v5049_v22, %v4191_v8  ;;  %v4247_v63 = vmul.f32 %v5049_v22, %v4199_v7  ;;  %v4255_v53 = vmul.f32 %v5049_v22, %v4207_v47  ;;  %v4263_v4 = vmul.f32 %v5049_v22, %v4215_v46 }
 0x5a0   :  { %v4241_v31 = vmul.f32 %v5051_v28, %v4193_v48  ;;  %v4249_v21 = vmul.f32 %v5051_v28, %v4201_v23  ;;  %v4257_v24 = vmul.f32 %v5051_v28, %v4209_v38  ;;  %v4265_v49 = vmul.f32 %v5051_v28, %v4217_v5  ;;  %v7836_v28 = vpop.permute.xlu1 %4428 }
 0x5a1   :  { %v4291_v17 = vmul.f32 %v7752_v16, %v4239_v0  ;;  %v4299_v6 = vmul.f32 %v7750_v61, %v4247_v63  ;;  %v4307_v43 = vmul.f32 %v7780_v32, %v4255_v53  ;;  %v4315_v12 = vmul.f32 %v7796_v55, %v4263_v4  ;;  %8485 = vst [vmem:[#allocation33_spill] sm:$0xff] %v7836_v28  ;;  %v7838_v0 = vpop.permute.xlu0 %4423 }
 0x5a2   :  { %v4293_v8 = vmul.f32 %v7752_v16, %v4241_v31  ;;  %v4301_v7 = vmul.f32 %v7750_v61, %v4249_v21  ;;  %v4309_v47 = vmul.f32 %v7780_v32, %v4257_v24  ;;  %v4317_v46 = vmul.f32 %v7796_v55, %v4265_v49  ;;  %8486 = vst [vmem:[#allocation34_spill] sm:$0xff] %v7838_v0 }
 0x5a3   :  { %v4343_v48 = vadd.f32 %v7778_v58, %v4291_v17  ;;  %v4351_v23 = vadd.f32 %v7798_v19, %v4299_v6  ;;  %v4359_v38 = vadd.f32 %v7812_v30, %v4307_v43  ;;  %v4367_v5 = vadd.f32 %v7810_v13, %v4315_v12 }
 0x5a4   :  { %v4345_v50 = vadd.f32 %v7778_v58, %v4293_v8  ;;  %v4353_v41 = vadd.f32 %v7798_v19, %v4301_v7  ;;  %v4361_v37 = vadd.f32 %v7812_v30, %v4309_v47  ;;  %v4369_v51 = vadd.f32 %v7810_v13, %v4317_v46  ;;  %v5053_v18 = vpop.eup %5052 }
 0x5a5   :  { %v4375_v52 = vmax.f32 %v4343_v48, 0.0  ;;  %v4383_v44 = vmax.f32 %v4351_v23, 0.0  ;;  %v4391_v25 = vmax.f32 %v4359_v38, 0.0  ;;  %v4399_v22 = vmax.f32 %v4367_v5, 0.0 }
 0x5a6   :  { %v4377_v63 = vmax.f32 %v4345_v50, 0.0  ;;  %v4385_v53 = vmax.f32 %v4353_v41, 0.0  ;;  %v4393_v4 = vmax.f32 %v4361_v37, 0.0  ;;  %v4401_v31 = vmax.f32 %v4369_v51, 0.0 }
 0x5a7   :  { %v5055_v21 = vpop.eup %5054  ;;  %v4431_v24 = vmul.f32 %v7818_v40, %v4375_v52  ;;  %v4439_v49 = vmul.f32 %v7816_v9, %v4383_v44  ;;  %v4447_v17 = vmul.f32 %v7838_v0, %v4391_v25  ;;  %v4455_v6 = vmul.f32 %v7836_v28, %v4399_v22 }
 0x5a8   :  { %v4433_v43 = vmul.f32 %v7818_v40, %v4377_v63  ;;  %v4441_v12 = vmul.f32 %v7816_v9, %v4385_v53  ;;  %v4449_v8 = vmul.f32 %v7838_v0, %v4393_v4  ;;  %v4457_v7 = vmul.f32 %v7836_v28, %v4401_v31 }
 0x5a9   :  { %v4463_v47 = vadd.f32 %v4439_v49, %v4431_v24  ;;  %v4240_v46 = vmul.f32 %v5053_v18, %v4192_v14  ;;  %v4248_v48 = vmul.f32 %v5053_v18, %v4200_v56  ;;  %v4256_v23 = vmul.f32 %v5053_v18, %v4208_v3  ;;  %v3823_v38 = vpop.f32.mrb[168].mxu0 }
 0x5aa   :  { %v4481_v5 = vadd.f32 %v4441_v12, %v4433_v43  ;;  %v4264_v50 = vmul.f32 %v5053_v18, %v4216_v39  ;;  %v4242_v41 = vmul.f32 %v5055_v21, %v4194_v45  ;;  %v4250_v33 = vmul.f32 %v5055_v21, %v4202_v57  ;;  %v3825_v59 = vpop.f32.mrb[169].mxu0 }
 0x5ab   :  { %v4464_v14 = vadd.f32 %v4463_v47, %v4447_v17  ;;  %v4292_v56 = vmul.f32 %v7752_v16, %v4240_v46  ;;  %v4300_v36 = vmul.f32 %v7750_v61, %v4248_v48  ;;  %v4308_v3 = vmul.f32 %v7780_v32, %v4256_v23  ;;  %v3912_v37 = vpop.f32.mrb[168].mxu1 }
 0x5ac   :  { %v4482_v51 = vadd.f32 %v4481_v5, %v4449_v8  ;;  %v4316_v10 = vmul.f32 %v7796_v55, %v4264_v50  ;;  %v4258_v1 = vmul.f32 %v5055_v21, %v4210_v54  ;;  %v4266_v60 = vmul.f32 %v5055_v21, %v4218_v27  ;;  %v3914_v26 = vpop.f32.mrb[169].mxu1 }
 0x5ad   :  { %v7876_v39 = vadd.f32 %v4464_v14, %v4455_v6  ;;  %v4344_v45 = vadd.f32 %v7778_v58, %v4292_v56  ;;  %v4352_v57 = vadd.f32 %v7798_v19, %v4300_v36  ;;  %v4360_v52 = vadd.f32 %v7812_v30, %v4308_v3  ;;  %v3829_v44 = vpop.f32.mrb[170].mxu0 }
 0x5ae   :  { %v7881_v25 = vadd.f32 %v4482_v51, %v4457_v7  ;;  %v4368_v22 = vadd.f32 %v7810_v13, %v4316_v10  ;;  %v4294_v15 = vmul.f32 %v7752_v16, %v4242_v41  ;;  %v4302_v54 = vmul.f32 %v7750_v61, %v4250_v33  ;;  %v3831_v20 = vpop.f32.mrb[171].mxu0 }
 0x5af   :  { %v4466_v35 = vrot.slane %v7876_v39, 4  ;;  %v4376_v27 = vmax.f32 %v4344_v45, 0.0  ;;  %v4384_v18 = vmax.f32 %v4352_v57, 0.0  ;;  %v4392_v63 = vmax.f32 %v4360_v52, 0.0  ;;  %v3918_v53 = vpop.f32.mrb[170].mxu1  ;;  %v8487_v45 = vld [vmem:[#allocation16_spill] sm:$0xff] }
 0x5b0   :  { %v4400_v31 = vmax.f32 %v4368_v22, 0.0  ;;  %v4310_v21 = vmul.f32 %v7780_v32, %v4258_v1  ;;  %v4318_v24 = vmul.f32 %v7796_v55, %v4266_v60  ;;  %v3920_v49 = vpop.f32.mrb[171].mxu1  ;;  %v4346_v12 = vadd.f32 %v7778_v58, %v4294_v15  ;;  %v8488_v52 = vld [vmem:[#allocation17_spill] sm:$0xff] }
 0x5b1   :  { %v4432_v17 = vmul.f32 %v7818_v40, %v4376_v27  ;;  %v4440_v6 = vmul.f32 %v7816_v9, %v4384_v18  ;;  %v4448_v43 = vmul.f32 %v7838_v0, %v4392_v63  ;;  %v3835_v8 = vpop.f32.mrb[172].mxu0  ;;  %v4354_v47 = vadd.f32 %v7798_v19, %v4302_v54  ;;  %v8489_v27 = vld [vmem:[#allocation18_spill] sm:$0xff] }
 0x5b2   :  { %v4456_v7 = vmul.f32 %v7836_v28, %v4400_v31  ;;  %v4362_v46 = vadd.f32 %v7812_v30, %v4310_v21  ;;  %v4370_v48 = vadd.f32 %v7810_v13, %v4318_v24  ;;  %v3837_v23 = vpop.f32.mrb[173].mxu0  ;;  %v4378_v50 = vmax.f32 %v4346_v12, 0.0 }
 0x5b3   :  { %v4472_v5 = vadd.f32 %v4440_v6, %v4432_v17  ;;  %v3824_v41 = vadd.f32 %v3823_v38, %v7630_v29  ;;  %v3913_v33 = vadd.f32 %v3912_v37, %v7630_v29  ;;  %v3924_v14 = vpop.f32.mrb[172].mxu1  ;;  %v4386_v56 = vmax.f32 %v4354_v47, 0.0 }
 0x5b4   :  { %v4394_v36 = vmax.f32 %v4362_v46, 0.0  ;;  %v4402_v3 = vmax.f32 %v4370_v48, 0.0  ;;  %v3826_v51 = vadd.f32 %v3825_v59, %v7630_v29  ;;  %v3926_v10 = vpop.f32.mrb[173].mxu1  ;;  %v4434_v60 = vmul.f32 %v7818_v40, %v4378_v50  ;;  %v8490_v48 = vld [vmem:[#allocation19_spill] sm:$0xff] }
 0x5b5   :  { %v4473_v1 = vadd.f32 %v4472_v5, %v4448_v43  ;;  %v7903_v57 = vadd.f32 %v3824_v41, %v8487_v45  ;;  %v7906_v22 = vadd.f32 %v3913_v33, %v8488_v52  ;;  %v3841_v15 = vpop.f32.mrb[174].mxu0  ;;  %v4442_v38 = vmul.f32 %v7816_v9, %v4386_v56  ;;  %v8492_v56 = vld [vmem:[#allocation21_spill] sm:$0xff] }
 0x5b6   :  { %v4450_v37 = vmul.f32 %v7838_v0, %v4394_v36  ;;  %v4458_v54 = vmul.f32 %v7836_v28, %v4402_v3  ;;  %v7912_v18 = vadd.f32 %v3826_v51, %v8489_v27  ;;  %v3843_v59 = vpop.f32.mrb[175].mxu0  ;;  %v3915_v24 = vadd.f32 %v3914_v26, %v7630_v29  ;;  %v8491_v26 = vld [vmem:[#allocation20_spill] sm:$0xff]  ;;  %v8493_v3 = vld [vmem:[#allocation22_spill] sm:$0xff] }
 0x5b7   :  { %v7914_v63 = vadd.f32 %v4473_v1, %v4456_v7  ;;  %v4059_v31 = vmul.f32 %v7903_v57, %v7903_v57  ;;  %v4061_v21 = vmul.f32 %v7906_v22, %v7906_v22  ;;  %v3930_v17 = vpop.f32.mrb[174].mxu1  ;;  %v4490_v6 = vadd.f32 %v4442_v38, %v4434_v60  ;;  %v8494_v1 = vld [vmem:[#allocation23_spill] sm:$0xff] }
 0x5b8   :  { %v4060_v43 = vmul.f32 %v7912_v18, %v7912_v18  ;;  %v3830_v12 = vadd.f32 %v3829_v44, %v7638_v34  ;;  %v3919_v47 = vadd.f32 %v3918_v53, %v7638_v34  ;;  %v3932_v46 = vpop.f32.mrb[175].mxu1  ;;  %v7927_v5 = vadd.f32 %v3915_v24, %v8490_v48 }
 0x5b9   :  { %v3832_v50 = vadd.f32 %v3831_v20, %v7638_v34  ;;  %v3921_v41 = vadd.f32 %v3920_v49, %v7638_v34  ;;  %v4491_v29 = vadd.f32 %v4490_v6, %v4450_v37  ;;  %v3836_v44 = vadd.f32 %v3835_v8, %v7660_v2  ;;  %v8495_v6 = vld [vmem:[#allocation24_spill] sm:$0xff] }
 0x5ba   :  { %v7932_v33 = vadd.f32 %v3830_v12, %v8491_v26  ;;  %v7935_v36 = vadd.f32 %v3919_v47, %v8492_v56  ;;  %v4062_v53 = vmul.f32 %v7927_v5, %v7927_v5  ;;  %v3925_v34 = vadd.f32 %v3924_v14, %v7660_v2 }
 0x5bb   :  { %v7941_v51 = vadd.f32 %v3832_v50, %v8493_v3  ;;  %v7944_v60 = vadd.f32 %v3921_v41, %v8494_v1  ;;  %v7947_v20 = vadd.f32 %v4491_v29, %v4458_v54  ;;  %v7967_v12 = vadd.f32 %v3836_v44, %v8495_v6  ;;  %v8496_v50 = vld [vmem:[#allocation25_spill] sm:$0xff] }
 0x5bc   :  { %v4011_v49 = vadd.f32 %v7932_v33, %v7903_v57  ;;  %v4067_v45 = vmul.f32 %v7932_v33, %v7932_v33  ;;  %v4029_v8 = vadd.f32 %v7935_v36, %v7906_v22  ;;  %v4069_v52 = vmul.f32 %v7935_v36, %v7935_v36 }
 0x5bd   :  { %v4020_v38 = vadd.f32 %v7941_v51, %v7912_v18  ;;  %v4068_v14 = vmul.f32 %v7941_v51, %v7941_v51  ;;  %v4038_v37 = vadd.f32 %v7944_v60, %v7927_v5  ;;  %v4070_v24 = vmul.f32 %v7944_v60, %v7944_v60 }
 0x5be   :  { %v4123_v27 = vadd.f32 %v4067_v45, %v4059_v31  ;;  %v4141_v47 = vadd.f32 %v4069_v52, %v4061_v21  ;;  %v7970_v41 = vadd.f32 %v3925_v34, %v8496_v50  ;;  %v3838_v29 = vadd.f32 %v3837_v23, %v7660_v2  ;;  %v8497_v21 = vld [vmem:[#allocation26_spill] sm:$0xff]  ;;  %v8498_v23 = vld [vmem:[#allocation27_spill] sm:$0xff] }
 0x5bf   :  { %v4132_v48 = vadd.f32 %v4068_v14, %v4060_v43  ;;  %v4150_v26 = vadd.f32 %v4070_v24, %v4062_v53  ;;  %v4012_v56 = vadd.f32 %v4011_v49, %v7967_v12  ;;  %v4075_v3 = vmul.f32 %v7967_v12, %v7967_v12 }
 0x5c0   :  { %v3927_v31 = vadd.f32 %v3926_v10, %v7660_v2  ;;  %v4030_v1 = vadd.f32 %v4029_v8, %v7970_v41  ;;  %v4077_v44 = vmul.f32 %v7970_v41, %v7970_v41  ;;  %v7981_v43 = vadd.f32 %v3838_v29, %v8497_v21  ;;  %v8499_v8 = vld [vmem:[#allocation28_spill] sm:$0xff] }
 0x5c1   :  { %v3842_v34 = vadd.f32 %v3841_v15, %v7698_v11  ;;  %v4124_v45 = vadd.f32 %v4123_v27, %v4075_v3  ;;  %v3931_v49 = vadd.f32 %v3930_v17, %v7698_v11  ;;  %v3844_v52 = vadd.f32 %v3843_v59, %v7698_v11  ;;  %v8500_v27 = vld [vmem:[#allocation29_spill] sm:$0xff]  ;;  %v8501_v17 = vld [vmem:[#allocation30_spill] sm:$0xff] }
 0x5c2   :  { %v7985_v53 = vadd.f32 %v3927_v31, %v8498_v23  ;;  %v4142_v14 = vadd.f32 %v4141_v47, %v4077_v44  ;;  %v4021_v2 = vadd.f32 %v4020_v38, %v7981_v43  ;;  %v4076_v10 = vmul.f32 %v7981_v43, %v7981_v43 }
 0x5c3   :  { %v7993_v24 = vadd.f32 %v3842_v34, %v8499_v8  ;;  %v7999_v50 = vadd.f32 %v3931_v49, %v8500_v27  ;;  %v8002_v29 = vadd.f32 %v3844_v52, %v8501_v17  ;;  %v3933_v3 = vadd.f32 %v3932_v46, %v7698_v11  ;;  %v8502_v49 = vld [vmem:[#allocation31_spill] sm:$0xff] }
 0x5c4   :  { %v4039_v6 = vadd.f32 %v4038_v37, %v7985_v53  ;;  %v4078_v15 = vmul.f32 %v7985_v53, %v7985_v53  ;;  %v4133_v59 = vadd.f32 %v4132_v48, %v4076_v10  ;;  %v8020_v11 = vadd.f32 %v4466_v35, %v7876_v39 }
 0x5c5   :  { %v4013_v38 = vadd.f32 %v4012_v56, %v7993_v24  ;;  %v4083_v47 = vmul.f32 %v7993_v24, %v7993_v24  ;;  %v4031_v37 = vadd.f32 %v4030_v1, %v7999_v50  ;;  %v4085_v44 = vmul.f32 %v7999_v50, %v7999_v50 }
 0x5c6   :  { %v4151_v31 = vadd.f32 %v4150_v26, %v4078_v15  ;;  %v4022_v21 = vadd.f32 %v4021_v2, %v8002_v29  ;;  %v4084_v48 = vmul.f32 %v8002_v29, %v8002_v29  ;;  %v8015_v56 = vadd.f32 %v3933_v3, %v8502_v49 }
 0x5c7   :  { %v4014_v34 = vrot.slane %v4013_v38, 4  ;;  %v4125_v23 = vadd.f32 %v4124_v45, %v4083_v47  ;;  %v4032_v52 = vrot.slane %v4031_v37, 4  ;;  %v4143_v10 = vadd.f32 %v4142_v14, %v4085_v44 }
 0x5c8   :  { %v4023_v8 = vrot.slane %v4022_v21, 4  ;;  %v4134_v1 = vadd.f32 %v4133_v59, %v4084_v48  ;;  %v4040_v2 = vadd.f32 %v4039_v6, %v8015_v56  ;;  %v4086_v17 = vmul.f32 %v8015_v56, %v8015_v56 }
 0x5c9   :  { %v4015_v46 = vadd.f32 %v4014_v34, %v4013_v38  ;;  %v4126_v26 = vrot.slane %v4125_v23, 4  ;;  %v4033_v45 = vadd.f32 %v4032_v52, %v4031_v37  ;;  %v4144_v15 = vrot.slane %v4143_v10, 4 }
 0x5ca   :  { %v4024_v27 = vadd.f32 %v4023_v8, %v4022_v21  ;;  %v4135_v14 = vrot.slane %v4134_v1, 4  ;;  %v4041_v44 = vrot.slane %v4040_v2, 4  ;;  %v4152_v39 = vadd.f32 %v4151_v31, %v4086_v17 }
 0x5cb   :  { %v4016_v47 = vrot.slane %v4015_v46, 2  ;;  %v4127_v3 = vadd.f32 %v4126_v26, %v4125_v23  ;;  %v4034_v49 = vrot.slane %v4033_v45, 2  ;;  %v4145_v42 = vadd.f32 %v4144_v15, %v4143_v10 }
 0x5cc   :  { %v4025_v54 = vrot.slane %v4024_v27, 2  ;;  %v4136_v34 = vadd.f32 %v4135_v14, %v4134_v1  ;;  %v4042_v59 = vadd.f32 %v4041_v44, %v4040_v2  ;;  %v4153_v52 = vrot.slane %v4152_v39, 4 }
 0x5cd   :  { %v4017_v35 = vadd.f32 %v4016_v47, %v4015_v46  ;;  %v4128_v38 = vrot.slane %v4127_v3, 2  ;;  %v4035_v48 = vadd.f32 %v4034_v49, %v4033_v45  ;;  %v4146_v6 = vrot.slane %v4145_v42, 2 }
 0x5ce   :  { %v4026_v37 = vadd.f32 %v4025_v54, %v4024_v27  ;;  %v4137_v4 = vrot.slane %v4136_v34, 2  ;;  %v4043_v7 = vrot.slane %v4042_v59, 2  ;;  %v4154_v0 = vadd.f32 %v4153_v52, %v4152_v39 }
 0x5cf   :  { %v4018_v21 = vrot.slane %v4017_v35, 1  ;;  %v4129_v8 = vadd.f32 %v4128_v38, %v4127_v3  ;;  %v4036_v28 = vrot.slane %v4035_v48, 1  ;;  %v4147_v23 = vadd.f32 %v4146_v6, %v4145_v42 }
 0x5d0   :  { %v4027_v26 = vrot.slane %v4026_v37, 1  ;;  %v4138_v15 = vadd.f32 %v4137_v4, %v4136_v34  ;;  %v4044_v31 = vadd.f32 %v4043_v7, %v4042_v59  ;;  %v4155_v2 = vrot.slane %v4154_v0, 2 }
 0x5d1   :  { %v4019_v9 = vadd.f32 %v4018_v21, %v4017_v35  ;;  %v4130_v10 = vrot.slane %v4129_v8, 1  ;;  %v4037_v46 = vadd.f32 %v4036_v28, %v4035_v48  ;;  %v4148_v17 = vrot.slane %v4147_v23, 1 }
 0x5d2   :  { %v4028_v1 = vadd.f32 %v4027_v26, %v4026_v37  ;;  %v4139_v27 = vrot.slane %v4138_v15, 1  ;;  %v4045_v47 = vrot.slane %v4044_v31, 1  ;;  %v4156_v42 = vadd.f32 %v4155_v2, %v4154_v0 }
 0x5d3   :  { %v8025_v45 = vmul.f32 0.03125, %v4019_v9  ;;  %v4131_v54 = vadd.f32 %v4130_v10, %v4129_v8  ;;  %v8027_v3 = vmul.f32 0.03125, %v4037_v46  ;;  %v4149_v14 = vadd.f32 %v4148_v17, %v4147_v23 }
 0x5d4   :  { %v8029_v44 = vmul.f32 0.03125, %v4028_v1  ;;  %v4140_v52 = vadd.f32 %v4139_v27, %v4138_v15  ;;  %v4046_v2 = vadd.f32 %v4045_v47, %v4044_v31  ;;  %v4468_v27 = vrot.slane %v8020_v11, 2 }
 0x5d5   :  { %v4163_v49 = vmul.f32 0.03125, %v4131_v54  ;;  %v4171_v4 = vmul.f32 %v8025_v45, %v8025_v45  ;;  %v4195_v28 = vsub.f32 %v7903_v57, %v8025_v45  ;;  %v4203_v9 = vsub.f32 %v7932_v33, %v8025_v45 }
 0x5d6   :  { %v4211_v7 = vsub.f32 %v7967_v12, %v8025_v45  ;;  %v4219_v39 = vsub.f32 %v7993_v24, %v8025_v45  ;;  %v4165_v35 = vmul.f32 0.03125, %v4149_v14  ;;  %v4173_v0 = vmul.f32 %v8027_v3, %v8027_v3 }
 0x5d7   :  { %v4179_v38 = vsub.f32 %v4163_v49, %v4171_v4  ;;  %v4197_v34 = vsub.f32 %v7906_v22, %v8027_v3  ;;  %v4205_v59 = vsub.f32 %v7935_v36, %v8027_v3  ;;  %v4213_v48 = vsub.f32 %v7970_v41, %v8027_v3 }
 0x5d8   :  { %v4181_v6 = vsub.f32 %v4165_v35, %v4173_v0  ;;  %v4221_v37 = vsub.f32 %v7999_v50, %v8027_v3  ;;  %v4172_v21 = vmul.f32 %v8029_v44, %v8029_v44  ;;  %v4196_v23 = vsub.f32 %v7912_v18, %v8029_v44 }
 0x5d9   :  { %v4187_v8 = vmax.f32 %v4179_v38, 0.0  ;;  %v4164_v17 = vmul.f32 0.03125, %v4140_v52  ;;  %v4157_v54 = vrot.slane %v4156_v42, 1  ;;  %v8503_v14 = vrot.slane %v7914_v63, 4 }
 0x5da   :  { %v4189_v46 = vmax.f32 %v4181_v6, 0.0  ;;  %v8065_v0 = vmul.f32 0.03125, %v4046_v2  ;;  %v8504_v38 = vrot.slane %v7881_v25, 4  ;;  %v4469_v31 = vadd.f32 %v4468_v27, %v8020_v11 }
 0x5db   :  { %v4227_v15 = vadd.f32 1e-05, %v4187_v8  ;;  %v4476_v49 = vadd.f32 %v8503_v14, %v7914_v63  ;;  %v4180_v35 = vsub.f32 %v4164_v17, %v4172_v21  ;;  %v4158_v52 = vadd.f32 %v4157_v54, %v4156_v42 }
 0x5dc   :  { %v4229_v4 = vadd.f32 1e-05, %v4189_v46  ;;  %v4485_v6 = vadd.f32 %v8504_v38, %v7881_v25  ;;  %v4174_v1 = vmul.f32 %v8065_v0, %v8065_v0  ;;  %v4470_v11 = vrot.slane %v4469_v31, 1 }
 0x5dd   :  { %5056 = vrsqrt.f32 %v4227_v15  ;;  %v4477_v47 = vrot.slane %v4476_v49, 2  ;;  %v4188_v8 = vmax.f32 %v4180_v35, 0.0  ;;  %v4166_v21 = vmul.f32 0.03125, %v4158_v52 }
 0x5de   :  { %5058 = vrsqrt.f32 %v4229_v4  ;;  %v4486_v2 = vrot.slane %v4485_v6, 2  ;;  %v8505_v27 = vrot.slane %v7947_v20, 4  ;;  %v4563_v38 = vunpack.c.0.s8 %v7814_v62 }
 0x5df   :  { %v4478_v17 = vadd.f32 %v4477_v47, %v4476_v49  ;;  %v4228_v15 = vadd.f32 1e-05, %v4188_v8  ;;  %v4182_v54 = vsub.f32 %v4166_v21, %v4174_v1  ;;  %v8506_v52 = vlaneseq  ;;  %v8088_v47 = vpop.permute.xlu0 %4538 }
 0x5e0   :  { %v4494_v14 = vadd.f32 %v8505_v27, %v7947_v20  ;;  %v4487_v35 = vadd.f32 %v4486_v2, %v4485_v6  ;;  %v4471_v25 = vadd.f32 %v4470_v11, %v4469_v31  ;;  %v8514_v18 = vsub.f32 %v7944_v60, %v8065_v0 }
 0x5e1   :  { %v4479_v4 = vrot.slane %v4478_v17, 1  ;;  %v4565_v46 = vshrl.u32 %v8506_v52, 7  ;;  %v4190_v63 = vmax.f32 %v4182_v54, 0.0  ;;  %5060 = vrsqrt.f32 %v4228_v15  ;;  %v8507_v52 = vld [vmem:[#allocation32_spill] sm:$0xff] }
 0x5e2   :  { %v4495_v10 = vrot.slane %v4494_v14, 2  ;;  %v4488_v26 = vrot.slane %v4487_v35, 1  ;;  %v8098_v31 = vadd.f32 %v8088_v47, %v4471_v25 }
 0x5e3   :  { %v4230_v42 = vadd.f32 1e-05, %v4190_v63  ;;  %v8090_v1 = vadd.f32 %v4479_v4, %v4478_v17  ;;  %v8092_v8 = vsub.s32 %v4563_v38, %v4565_v46 }
 0x5e4   :  { %v8086_v49 = vadd.f32 %v4495_v10, %v4494_v14  ;;  %v8094_v6 = vadd.f32 %v4488_v26, %v4487_v35 }
 0x5e5   :  { %5062 = vrsqrt.f32 %v4230_v42 }
 0x5e6   :  { %v4497_v62 = vrot.slane %v8086_v49, 1 }
 0x5e7   :  { %v5057_v20 = vpop.eup %5056 }
 0x5e8   :  { %v5059_v21 = vpop.eup %5058  ;;  %v4243_v10 = vmul.f32 %v5057_v20, %v4195_v28  ;;  %v4251_v63 = vmul.f32 %v5057_v20, %v4203_v9  ;;  %v4259_v46 = vmul.f32 %v5057_v20, %v4211_v7  ;;  %v4267_v26 = vmul.f32 %v5057_v20, %v4219_v39 }
 0x5e9   :  { %v4245_v25 = vmul.f32 %v5059_v21, %v4197_v34  ;;  %v4253_v57 = vmul.f32 %v5059_v21, %v4205_v59  ;;  %v4261_v33 = vmul.f32 %v5059_v21, %v4213_v48  ;;  %v4269_v12 = vmul.f32 %v5059_v21, %v4221_v37  ;;  %v8508_v21 = vld [vmem:[#allocation34_spill] sm:$0xff] }
 0x5ea   :  { %v4295_v28 = vmul.f32 %v7752_v16, %v4243_v10  ;;  %v4303_v24 = vmul.f32 %v7750_v61, %v4251_v63  ;;  %v4311_v45 = vmul.f32 %v7780_v32, %v4259_v46  ;;  %v4319_v22 = vmul.f32 %v7796_v55, %v4267_v26  ;;  %v8509_v63 = vld [vmem:[#allocation33_spill] sm:$0xff] }
 0x5eb   :  { %v4297_v9 = vmul.f32 %v7752_v16, %v4245_v25  ;;  %v4305_v36 = vmul.f32 %v7750_v61, %v4253_v57  ;;  %v4313_v7 = vmul.f32 %v7780_v32, %v4261_v33  ;;  %v4321_v41 = vmul.f32 %v7796_v55, %v4269_v12  ;;  %v5061_v54 = vpop.eup %5060 }
 0x5ec   :  { %v4347_v39 = vadd.f32 %v7778_v58, %v4295_v28  ;;  %v4355_v50 = vadd.f32 %v7798_v19, %v4303_v24  ;;  %v4363_v3 = vadd.f32 %v7812_v30, %v4311_v45  ;;  %v4371_v34 = vadd.f32 %v7810_v13, %v4319_v22 }
 0x5ed   :  { %v4349_v59 = vadd.f32 %v7778_v58, %v4297_v9  ;;  %v4357_v48 = vadd.f32 %v7798_v19, %v4305_v36  ;;  %v4365_v37 = vadd.f32 %v7812_v30, %v4313_v7  ;;  %v4373_v42 = vadd.f32 %v7810_v13, %v4321_v41 }
 0x5ee   :  { %v4379_v11 = vmax.f32 %v4347_v39, 0.0  ;;  %v4387_v17 = vmax.f32 %v4355_v50, 0.0  ;;  %v4395_v2 = vmax.f32 %v4363_v3, 0.0  ;;  %v4403_v15 = vmax.f32 %v4371_v34, 0.0 }
 0x5ef   :  { %v4381_v27 = vmax.f32 %v4349_v59, 0.0  ;;  %v4389_v14 = vmax.f32 %v4357_v48, 0.0  ;;  %v4397_v4 = vmax.f32 %v4365_v37, 0.0  ;;  %v4405_v35 = vmax.f32 %v4373_v42, 0.0  ;;  %v5063_v26 = vpop.eup %5062 }
 0x5f0   :  { %v4435_v38 = vmul.f32 %v7818_v40, %v4379_v11  ;;  %v4443_v20 = vmul.f32 %v8507_v52, %v4387_v17  ;;  %v4451_v10 = vmul.f32 %v8508_v21, %v4395_v2  ;;  %v4459_v46 = vmul.f32 %v8509_v63, %v4403_v15 }
 0x5f1   :  { %v4437_v25 = vmul.f32 %v7818_v40, %v4381_v27  ;;  %v4445_v57 = vmul.f32 %v8507_v52, %v4389_v14  ;;  %v4453_v33 = vmul.f32 %v8508_v21, %v4397_v4  ;;  %v4461_v12 = vmul.f32 %v8509_v63, %v4405_v35 }
 0x5f2   :  { %v4499_v28 = vadd.f32 %v4443_v20, %v4435_v38  ;;  %v4244_v24 = vmul.f32 %v5061_v54, %v4196_v23  ;;  %v8510_v45 = vsub.f32 %v7941_v51, %v8029_v44  ;;  %v8511_v9 = vsub.f32 %v7981_v43, %v8029_v44 }
 0x5f3   :  { %v4517_v7 = vadd.f32 %v4445_v57, %v4437_v25  ;;  %v8512_v41 = vsub.f32 %v8002_v29, %v8029_v44  ;;  %v8513_v50 = vsub.f32 %v7927_v5, %v8065_v0  ;;  %v4254_v23 = vmul.f32 %v5063_v26, %v8514_v18 }
 0x5f4   :  { %v4252_v22 = vmul.f32 %v5061_v54, %v8510_v45  ;;  %v4260_v36 = vmul.f32 %v5061_v54, %v8511_v9  ;;  %v4500_v34 = vadd.f32 %v4499_v28, %v4451_v10  ;;  %v4296_v51 = vmul.f32 %v7752_v16, %v4244_v24 }
 0x5f5   :  { %v4268_v39 = vmul.f32 %v5061_v54, %v8512_v41  ;;  %v4246_v3 = vmul.f32 %v5063_v26, %v8513_v50  ;;  %v4518_v48 = vadd.f32 %v4517_v7, %v4453_v33  ;;  %v8515_v29 = vsub.f32 %v7985_v53, %v8065_v0 }
 0x5f6   :  { %v4304_v59 = vmul.f32 %v7750_v61, %v4252_v22  ;;  %v4312_v43 = vmul.f32 %v7780_v32, %v4260_v36  ;;  %v8516_v5 = vsub.f32 %v8015_v56, %v8065_v0  ;;  %v4501_v60 = vadd.f32 %v4500_v34, %v4459_v46 }
 0x5f7   :  { %v4320_v37 = vmul.f32 %v7796_v55, %v4268_v39  ;;  %v4262_v44 = vmul.f32 %v5063_v26, %v8515_v29  ;;  %v4348_v11 = vadd.f32 %v7778_v58, %v4296_v51  ;;  %v4519_v15 = vadd.f32 %v4518_v48, %v4461_v12 }
 0x5f8   :  { %v4270_v42 = vmul.f32 %v5063_v26, %v8516_v5  ;;  %v4356_v17 = vadd.f32 %v7798_v19, %v4304_v59  ;;  %v4364_v2 = vadd.f32 %v7812_v30, %v4312_v43  ;;  %v4298_v27 = vmul.f32 %v7752_v16, %v4246_v3 }
 0x5f9   :  { %v4372_v54 = vadd.f32 %v7810_v13, %v4320_v37  ;;  %v4306_v14 = vmul.f32 %v7750_v61, %v4254_v23  ;;  %v4502_v53 = vrot.slane %v4501_v60, 4  ;;  %v4380_v4 = vmax.f32 %v4348_v11, 0.0 }
 0x5fa   :  { %v4388_v35 = vmax.f32 %v4356_v17, 0.0  ;;  %v4396_v38 = vmax.f32 %v4364_v2, 0.0  ;;  %v4520_v56 = vrot.slane %v4519_v15, 4  ;;  %v4314_v20 = vmul.f32 %v7780_v32, %v4262_v44 }
 0x5fb   :  { %v4404_v0 = vmax.f32 %v4372_v54, 0.0  ;;  %v4322_v10 = vmul.f32 %v7796_v55, %v4270_v42  ;;  %v4436_v46 = vmul.f32 %v7818_v40, %v4380_v4  ;;  %v4350_v25 = vadd.f32 %v7778_v58, %v4298_v27 }
 0x5fc   :  { %v4444_v26 = vmul.f32 %v8507_v52, %v4388_v35  ;;  %v4542_v16 = vadd.f32 %v8088_v47, %v8090_v1  ;;  %v4452_v61 = vmul.f32 %v8508_v21, %v4396_v38  ;;  %v4358_v57 = vadd.f32 %v7798_v19, %v4306_v14 }
 0x5fd   :  { %v4366_v33 = vadd.f32 %v7812_v30, %v4314_v20  ;;  %v4374_v12 = vadd.f32 %v7810_v13, %v4322_v10  ;;  %v4382_v28 = vmax.f32 %v4350_v25, 0.0  ;;  %v4498_v55 = vadd.f32 %v4497_v62, %v8086_v49 }
 0x5fe   :  { %v4508_v32 = vadd.f32 %v4444_v26, %v4436_v46  ;;  %v4503_v24 = vadd.f32 %v4502_v53, %v4501_v60  ;;  %v4460_v58 = vmul.f32 %v8509_v63, %v4404_v0  ;;  %v4390_v45 = vmax.f32 %v4358_v57, 0.0 }
 0x5ff   :  { %v4398_v22 = vmax.f32 %v4366_v33, 0.0  ;;  %v4521_v1 = vadd.f32 %v4520_v56, %v4519_v15  ;;  %v4438_v36 = vmul.f32 %v7818_v40, %v4382_v28  ;;  %v4543_v30 = vadd.f32 %v8088_v47, %v8094_v6 }
 0x600   :  { %v4509_v9 = vadd.f32 %v4508_v32, %v4452_v61  ;;  %v4504_v19 = vrot.slane %v4503_v24, 2  ;;  %v4406_v13 = vmax.f32 %v4374_v12, 0.0  ;;  %v4446_v7 = vmul.f32 %v8507_v52, %v4390_v45 }
 0x601   :  { %v4544_v49 = vadd.f32 %v8088_v47, %v4498_v55  ;;  %v4557_v62 = vcombine.low %v8098_v31, %v4542_v16  ;;  %v4454_v50 = vmul.f32 %v8508_v21, %v4398_v22  ;;  %v4522_v18 = vrot.slane %v4521_v1, 2 }
 0x602   :  { %v4510_v41 = vadd.f32 %v4509_v9, %v4460_v58  ;;  %v4505_v39 = vadd.f32 %v4504_v19, %v4503_v24  ;;  %v4526_v3 = vadd.f32 %v4446_v7, %v4438_v36  ;;  %v4462_v51 = vmul.f32 %v8509_v63, %v4406_v13 }
 0x603   :  { %v4558_v34 = vcombine.low %v4543_v30, %v4544_v49  ;;  %v4567_v40 = vrot.slane %v4557_v62, %v8092_v8  ;;  %v4523_v37 = vadd.f32 %v4522_v18, %v4521_v1 }
 0x604   :  { %v4511_v23 = vrot.slane %v4510_v41, 4  ;;  %v4527_v6 = vadd.f32 %v4526_v3, %v4454_v50  ;;  %v4506_v59 = vrot.slane %v4505_v39, 1 }
 0x605   :  { %v4574_v52 = vrot.slane %v4558_v34, %v8092_v8  ;;  %v4524_v42 = vrot.slane %v4523_v37, 1 }
 0x606   :  { %v4512_v43 = vadd.f32 %v4511_v23, %v4510_v41  ;;  %v4528_v48 = vadd.f32 %v4527_v6, %v4462_v51  ;;  %v4507_v5 = vadd.f32 %v4506_v59, %v4505_v39 }
 0x607   :  { %v4589_v44 = vcombine.low %v4567_v40, %v4574_v52  ;;  %v4525_v63 = vadd.f32 %v4524_v42, %v4523_v37 }
 0x608   :  { %v4513_v29 = vrot.slane %v4512_v43, 2  ;;  %v4529_v31 = vrot.slane %v4528_v48, 4  ;;  %v4545_v15 = vadd.f32 %v8088_v47, %v4507_v5 }
 0x609   :  { %v4547_v35 = vadd.f32 %v8088_v47, %v4525_v63  ;;  %v4597_v46 = vrot.slane %v4589_v44, %v8092_v8 }
 0x60a   :  { %v4514_v21 = vadd.f32 %v4513_v29, %v4512_v43  ;;  %v4530_v60 = vadd.f32 %v4529_v31, %v4528_v48 }
 0x60c   :  { %v4515_v11 = vrot.slane %v4514_v21, 1  ;;  %v4531_v17 = vrot.slane %v4530_v60, 2 }
 0x60e   :  { %v4516_v2 = vadd.f32 %v4515_v11, %v4514_v21  ;;  %v4532_v54 = vadd.f32 %v4531_v17, %v4530_v60 }
 0x610   :  { %v4546_v27 = vadd.f32 %v8088_v47, %v4516_v2  ;;  %v4533_v14 = vrot.slane %v4532_v54, 1 }
 0x612   :  { %v4559_v53 = vcombine.low %v4545_v15, %v4546_v27  ;;  %v4534_v4 = vadd.f32 %v4533_v14, %v4532_v54 }
 0x614   :  { %v4548_v38 = vadd.f32 %v8088_v47, %v4534_v4  ;;  %v4581_v0 = vrot.slane %v4559_v53, %v8092_v8 }
 0x616   :  { %v4560_v56 = vcombine.low %v4547_v35, %v4548_v38 }
 0x618   :  { %v4588_v20 = vrot.slane %v4560_v56, %v8092_v8 }
 0x61a   :  { %v4590_v10 = vcombine.low %v4581_v0, %v4588_v20 }
 0x61c   :  { %v4604_v26 = vrot.slane %v4590_v10, %v8092_v8 }
 0x61e   :  { %v4605_v25 = vcombine.low %v4597_v46, %v4604_v26 }
 0x620   :  { %4607 = vst [vmem:[#allocation2] sm:$0xff] %v4605_v25 }
 0x621   :  { %5075 = shalt.err (!%p5072_p4)
}
 0x622   :  { %s5076_s27 = scalar_lea.hbm %s8232_s5, 128 }
 0x623   :  { %p5077_p5 = scmp.ne.s32.totalorder %s8232_s5, %s5076_s27  ;;  %p5080_p6 = scmp.lt.u32.totalorder %s5076_s27, %s8232_s5 }
 0x625   :  { %p5082_p7 = pnand %p5080_p6, %p5077_p5 }
 0x627   :  { %5085 = shalt.err (!%p5082_p7)
}
 0x628   :  { %4617 = dma.vmem_to_hbm [thread:$0]  %s4615_s23, 128, %s8232_s5, [#allocation3]  }
 0x629   :  { %5086 = dma.done.wait [#allocation3], 128  }
 0x62a   :  { %5087 = vsyncadd [#allocation3], 4294967168 }
 0x62b   :  { %4621 = vsyncpa [#allocation3], 1 }

</bundles_post_ra>
